<compile_context>
chip_gen: v7x
topology: tpu7x:2x2x1
jax: 0.10.0
libtpu: 0.0.40
codegen_flags: <defaults>
</compile_context>

<pallas_src>
import functools

import jax
import jax.numpy as jnp
from jax import lax
from jax.experimental import pallas as pl
from jax.experimental.pallas import tpu as pltpu

EPS = 1e-5          # nn.LayerNorm default
NEG_INF = -1e30     # large-negative mask value (avoids inf-inf NaNs)


def _layernorm(x, gamma, beta):
    # Two-pass (x - mean)^2 variance: numerically stable, matches torch LN.
    mean = jnp.mean(x, axis=-1, keepdims=True)
    c = x - mean
    var = jnp.mean(c * c, axis=-1, keepdims=True)
    return c * lax.rsqrt(var + EPS) * gamma + beta


def transformer_block_kernel(
    v_ref, k_ref, q_ref,
    wqt_ref, wkt_ref, wvt_ref, wot_ref, bo_ref,
    g1_ref, be1_ref,
    w1t_ref, b1_ref, w2t_ref, b2_ref,
    g2_ref, be2_ref,
    o_ref,
    qp_sc, m_sc, l_sc, acc_sc, kp_cache, vp_cache,
    *, seq_len, padded_len,
):
    """Grid = (batch, q_tile, kv_tile); kv_tile is the online-softmax axis."""
    qi = pl.program_id(1)
    kv = pl.program_id(2)
    n_kv = pl.num_programs(2)
    cdt = wqt_ref.dtype                        # MXU compute dtype (bf16 or f32)
    E = q_ref.shape[-1]
    tk = k_ref.shape[1]
    scale = 1.0 / (float(E) ** 0.5)            # folded into the Q projection

    # ---- per-(batch, q-tile) init: project + scale Q once, reset softmax state.
    @pl.when(kv == 0)
    def _init():
        qp = jnp.dot(q_ref[0].astype(cdt), wqt_ref[...],
                     preferred_element_type=jnp.float32) * scale
        qp_sc[...] = qp.astype(qp_sc.dtype)
        m_sc[...] = jnp.full_like(m_sc, -jnp.inf)
        l_sc[...] = jnp.zeros_like(l_sc)
        acc_sc[...] = jnp.zeros_like(acc_sc)

    kv_off = pl.multiple_of(kv * tk, tk)

    # ---- per-batch K/V projection: only on the first q-tile, cached in VMEM
    # (removes the n_q-fold projection recompute and raw-k/v re-reads).
    @pl.when(qi == 0)
    def _project_kv():
        kp = jnp.dot(k_ref[0].astype(cdt), wkt_ref[...],
                     preferred_element_type=jnp.float32)
        vp = jnp.dot(v_ref[0].astype(cdt), wvt_ref[...],
                     preferred_element_type=jnp.float32)
        kp_cache[pl.ds(kv_off, tk), :] = kp.astype(kp_cache.dtype)
        vp_cache[pl.ds(kv_off, tk), :] = vp.astype(vp_cache.dtype)

    kp = kp_cache[pl.ds(kv_off, tk), :]
    vp = vp_cache[pl.ds(kv_off, tk), :]

    # energy = Q Kp^T, contracting the embed axis directly (same contraction as
    # the reference Pallas flash kernels -> no explicit K transpose).
    s = lax.dot_general(qp_sc[...], kp,
                        dimension_numbers=(((1,), (1,)), ((), ())),
                        preferred_element_type=jnp.float32)   # (tq, tk), scaled

    if seq_len != padded_len:       # static branch: mask padded key columns
        key_idx = kv_off + lax.broadcasted_iota(jnp.int32, s.shape, 1)
        s = jnp.where(key_idx < seq_len, s, NEG_INF)

    # Online softmax update. exp / stats stay f32 (v5e has no bf16 VPU/EUP; on
    # v6e/v7x a bf16 exp could be tried if the EUP ever becomes the bottleneck).
    m_new = jnp.maximum(m_sc[...], jnp.max(s, axis=-1, keepdims=True))
    alpha = jnp.exp(m_sc[...] - m_new)
    p = jnp.exp(s - m_new)
    l_sc[...] = alpha * l_sc[...] + jnp.sum(p, axis=-1, keepdims=True)
    acc_sc[...] = alpha * acc_sc[...] + jnp.dot(
        p.astype(cdt), vp, preferred_element_type=jnp.float32)
    m_sc[...] = m_new

    # ---- fused epilogue (fc_out -> LN1 -> FFN -> LN2) after the last KV tile.
    @pl.when(kv == n_kv - 1)
    def _finish():
        l = l_sc[...]
        inv_l = pl.reciprocal(l, approx=True)
        inv_l = inv_l * (2.0 - l * inv_l)          # one Newton step (near exact)
        attn = acc_sc[...] * inv_l                 # (tq, E) f32

        attn = jnp.dot(attn.astype(cdt), wot_ref[...],
                       preferred_element_type=jnp.float32) + bo_ref[...]

        # Residual uses the query in its original input precision.
        x = _layernorm(attn + q_ref[0].astype(jnp.float32),
                       g1_ref[...], be1_ref[...])

        h = jnp.dot(x.astype(cdt), w1t_ref[...],
                    preferred_element_type=jnp.float32) + b1_ref[...]
        h = jnp.maximum(h, 0.0)
        ff = jnp.dot(h.astype(cdt), w2t_ref[...],
                     preferred_element_type=jnp.float32) + b2_ref[...]

        out = _layernorm(ff + x, g2_ref[...], be2_ref[...])
        o_ref[0] = out.astype(o_ref.dtype)


def _pick_tiling(S, tile=None):
    """Prefer big tiles (fewer grid steps, better MXU/DMA amortization). If S is
    not a multiple of 128, pad up to one instead of falling back to a full-S
    block (which would defeat the flash tiling)."""
    if tile is not None:
        t = int(tile)
        return t, ((S + t - 1) // t) * t
    if S <= 128:
        return S, S
    s_pad = ((S + 127) // 128) * 128
    for t in (512, 256, 128):
        if s_pad % t == 0:
            return t, s_pad
    return 128, s_pad


def _vmem_capacity_bytes():
    # Hardware query with a conservative fallback (v7x: 64 MiB per TensorCore).
    try:
        cap = getattr(pltpu.get_tpu_info(), "vmem_capacity_bytes", None)
        if cap:
            return int(cap)
    except Exception:
        pass
    return 64 * 1024 * 1024


def simple_transformer_block(value, key, query, params, *,
                             compute_dtype=jnp.bfloat16, tile=None):
    """SimpleTransformerBlock forward. Weights stay in PyTorch
    (out_features, in_features) layout in `params`; transposed once here so the
    kernel never transposes on the XLU. Default: bf16 MXU operands with f32
    accumulation / softmax / LayerNorm."""
    B, S, E = query.shape
    H = 4 * E
    out_dtype = query.dtype
    cdt = compute_dtype

    tq, S_pad = _pick_tiling(S, tile)
    tk = tq
    n_q = S_pad // tq
    n_kv = S_pad // tk

    # Pre-transposed weights (x @ W^T == x @ Wt); MXU operands in compute dtype.
    wqt = params["wq"].T.astype(cdt)
    wkt = params["wk"].T.astype(cdt)
    wvt = params["wv"].T.astype(cdt)
    wot = params["wo"].T.astype(cdt)
    w1t = params["w1"].T.astype(cdt)          # (E, 4E)
    w2t = params["w2"].T.astype(cdt)          # (4E, E)
    bo, b1, b2 = params["bo"], params["b1"], params["b2"]
    g1, be1 = params["gamma1"], params["beta1"]
    g2, be2 = params["gamma2"], params["beta2"]

    # k/v only feed the MXU -> cast to compute dtype. The query also feeds the
    # residual / LayerNorm path, so it stays in its input precision.
    v_in, k_in, q_in = value.astype(cdt), key.astype(cdt), query
    if S_pad != S:
        pad = ((0, 0), (0, S_pad - S), (0, 0))
        v_in = jnp.pad(v_in, pad)
        k_in = jnp.pad(k_in, pad)
        q_in = jnp.pad(q_in, pad)

    csize = jnp.dtype(cdt).itemsize
    qsize = jnp.dtype(q_in.dtype).itemsize

    # VMEM working-set estimate (x1.5 headroom), capped below physical VMEM.
    est = (
        2 * ((4 * E * E + 2 * E * H) * csize + (6 * E + H) * 4)   # weights/biases
        + 2 * (2 * tq * E * qsize + 2 * tk * E * csize)           # q/out + k/v tiles
        + tq * E * csize + 2 * tq * 4 + tq * E * 4                # qp, m, l, acc
        + 2 * S_pad * E * csize                                   # K/V projection cache
        + (tq * tk + tq * H + 6 * tq * E) * 4                     # in-body temporaries
    )
    cap = _vmem_capacity_bytes()
    vmem_limit = int(min(max(int(est * 1.5), 32 * 1024 * 1024),
                         cap - 16 * 1024 * 1024))

    seq_q_spec = pl.BlockSpec((1, tq, E), lambda b, qi, kv: (b, qi, 0))
    # K/V tiles are only consumed on the first q-tile (projection + cache fill);
    # pin the block index afterwards so they are not re-DMA'd n_q times.
    seq_kv_spec = pl.BlockSpec(
        (1, tk, E), lambda b, qi, kv: (b, jnp.where(qi == 0, kv, 0), 0))
    out_spec = pl.BlockSpec((1, tq, E), lambda b, qi, kv: (b, qi, 0))

    def const_spec(shape):
        # Constant-index weights/biases: DMA'd once, revisited afterwards.
        return pl.BlockSpec(shape, lambda b, qi, kv: (0,) * len(shape))

    in_specs = [
        seq_kv_spec, seq_kv_spec, seq_q_spec,                        # value, key, query
        const_spec((E, E)), const_spec((E, E)), const_spec((E, E)),  # WqT, WkT, WvT
        const_spec((E, E)), const_spec((1, E)),                      # WoT, bo
        const_spec((1, E)), const_spec((1, E)),                      # gamma1, beta1
        const_spec((E, H)), const_spec((1, H)),                      # W1T, b1
        const_spec((H, E)), const_spec((1, E)),                      # W2T, b2
        const_spec((1, E)), const_spec((1, E)),                      # gamma2, beta2
    ]

    cost = pl.CostEstimate(
        flops=int(2 * B * (4 * S_pad * E * E          # q/k/v/fc_out projections
                           + 2 * S_pad * S_pad * E    # QK^T + PV
                           + 2 * S_pad * E * H)),     # FFN
        transcendentals=int(B * S_pad * S_pad),
        bytes_accessed=int(4 * B * S_pad * E * max(csize, qsize)
                           + (4 * E * E + 2 * E * H) * csize),
    )

    kernel = functools.partial(transformer_block_kernel,
                               seq_len=S, padded_len=S_pad)

    out = pl.pallas_call(
        kernel,
        out_shape=jax.ShapeDtypeStruct((B, S_pad, E), out_dtype),
        grid_spec=pltpu.PrefetchScalarGridSpec(
            num_scalar_prefetch=0,
            grid=(B, n_q, n_kv),
            in_specs=in_specs,
            out_specs=out_spec,
            scratch_shapes=[
                pltpu.VMEM((tq, E), cdt),           # projected + scaled Q tile
                pltpu.VMEM((tq, 1), jnp.float32),   # running max m
                pltpu.VMEM((tq, 1), jnp.float32),   # running denom l
                pltpu.VMEM((tq, E), jnp.float32),   # running accumulator
                pltpu.VMEM((S_pad, E), cdt),        # projected K cache (per batch)
                pltpu.VMEM((S_pad, E), cdt),        # projected V cache (per batch)
            ],
        ),
        # qi must stay sequential per batch (the K/V cache is filled at qi == 0);
        # the batch axis is the parallel one that feeds both v7x TensorCores.
        compiler_params=pltpu.CompilerParams(
            dimension_semantics=("parallel", "arbitrary", "arbitrary"),
            vmem_limit_bytes=vmem_limit,
        ),
        cost_estimate=cost,
    )(v_in, k_in, q_in,
      wqt, wkt, wvt, wot, bo,
      g1, be1,
      w1t, b1, w2t, b2,
      g2, be2)

    return out[:, :S, :] if S_pad != S else out


def init_params(rng, E):
    H = 4 * E
    keys = jax.random.split(rng, 8)
    s = 1.0 / jnp.sqrt(E)
    s_h = 1.0 / jnp.sqrt(H)
    return {
        # nn.Linear stores weight as (out_features, in_features)
        "wq": jax.random.uniform(keys[0], (E, E), jnp.float32, -s, s),
        "wk": jax.random.uniform(keys[1], (E, E), jnp.float32, -s, s),
        "wv": jax.random.uniform(keys[2], (E, E), jnp.float32, -s, s),
        "wo": jax.random.uniform(keys[3], (E, E), jnp.float32, -s, s),
        "bo": jax.random.uniform(keys[4], (1, E), jnp.float32, -s, s),
        "gamma1": jnp.ones((1, E), jnp.float32),
        "beta1": jnp.zeros((1, E), jnp.float32),
        "w1": jax.random.uniform(keys[5], (H, E), jnp.float32, -s, s),
        "b1": jax.random.uniform(keys[6], (1, H), jnp.float32, -s, s),
        "w2": jax.random.uniform(keys[7], (E, H), jnp.float32, -s_h, s_h),
        "b2": jnp.zeros((1, E), jnp.float32),
        "gamma2": jnp.ones((1, E), jnp.float32),
        "beta2": jnp.zeros((1, E), jnp.float32),
    }


def reference(value, key, query, p):
    # Pure-JAX reference mirroring the PyTorch module.
    E = query.shape[-1]
    Q = query @ p["wq"].T
    K = key @ p["wk"].T
    V = value @ p["wv"].T
    energy = jnp.einsum("bqe,bke->bqk", Q, K)
    attn = jax.nn.softmax(energy / jnp.sqrt(jnp.float32(E)), axis=-1)
    out = jnp.einsum("bqk,bke->bqe", attn, V) @ p["wo"].T + p["bo"][0]

    def ln(x, g, b):
        mu = jnp.mean(x, axis=-1, keepdims=True)
        var = jnp.mean((x - mu) ** 2, axis=-1, keepdims=True)
        return (x - mu) * lax.rsqrt(var + EPS) * g[0] + b[0]

    x = ln(out + query, p["gamma1"], p["beta1"])
    h = jnp.maximum(x @ p["w1"].T + p["b1"][0], 0.0)
    ff = h @ p["w2"].T + p["b2"][0]
    return ln(ff + x, p["gamma2"], p["beta2"])


if __name__ == "__main__":
    B, E = 2, 128
    rng = jax.random.PRNGKey(0)
    k_v, k_k, k_q, k_p, k_v2, k_k2, k_q2 = jax.random.split(rng, 7)
    params = init_params(k_p, E)

    # Run 1: f32 path, forced 128 tiles -> exercises the multi-(q,kv)-tile flash
    # path and the per-batch K/V projection cache reuse. Tight tolerance.
    S = 256
    value = jax.random.normal(k_v, (B, S, E), jnp.float32)
    key = jax.random.normal(k_k, (B, S, E), jnp.float32)
    query = jax.random.normal(k_q, (B, S, E), jnp.float32)
    ref = reference(value, key, query, params)

    out_f32 = jax.block_until_ready(simple_transformer_block(
        value, key, query, params, compute_dtype=jnp.float32, tile=128))
    assert out_f32.shape == (B, S, E)
    assert jnp.allclose(out_f32, ref, atol=2e-3, rtol=2e-3), "f32 kernel mismatch"

    # Run 2: default fast path (bf16 MXU operands, large tiles). Loose check.
    out_bf16 = jax.block_until_ready(
        simple_transformer_block(value, key, query, params))
    assert out_bf16.shape == (B, S, E)
    assert bool(jnp.all(jnp.isfinite(out_bf16)))
    assert jnp.allclose(out_bf16, ref, atol=1e-1, rtol=1e-1), "bf16 kernel diverged"

    # Run 3: sequence not a multiple of 128 -> wrapper pads, kernel masks keys.
    S2 = 200
    value2 = jax.random.normal(k_v2, (B, S2, E), jnp.float32)
    key2 = jax.random.normal(k_k2, (B, S2, E), jnp.float32)
    query2 = jax.random.normal(k_q2, (B, S2, E), jnp.float32)
    ref2 = reference(value2, key2, query2, params)
    out_pad = jax.block_until_ready(simple_transformer_block(
        value2, key2, query2, params, compute_dtype=jnp.float32))
    assert out_pad.shape == (B, S2, E)
    assert jnp.allclose(out_pad, ref2, atol=2e-3, rtol=2e-3), "padded kernel mismatch"

    print("KERNEL_OK")
</pallas_src>

<mosaic_0001>
module attributes {stable_mosaic.version = 11 : i64} {
  func.func @transformer_block_kernel(%arg0: i32, %arg1: i32, %arg2: i32, %arg3: memref<1x128x128xf32, #tpu.memory_space<vmem>>, %arg4: memref<1x128x128xf32, #tpu.memory_space<vmem>>, %arg5: memref<1x128x128xf32, #tpu.memory_space<vmem>>, %arg6: memref<128x128xf32, #tpu.memory_space<vmem>>, %arg7: memref<128x128xf32, #tpu.memory_space<vmem>>, %arg8: memref<128x128xf32, #tpu.memory_space<vmem>>, %arg9: memref<128x128xf32, #tpu.memory_space<vmem>>, %arg10: memref<1x128xf32, #tpu.memory_space<vmem>>, %arg11: memref<1x128xf32, #tpu.memory_space<vmem>>, %arg12: memref<1x128xf32, #tpu.memory_space<vmem>>, %arg13: memref<128x512xf32, #tpu.memory_space<vmem>>, %arg14: memref<1x512xf32, #tpu.memory_space<vmem>>, %arg15: memref<512x128xf32, #tpu.memory_space<vmem>>, %arg16: memref<1x128xf32, #tpu.memory_space<vmem>>, %arg17: memref<1x128xf32, #tpu.memory_space<vmem>>, %arg18: memref<1x128xf32, #tpu.memory_space<vmem>>, %arg19: memref<1x128x128xf32, #tpu.memory_space<vmem>>, %arg20: memref<128x128xf32, #tpu.memory_space<vmem>>, %arg21: memref<128x1xf32, #tpu.memory_space<vmem>>, %arg22: memref<128x1xf32, #tpu.memory_space<vmem>>, %arg23: memref<128x128xf32, #tpu.memory_space<vmem>>, %arg24: memref<256x128xf32, #tpu.memory_space<vmem>>, %arg25: memref<256x128xf32, #tpu.memory_space<vmem>>) attributes {dimension_semantics = [#tpu.dimension_semantics<parallel>, #tpu.dimension_semantics<arbitrary>, #tpu.dimension_semantics<arbitrary>], iteration_bounds = array<i64: 2, 2, 2>, scalar_prefetch = 0 : i64, scratch_operands = 6 : i64, tpu.core_type = #tpu.core_type<tc>, window_params = [{transform_indices = @transform_0, window_bounds = array<i64: 1, 128, 128>}, {transform_indices = @transform_1, window_bounds = array<i64: 1, 128, 128>}, {transform_indices = @transform_2, window_bounds = array<i64: 1, 128, 128>}, {pipeline_mode = #tpu.pipeline_mode<synchronous>, transform_indices = @transform_3, window_bounds = array<i64: 128, 128>}, {pipeline_mode = #tpu.pipeline_mode<synchronous>, transform_indices = @transform_4, window_bounds = array<i64: 128, 128>}, {pipeline_mode = #tpu.pipeline_mode<synchronous>, transform_indices = @transform_5, window_bounds = array<i64: 128, 128>}, {pipeline_mode = #tpu.pipeline_mode<synchronous>, transform_indices = @transform_6, window_bounds = array<i64: 128, 128>}, {pipeline_mode = #tpu.pipeline_mode<synchronous>, transform_indices = @transform_7, window_bounds = array<i64: 1, 128>}, {pipeline_mode = #tpu.pipeline_mode<synchronous>, transform_indices = @transform_8, window_bounds = array<i64: 1, 128>}, {pipeline_mode = #tpu.pipeline_mode<synchronous>, transform_indices = @transform_9, window_bounds = array<i64: 1, 128>}, {pipeline_mode = #tpu.pipeline_mode<synchronous>, transform_indices = @transform_10, window_bounds = array<i64: 128, 512>}, {pipeline_mode = #tpu.pipeline_mode<synchronous>, transform_indices = @transform_11, window_bounds = array<i64: 1, 512>}, {pipeline_mode = #tpu.pipeline_mode<synchronous>, transform_indices = @transform_12, window_bounds = array<i64: 512, 128>}, {pipeline_mode = #tpu.pipeline_mode<synchronous>, transform_indices = @transform_13, window_bounds = array<i64: 1, 128>}, {pipeline_mode = #tpu.pipeline_mode<synchronous>, transform_indices = @transform_14, window_bounds = array<i64: 1, 128>}, {pipeline_mode = #tpu.pipeline_mode<synchronous>, transform_indices = @transform_15, window_bounds = array<i64: 1, 128>}, {transform_indices = @transform_16, window_bounds = array<i64: 1, 128, 128>}]} {
    %c0_i32 = arith.constant 0 : i32
    %0 = arith.cmpi eq, %arg2, %c0_i32 : i32
    %1 = arith.extui %0 : i1 to i32
    %c0_i32_0 = arith.constant 0 : i32
    %2 = arith.cmpi ne, %1, %c0_i32_0 : i32
    scf.if %2 {
      %c0_24 = arith.constant 0 : index
      %c0_25 = arith.constant 0 : index
      %c0_26 = arith.constant 0 : index
      %40 = vector.load %arg5[%c0_24, %c0_25, %c0_26] : memref<1x128x128xf32, #tpu.memory_space<vmem>>, vector<1x128x128xf32>
      %41 = vector.shape_cast %40 : vector<1x128x128xf32> to vector<128x128xf32>
      %c0_27 = arith.constant 0 : index
      %c0_28 = arith.constant 0 : index
      %42 = vector.load %arg6[%c0_27, %c0_28] : memref<128x128xf32, #tpu.memory_space<vmem>>, vector<128x128xf32>
      %cst_29 = arith.constant dense<0.000000e+00> : vector<128x128xf32>
      %43 = tpu.matmul %41, %42, %cst_29 {dimension_numbers = #tpu.dot_dimension_numbers<[1], [0], [0], [1], [0, 0, 1, 1], [], []>} : vector<128x128xf32>, vector<128x128xf32>, vector<128x128xf32> -> vector<128x128xf32>
      %cst_30 = arith.constant 0.0883883461 : f32
      %44 = vector.broadcast %cst_30 : f32 to vector<128x128xf32>
      %45 = arith.mulf %43, %44 : vector<128x128xf32>
      %c0_31 = arith.constant 0 : index
      %c0_32 = arith.constant 0 : index
      %46 = vector.load %arg20[%c0_31, %c0_32] : memref<128x128xf32, #tpu.memory_space<vmem>>, vector<128x128xf32>
      tpu.vector_store %arg20[%c0_31, %c0_32], %45 {strides = array<i32>} : memref<128x128xf32, #tpu.memory_space<vmem>>, vector<128x128xf32>,
      %cst_33 = arith.constant 0xFF800000 : f32
      %47 = vector.broadcast %cst_33 : f32 to vector<128x1xf32>
      %c0_34 = arith.constant 0 : index
      %c0_35 = arith.constant 0 : index
      %48 = vector.load %arg21[%c0_34, %c0_35] : memref<128x1xf32, #tpu.memory_space<vmem>>, vector<128x1xf32>
      tpu.vector_store %arg21[%c0_34, %c0_35], %47 {strides = array<i32>} : memref<128x1xf32, #tpu.memory_space<vmem>>, vector<128x1xf32>,
      %cst_36 = arith.constant 0.000000e+00 : f32
      %49 = vector.broadcast %cst_36 : f32 to vector<128x1xf32>
      %c0_37 = arith.constant 0 : index
      %c0_38 = arith.constant 0 : index
      %50 = vector.load %arg22[%c0_37, %c0_38] : memref<128x1xf32, #tpu.memory_space<vmem>>, vector<128x1xf32>
      tpu.vector_store %arg22[%c0_37, %c0_38], %49 {strides = array<i32>} : memref<128x1xf32, #tpu.memory_space<vmem>>, vector<128x1xf32>,
      %cst_39 = arith.constant 0.000000e+00 : f32
      %51 = vector.broadcast %cst_39 : f32 to vector<128x128xf32>
      %c0_40 = arith.constant 0 : index
      %c0_41 = arith.constant 0 : index
      %52 = vector.load %arg23[%c0_40, %c0_41] : memref<128x128xf32, #tpu.memory_space<vmem>>, vector<128x128xf32>
      tpu.vector_store %arg23[%c0_40, %c0_41], %51 {strides = array<i32>} : memref<128x128xf32, #tpu.memory_space<vmem>>, vector<128x128xf32>,
    } else {
    }
    %c128_i32 = arith.constant 128 : i32
    %3 = arith.muli %arg2, %c128_i32 : i32
    %4 = tpu.assume_multiple %3, 128 : i32
    %c0_i32_1 = arith.constant 0 : i32
    %5 = arith.cmpi eq, %arg1, %c0_i32_1 : i32
    %6 = arith.extui %5 : i1 to i32
    %c0_i32_2 = arith.constant 0 : i32
    %7 = arith.cmpi ne, %6, %c0_i32_2 : i32
    scf.if %7 {
      %c0_24 = arith.constant 0 : index
      %c0_25 = arith.constant 0 : index
      %c0_26 = arith.constant 0 : index
      %40 = vector.load %arg4[%c0_24, %c0_25, %c0_26] : memref<1x128x128xf32, #tpu.memory_space<vmem>>, vector<1x128x128xf32>
      %41 = vector.shape_cast %40 : vector<1x128x128xf32> to vector<128x128xf32>
      %c0_27 = arith.constant 0 : index
      %c0_28 = arith.constant 0 : index
      %42 = vector.load %arg7[%c0_27, %c0_28] : memref<128x128xf32, #tpu.memory_space<vmem>>, vector<128x128xf32>
      %cst_29 = arith.constant dense<0.000000e+00> : vector<128x128xf32>
      %43 = tpu.matmul %41, %42, %cst_29 {dimension_numbers = #tpu.dot_dimension_numbers<[1], [0], [0], [1], [0, 0, 1, 1], [], []>} : vector<128x128xf32>, vector<128x128xf32>, vector<128x128xf32> -> vector<128x128xf32>
      %c0_30 = arith.constant 0 : index
      %c0_31 = arith.constant 0 : index
      %c0_32 = arith.constant 0 : index
      %44 = vector.load %arg3[%c0_30, %c0_31, %c0_32] : memref<1x128x128xf32, #tpu.memory_space<vmem>>, vector<1x128x128xf32>
      %45 = vector.shape_cast %44 : vector<1x128x128xf32> to vector<128x128xf32>
      %c0_33 = arith.constant 0 : index
      %c0_34 = arith.constant 0 : index
      %46 = vector.load %arg8[%c0_33, %c0_34] : memref<128x128xf32, #tpu.memory_space<vmem>>, vector<128x128xf32>
      %cst_35 = arith.constant dense<0.000000e+00> : vector<128x128xf32>
      %47 = tpu.matmul %45, %46, %cst_35 {dimension_numbers = #tpu.dot_dimension_numbers<[1], [0], [0], [1], [0, 0, 1, 1], [], []>} : vector<128x128xf32>, vector<128x128xf32>, vector<128x128xf32> -> vector<128x128xf32>
      %48 = arith.index_cast %4 : i32 to index
      %c0_36 = arith.constant 0 : index
      %49 = vector.load %arg24[%48, %c0_36] : memref<256x128xf32, #tpu.memory_space<vmem>>, vector<128x128xf32>
      tpu.vector_store %arg24[%48, %c0_36], %43 {strides = array<i32>} : memref<256x128xf32, #tpu.memory_space<vmem>>, vector<128x128xf32>,
      %50 = arith.index_cast %4 : i32 to index
      %c0_37 = arith.constant 0 : index
      %51 = vector.load %arg25[%50, %c0_37] : memref<256x128xf32, #tpu.memory_space<vmem>>, vector<128x128xf32>
      tpu.vector_store %arg25[%50, %c0_37], %47 {strides = array<i32>} : memref<256x128xf32, #tpu.memory_space<vmem>>, vector<128x128xf32>,
    } else {
    }
    %8 = arith.index_cast %4 : i32 to index
    %c0 = arith.constant 0 : index
    %9 = vector.load %arg24[%8, %c0] : memref<256x128xf32, #tpu.memory_space<vmem>>, vector<128x128xf32>
    %10 = arith.index_cast %4 : i32 to index
    %c0_3 = arith.constant 0 : index
    %11 = vector.load %arg25[%10, %c0_3] : memref<256x128xf32, #tpu.memory_space<vmem>>, vector<128x128xf32>
    %c0_4 = arith.constant 0 : index
    %c0_5 = arith.constant 0 : index
    %12 = vector.load %arg20[%c0_4, %c0_5] : memref<128x128xf32, #tpu.memory_space<vmem>>, vector<128x128xf32>
    %cst = arith.constant dense<0.000000e+00> : vector<128x128xf32>
    %13 = tpu.matmul %12, %9, %cst {dimension_numbers = #tpu.dot_dimension_numbers<[1], [1], [0], [0], [0, 0, 1, 0], [], []>} : vector<128x128xf32>, vector<128x128xf32>, vector<128x128xf32> -> vector<128x128xf32>
    %c0_6 = arith.constant 0 : index
    %c0_7 = arith.constant 0 : index
    %14 = vector.load %arg21[%c0_6, %c0_7] : memref<128x1xf32, #tpu.memory_space<vmem>>, vector<128x1xf32>
    %cst_8 = arith.constant dense<0xFF800000> : vector<128xf32>
    %15 = vector.multi_reduction <maximumf>, %13, %cst_8 [1] : vector<128x128xf32> to vector<128xf32>
    %16 = vector.shape_cast %15 : vector<128xf32> to vector<128x1xf32>
    %17 = arith.maximumf %14, %16 : vector<128x1xf32>
    %c0_9 = arith.constant 0 : index
    %c0_10 = arith.constant 0 : index
    %18 = vector.load %arg21[%c0_9, %c0_10] : memref<128x1xf32, #tpu.memory_space<vmem>>, vector<128x1xf32>
    %19 = arith.subf %18, %17 : vector<128x1xf32>
    %20 = math.exp %19 : vector<128x1xf32>
    %21 = vector.broadcast %17 : vector<128x1xf32> to vector<128x128xf32>
    %22 = arith.subf %13, %21 : vector<128x128xf32>
    %23 = math.exp %22 : vector<128x128xf32>
    %c0_11 = arith.constant 0 : index
    %c0_12 = arith.constant 0 : index
    %24 = vector.load %arg22[%c0_11, %c0_12] : memref<128x1xf32, #tpu.memory_space<vmem>>, vector<128x1xf32>
    %25 = arith.mulf %20, %24 : vector<128x1xf32>
    %cst_13 = arith.constant dense<0.000000e+00> : vector<128xf32>
    %26 = vector.multi_reduction <add>, %23, %cst_13 [1] : vector<128x128xf32> to vector<128xf32>
    %27 = vector.shape_cast %26 : vector<128xf32> to vector<128x1xf32>
    %28 = arith.addf %25, %27 : vector<128x1xf32>
    %c0_14 = arith.constant 0 : index
    %c0_15 = arith.constant 0 : index
    %29 = vector.load %arg22[%c0_14, %c0_15] : memref<128x1xf32, #tpu.memory_space<vmem>>, vector<128x1xf32>
    tpu.vector_store %arg22[%c0_14, %c0_15], %28 {strides = array<i32>} : memref<128x1xf32, #tpu.memory_space<vmem>>, vector<128x1xf32>,
    %c0_16 = arith.constant 0 : index
    %c0_17 = arith.constant 0 : index
    %30 = vector.load %arg23[%c0_16, %c0_17] : memref<128x128xf32, #tpu.memory_space<vmem>>, vector<128x128xf32>
    %31 = vector.broadcast %20 : vector<128x1xf32> to vector<128x128xf32>
    %32 = arith.mulf %31, %30 : vector<128x128xf32>
    %cst_18 = arith.constant dense<0.000000e+00> : vector<128x128xf32>
    %33 = tpu.matmul %23, %11, %cst_18 {dimension_numbers = #tpu.dot_dimension_numbers<[1], [0], [0], [1], [0, 0, 1, 1], [], []>} : vector<128x128xf32>, vector<128x128xf32>, vector<128x128xf32> -> vector<128x128xf32>
    %34 = arith.addf %32, %33 : vector<128x128xf32>
    %c0_19 = arith.constant 0 : index
    %c0_20 = arith.constant 0 : index
    %35 = vector.load %arg23[%c0_19, %c0_20] : memref<128x128xf32, #tpu.memory_space<vmem>>, vector<128x128xf32>
    tpu.vector_store %arg23[%c0_19, %c0_20], %34 {strides = array<i32>} : memref<128x128xf32, #tpu.memory_space<vmem>>, vector<128x128xf32>,
    %c0_21 = arith.constant 0 : index
    %c0_22 = arith.constant 0 : index
    %36 = vector.load %arg21[%c0_21, %c0_22] : memref<128x1xf32, #tpu.memory_space<vmem>>, vector<128x1xf32>
    tpu.vector_store %arg21[%c0_21, %c0_22], %17 {strides = array<i32>} : memref<128x1xf32, #tpu.memory_space<vmem>>, vector<128x1xf32>,
    %c1_i32 = arith.constant 1 : i32
    %37 = arith.cmpi eq, %arg2, %c1_i32 : i32
    %38 = arith.extui %37 : i1 to i32
    %c0_i32_23 = arith.constant 0 : i32
    %39 = arith.cmpi ne, %38, %c0_i32_23 : i32
    scf.if %39 {
      %c0_24 = arith.constant 0 : index
      %c0_25 = arith.constant 0 : index
      %40 = vector.load %arg22[%c0_24, %c0_25] : memref<128x1xf32, #tpu.memory_space<vmem>>, vector<128x1xf32>
      %41 = tpu.reciprocal %40 {approx = true} : vector<128x1xf32> -> vector<128x1xf32>
      %42 = arith.mulf %40, %41 : vector<128x1xf32>
      %cst_26 = arith.constant 2.000000e+00 : f32
      %43 = vector.broadcast %cst_26 : f32 to vector<128x1xf32>
      %44 = arith.subf %43, %42 : vector<128x1xf32>
      %45 = arith.mulf %41, %44 : vector<128x1xf32>
      %c0_27 = arith.constant 0 : index
      %c0_28 = arith.constant 0 : index
      %46 = vector.load %arg23[%c0_27, %c0_28] : memref<128x128xf32, #tpu.memory_space<vmem>>, vector<128x128xf32>
      %47 = vector.broadcast %45 : vector<128x1xf32> to vector<128x128xf32>
      %48 = arith.mulf %46, %47 : vector<128x128xf32>
      %c0_29 = arith.constant 0 : index
      %c0_30 = arith.constant 0 : index
      %49 = vector.load %arg9[%c0_29, %c0_30] : memref<128x128xf32, #tpu.memory_space<vmem>>, vector<128x128xf32>
      %cst_31 = arith.constant dense<0.000000e+00> : vector<128x128xf32>
      %50 = tpu.matmul %48, %49, %cst_31 {dimension_numbers = #tpu.dot_dimension_numbers<[1], [0], [0], [1], [0, 0, 1, 1], [], []>} : vector<128x128xf32>, vector<128x128xf32>, vector<128x128xf32> -> vector<128x128xf32>
      %c0_32 = arith.constant 0 : index
      %c0_33 = arith.constant 0 : index
      %51 = vector.load %arg10[%c0_32, %c0_33] : memref<1x128xf32, #tpu.memory_space<vmem>>, vector<1x128xf32>
      %52 = vector.broadcast %51 : vector<1x128xf32> to vector<128x128xf32>
      %53 = arith.addf %50, %52 : vector<128x128xf32>
      %c0_34 = arith.constant 0 : index
      %c0_35 = arith.constant 0 : index
      %c0_36 = arith.constant 0 : index
      %54 = vector.load %arg5[%c0_34, %c0_35, %c0_36] : memref<1x128x128xf32, #tpu.memory_space<vmem>>, vector<1x128x128xf32>
      %55 = vector.shape_cast %54 : vector<1x128x128xf32> to vector<128x128xf32>
      %56 = arith.addf %53, %55 : vector<128x128xf32>
      %c0_37 = arith.constant 0 : index
      %c0_38 = arith.constant 0 : index
      %57 = vector.load %arg11[%c0_37, %c0_38] : memref<1x128xf32, #tpu.memory_space<vmem>>, vector<1x128xf32>
      %c0_39 = arith.constant 0 : index
      %c0_40 = arith.constant 0 : index
      %58 = vector.load %arg12[%c0_39, %c0_40] : memref<1x128xf32, #tpu.memory_space<vmem>>, vector<1x128xf32>
      %cst_41 = arith.constant dense<0.000000e+00> : vector<128xf32>
      %59 = vector.multi_reduction <add>, %56, %cst_41 [1] : vector<128x128xf32> to vector<128xf32>
      %60 = vector.shape_cast %59 : vector<128xf32> to vector<128x1xf32>
      %cst_42 = arith.constant 1.280000e+02 : f32
      %61 = vector.broadcast %cst_42 : f32 to vector<128x1xf32>
      %62 = arith.divf %60, %61 : vector<128x1xf32>
      %63 = vector.broadcast %62 : vector<128x1xf32> to vector<128x128xf32>
      %64 = arith.subf %56, %63 : vector<128x128xf32>
      %65 = arith.mulf %64, %64 : vector<128x128xf32>
      %cst_43 = arith.constant dense<0.000000e+00> : vector<128xf32>
      %66 = vector.multi_reduction <add>, %65, %cst_43 [1] : vector<128x128xf32> to vector<128xf32>
      %67 = vector.shape_cast %66 : vector<128xf32> to vector<128x1xf32>
      %cst_44 = arith.constant 1.280000e+02 : f32
      %68 = vector.broadcast %cst_44 : f32 to vector<128x1xf32>
      %69 = arith.divf %67, %68 : vector<128x1xf32>
      %cst_45 = arith.constant 9.99999974E-6 : f32
      %70 = vector.broadcast %cst_45 : f32 to vector<128x1xf32>
      %71 = arith.addf %69, %70 : vector<128x1xf32>
      %72 = math.rsqrt %71 : vector<128x1xf32>
      %73 = vector.broadcast %72 : vector<128x1xf32> to vector<128x128xf32>
      %74 = arith.mulf %64, %73 : vector<128x128xf32>
      %75 = vector.broadcast %57 : vector<1x128xf32> to vector<128x128xf32>
      %76 = arith.mulf %74, %75 : vector<128x128xf32>
      %77 = vector.broadcast %58 : vector<1x128xf32> to vector<128x128xf32>
      %78 = arith.addf %76, %77 : vector<128x128xf32>
      %c0_46 = arith.constant 0 : index
      %c0_47 = arith.constant 0 : index
      %79 = vector.load %arg13[%c0_46, %c0_47] : memref<128x512xf32, #tpu.memory_space<vmem>>, vector<128x512xf32>
      %cst_48 = arith.constant dense<0.000000e+00> : vector<128x512xf32>
      %80 = tpu.matmul %78, %79, %cst_48 {dimension_numbers = #tpu.dot_dimension_numbers<[1], [0], [0], [1], [0, 0, 1, 1], [], []>} : vector<128x128xf32>, vector<128x512xf32>, vector<128x512xf32> -> vector<128x512xf32>
      %c0_49 = arith.constant 0 : index
      %c0_50 = arith.constant 0 : index
      %81 = vector.load %arg14[%c0_49, %c0_50] : memref<1x512xf32, #tpu.memory_space<vmem>>, vector<1x512xf32>
      %82 = vector.broadcast %81 : vector<1x512xf32> to vector<128x512xf32>
      %83 = arith.addf %80, %82 : vector<128x512xf32>
      %cst_51 = arith.constant 0.000000e+00 : f32
      %84 = vector.broadcast %cst_51 : f32 to vector<128x512xf32>
      %85 = arith.maximumf %83, %84 : vector<128x512xf32>
      %c0_52 = arith.constant 0 : index
      %c0_53 = arith.constant 0 : index
      %86 = vector.load %arg15[%c0_52, %c0_53] : memref<512x128xf32, #tpu.memory_space<vmem>>, vector<512x128xf32>
      %cst_54 = arith.constant dense<0.000000e+00> : vector<128x128xf32>
      %87 = tpu.matmul %85, %86, %cst_54 {dimension_numbers = #tpu.dot_dimension_numbers<[1], [0], [0], [1], [0, 0, 1, 1], [], []>} : vector<128x512xf32>, vector<512x128xf32>, vector<128x128xf32> -> vector<128x128xf32>
      %c0_55 = arith.constant 0 : index
      %c0_56 = arith.constant 0 : index
      %88 = vector.load %arg16[%c0_55, %c0_56] : memref<1x128xf32, #tpu.memory_space<vmem>>, vector<1x128xf32>
      %89 = vector.broadcast %88 : vector<1x128xf32> to vector<128x128xf32>
      %90 = arith.addf %87, %89 : vector<128x128xf32>
      %91 = arith.addf %90, %78 : vector<128x128xf32>
      %c0_57 = arith.constant 0 : index
      %c0_58 = arith.constant 0 : index
      %92 = vector.load %arg17[%c0_57, %c0_58] : memref<1x128xf32, #tpu.memory_space<vmem>>, vector<1x128xf32>
      %c0_59 = arith.constant 0 : index
      %c0_60 = arith.constant 0 : index
      %93 = vector.load %arg18[%c0_59, %c0_60] : memref<1x128xf32, #tpu.memory_space<vmem>>, vector<1x128xf32>
      %cst_61 = arith.constant dense<0.000000e+00> : vector<128xf32>
      %94 = vector.multi_reduction <add>, %91, %cst_61 [1] : vector<128x128xf32> to vector<128xf32>
      %95 = vector.shape_cast %94 : vector<128xf32> to vector<128x1xf32>
      %cst_62 = arith.constant 1.280000e+02 : f32
      %96 = vector.broadcast %cst_62 : f32 to vector<128x1xf32>
      %97 = arith.divf %95, %96 : vector<128x1xf32>
      %98 = vector.broadcast %97 : vector<128x1xf32> to vector<128x128xf32>
      %99 = arith.subf %91, %98 : vector<128x128xf32>
      %100 = arith.mulf %99, %99 : vector<128x128xf32>
      %cst_63 = arith.constant dense<0.000000e+00> : vector<128xf32>
      %101 = vector.multi_reduction <add>, %100, %cst_63 [1] : vector<128x128xf32> to vector<128xf32>
      %102 = vector.shape_cast %101 : vector<128xf32> to vector<128x1xf32>
      %cst_64 = arith.constant 1.280000e+02 : f32
      %103 = vector.broadcast %cst_64 : f32 to vector<128x1xf32>
      %104 = arith.divf %102, %103 : vector<128x1xf32>
      %cst_65 = arith.constant 9.99999974E-6 : f32
      %105 = vector.broadcast %cst_65 : f32 to vector<128x1xf32>
      %106 = arith.addf %104, %105 : vector<128x1xf32>
      %107 = math.rsqrt %106 : vector<128x1xf32>
      %108 = vector.broadcast %107 : vector<128x1xf32> to vector<128x128xf32>
      %109 = arith.mulf %99, %108 : vector<128x128xf32>
      %110 = vector.broadcast %92 : vector<1x128xf32> to vector<128x128xf32>
      %111 = arith.mulf %109, %110 : vector<128x128xf32>
      %112 = vector.broadcast %93 : vector<1x128xf32> to vector<128x128xf32>
      %113 = arith.addf %111, %112 : vector<128x128xf32>
      %c0_66 = arith.constant 0 : index
      %c0_67 = arith.constant 0 : index
      %c0_68 = arith.constant 0 : index
      %114 = vector.load %arg19[%c0_66, %c0_67, %c0_68] : memref<1x128x128xf32, #tpu.memory_space<vmem>>, vector<1x128x128xf32>
      %115 = vector.shape_cast %114 : vector<1x128x128xf32> to vector<128x128xf32>
      %116 = vector.shape_cast %113 : vector<128x128xf32> to vector<1x128x128xf32>
      tpu.vector_store %arg19[%c0_66, %c0_67, %c0_68], %116 {strides = array<i32>} : memref<1x128x128xf32, #tpu.memory_space<vmem>>, vector<1x128x128xf32>,
    } else {
    }
    return
  }
  func.func @transform_0(%arg0: i32, %arg1: i32, %arg2: i32) -> (i32, i32, i32) {
    %c0_i32 = arith.constant 0 : i32
    %0 = arith.cmpi eq, %arg1, %c0_i32 : i32
    %c0_i32_0 = arith.constant 0 : i32
    %1 = arith.select %0, %arg2, %c0_i32_0 : i32
    %c0_i32_1 = arith.constant 0 : i32
    %c0_i32_2 = arith.constant 0 : i32
    return %arg0, %1, %c0_i32_1 : i32, i32, i32
  }
  func.func @transform_1(%arg0: i32, %arg1: i32, %arg2: i32) -> (i32, i32, i32) {
    %c0_i32 = arith.constant 0 : i32
    %0 = arith.cmpi eq, %arg1, %c0_i32 : i32
    %c0_i32_0 = arith.constant 0 : i32
    %1 = arith.select %0, %arg2, %c0_i32_0 : i32
    %c0_i32_1 = arith.constant 0 : i32
    %c0_i32_2 = arith.constant 0 : i32
    return %arg0, %1, %c0_i32_1 : i32, i32, i32
  }
  func.func @transform_2(%arg0: i32, %arg1: i32, %arg2: i32) -> (i32, i32, i32) {
    %c0_i32 = arith.constant 0 : i32
    %c0_i32_0 = arith.constant 0 : i32
    return %arg0, %arg1, %c0_i32 : i32, i32, i32
  }
  func.func @transform_3(%arg0: i32, %arg1: i32, %arg2: i32) -> (i32, i32) {
    %c0_i32 = arith.constant 0 : i32
    %c0_i32_0 = arith.constant 0 : i32
    %c0_i32_1 = arith.constant 0 : i32
    return %c0_i32, %c0_i32_0 : i32, i32
  }
  func.func @transform_4(%arg0: i32, %arg1: i32, %arg2: i32) -> (i32, i32) {
    %c0_i32 = arith.constant 0 : i32
    %c0_i32_0 = arith.constant 0 : i32
    %c0_i32_1 = arith.constant 0 : i32
    return %c0_i32, %c0_i32_0 : i32, i32
  }
  func.func @transform_5(%arg0: i32, %arg1: i32, %arg2: i32) -> (i32, i32) {
    %c0_i32 = arith.constant 0 : i32
    %c0_i32_0 = arith.constant 0 : i32
    %c0_i32_1 = arith.constant 0 : i32
    return %c0_i32, %c0_i32_0 : i32, i32
  }
  func.func @transform_6(%arg0: i32, %arg1: i32, %arg2: i32) -> (i32, i32) {
    %c0_i32 = arith.constant 0 : i32
    %c0_i32_0 = arith.constant 0 : i32
    %c0_i32_1 = arith.constant 0 : i32
    return %c0_i32, %c0_i32_0 : i32, i32
  }
  func.func @transform_7(%arg0: i32, %arg1: i32, %arg2: i32) -> (i32, i32) {
    %c0_i32 = arith.constant 0 : i32
    %c0_i32_0 = arith.constant 0 : i32
    %c0_i32_1 = arith.constant 0 : i32
    return %c0_i32, %c0_i32_0 : i32, i32
  }
  func.func @transform_8(%arg0: i32, %arg1: i32, %arg2: i32) -> (i32, i32) {
    %c0_i32 = arith.constant 0 : i32
    %c0_i32_0 = arith.constant 0 : i32
    %c0_i32_1 = arith.constant 0 : i32
    return %c0_i32, %c0_i32_0 : i32, i32
  }
  func.func @transform_9(%arg0: i32, %arg1: i32, %arg2: i32) -> (i32, i32) {
    %c0_i32 = arith.constant 0 : i32
    %c0_i32_0 = arith.constant 0 : i32
    %c0_i32_1 = arith.constant 0 : i32
    return %c0_i32, %c0_i32_0 : i32, i32
  }
  func.func @transform_10(%arg0: i32, %arg1: i32, %arg2: i32) -> (i32, i32) {
    %c0_i32 = arith.constant 0 : i32
    %c0_i32_0 = arith.constant 0 : i32
    %c0_i32_1 = arith.constant 0 : i32
    return %c0_i32, %c0_i32_0 : i32, i32
  }
  func.func @transform_11(%arg0: i32, %arg1: i32, %arg2: i32) -> (i32, i32) {
    %c0_i32 = arith.constant 0 : i32
    %c0_i32_0 = arith.constant 0 : i32
    %c0_i32_1 = arith.constant 0 : i32
    return %c0_i32, %c0_i32_0 : i32, i32
  }
  func.func @transform_12(%arg0: i32, %arg1: i32, %arg2: i32) -> (i32, i32) {
    %c0_i32 = arith.constant 0 : i32
    %c0_i32_0 = arith.constant 0 : i32
    %c0_i32_1 = arith.constant 0 : i32
    return %c0_i32, %c0_i32_0 : i32, i32
  }
  func.func @transform_13(%arg0: i32, %arg1: i32, %arg2: i32) -> (i32, i32) {
    %c0_i32 = arith.constant 0 : i32
    %c0_i32_0 = arith.constant 0 : i32
    %c0_i32_1 = arith.constant 0 : i32
    return %c0_i32, %c0_i32_0 : i32, i32
  }
  func.func @transform_14(%arg0: i32, %arg1: i32, %arg2: i32) -> (i32, i32) {
    %c0_i32 = arith.constant 0 : i32
    %c0_i32_0 = arith.constant 0 : i32
    %c0_i32_1 = arith.constant 0 : i32
    return %c0_i32, %c0_i32_0 : i32, i32
  }
  func.func @transform_15(%arg0: i32, %arg1: i32, %arg2: i32) -> (i32, i32) {
    %c0_i32 = arith.constant 0 : i32
    %c0_i32_0 = arith.constant 0 : i32
    %c0_i32_1 = arith.constant 0 : i32
    return %c0_i32, %c0_i32_0 : i32, i32
  }
  func.func @transform_16(%arg0: i32, %arg1: i32, %arg2: i32) -> (i32, i32, i32) {
    %c0_i32 = arith.constant 0 : i32
    %c0_i32_0 = arith.constant 0 : i32
    return %arg0, %arg1, %c0_i32 : i32, i32, i32
  }
}

</mosaic_0001>

<bundles_post_ra>
// kernel: tpu_custom_call.1
= control target key start
LH: loop header
LB: loop body
LE: loop exit
PB: predicated region body
PF: predicated region fallthrough
CT: control target
= control target key end

     0   :  { %s7957_s0 = inlined_call_operand.hbm [shape: f32[2,256,128], index: 0, kind: input, shape index: {}]   ;;  %s7958_s1 = inlined_call_operand.hbm [shape: f32[2,256,128], index: 1, kind: input, shape index: {}]   ;;  %s7959_s2 = inlined_call_operand.hbm [shape: f32[2,256,128], index: 2, kind: input, shape index: {}]   ;;  %s7960_s3 = inlined_call_operand.hbm [shape: f32[128,128], index: 3, kind: input, shape index: {}]   ;;  %s7961_s4 = inlined_call_operand.hbm [shape: f32[128,128], index: 4, kind: input, shape index: {}]   ;;  %s7962_s5 = inlined_call_operand.hbm [shape: f32[128,128], index: 5, kind: input, shape index: {}]   ;;  %s7963_s6 = inlined_call_operand.hbm [shape: f32[128,128], index: 6, kind: input, shape index: {}]   ;;  %s7964_s7 = inlined_call_operand.vmem [shape: f32[1,128], index: 7, kind: input, shape index: {}]   ;;  %s7965_s8 = inlined_call_operand.vmem [shape: f32[1,128], index: 8, kind: input, shape index: {}]   ;;  %s7966_s9 = inlined_call_operand.vmem [shape: f32[1,128], index: 9, kind: input, shape index: {}]   ;;  %s7967_s10 = inlined_call_operand.hbm [shape: f32[128,512], index: 10, kind: input, shape index: {}]   ;;  %s7968_s11 = inlined_call_operand.vmem [shape: f32[1,512], index: 11, kind: input, shape index: {}]   ;;  %s7969_s12 = inlined_call_operand.hbm [shape: f32[512,128], index: 12, kind: input, shape index: {}]   ;;  %s7970_s13 = inlined_call_operand.vmem [shape: f32[1,128], index: 13, kind: input, shape index: {}]   ;;  %s7971_s14 = inlined_call_operand.vmem [shape: f32[1,128], index: 14, kind: input, shape index: {}]   ;;  %s7972_s15 = inlined_call_operand.vmem [shape: f32[1,128], index: 15, kind: input, shape index: {}]   ;;  %s7973_s16 = inlined_call_operand.hbm [shape: f32[2,256,128], index: 16, kind: output, shape index: {}]  }
   0x1   :  { %8006 = sst [smem:[#allocation45_spill]] %s7957_s0 }
   0x2   :  { %8007 = sst [smem:[#allocation46_spill]] %s7958_s1 }
   0x3   :  { %8008 = sst [smem:[#allocation47_spill]] %s7959_s2 }
   0x4   :  { %8009 = sst [smem:[#allocation48_spill]] %s7960_s3 }
   0x5   :  { %8010 = sst [smem:[#allocation49_spill]] %s7962_s5 }
   0x6   :  { %8011 = sst [smem:[#allocation50_spill]] %s7964_s7 }
   0x7   :  { %8012 = sst [smem:[#allocation51_spill]] %s7965_s8 }
   0x8   :  { %8013 = sst [smem:[#allocation52_spill]] %s7966_s9 }
   0x9   :  { %8014 = sst [smem:[#allocation53_spill]] %s7967_s10 }
   0xa   :  { %8015 = sst [smem:[#allocation54_spill]] %s7968_s11 }
   0xb   :  { %8016 = sst [smem:[#allocation55_spill]] %s7970_s13 }
   0xc   :  { %8017 = sst [smem:[#allocation56_spill]] %s7971_s14 }
   0xd   :  { %8018 = sst [smem:[#allocation57_spill]] %s7972_s15 }
   0xe   :  { %8019 = sst [smem:[#allocation58_spill]] %s7973_s16 }
   0xf   :  { %21 = vsyncpa [#allocation9], 0 }
  0x10   :  { %23 = vsyncpa [#allocation9 + $0x1], 0 }
  0x11   :  { %24 = vsyncpa [#allocation12], 0 }
  0x12   :  { %26 = vsyncpa [#allocation12 + $0x1], 0 }
  0x13   :  { %27 = vsyncpa [#allocation15], 0 }
  0x14   :  { %28 = vsyncpa [#allocation18], 0 }
  0x15   :  { %29 = vsyncpa [#allocation21], 0 }
  0x16   :  { %30 = vsyncpa [#allocation10], 0 }
  0x17   :  { %32 = vsyncpa [#allocation10 + $0x1], 0  ;;  %s6158_s21 = smov 0   ;;  %s6160_s22 = smov 0  }
  0x18   :  { %s6162_s23 = smov 0   ;;  %s6164_s24 = smov 0  }
  0x19   :  { %s6166_s25 = smov 0   ;;  %s6168_s26 = smov 0  }
  0x1a   :  { %s6170_s27 = smov 0   ;;  %s6172_s28 = smov 0  }
  0x1b   :  { %s6174_s29 = smov 0   ;;  %s6176_s30 = smov 0  }
  0x1c   :  { %s6178_s0 = smov 0   ;;  %s6180_s17 = smov 0  }
  0x1d   :  { %s6182_s18 = smov 0  }
  0x1e LB: > { %8020 = sst [smem:[#allocation31_spill]] %s6002_s21  ;;  %s6224_s19 = sadd.s32 4294967295, %s6050_s18   ;;  %s6050_s18 = sphi %s6182_s18, %s38_s18   ;;  %s6046_s17 = sphi %s6180_s17, %s8115_s17   ;;  %s6042_s0 = sphi %s6178_s0, %s8114_s0   ;;  %s6038_s30 = sphi %s6176_s30, %s8105_s30   ;;  %s6034_s29 = sphi %s6174_s29, %s8113_s29   ;;  %s6030_s28 = sphi %s6172_s28, %s8112_s28   ;;  %s6026_s27 = sphi %s6170_s27, %s8104_s27   ;;  %s6022_s26 = sphi %s6168_s26, %s8111_s26   ;;  %s6018_s25 = sphi %s6166_s25, %s8110_s25   ;;  %s6014_s24 = sphi %s6164_s24, %s8102_s24   ;;  %s6010_s23 = sphi %s6162_s23, %s8109_s23   ;;  %s6006_s22 = sphi %s6160_s22, %s8101_s22   ;;  %s6002_s21 = sphi %s6158_s21, %s8100_s21  }
  0x1f   : > { %8021 = sst [smem:[#allocation32_spill]] %s6006_s22  ;;  %p4183_p0 = scmp.ge.s32.totalorder %s6050_s18, 1 }
  0x20   : > { %8022 = sst [smem:[#allocation33_spill]] %s6010_s23  ;;  %p7981_p1 = scmp.eq.s32.totalorder %s6224_s19, 0 }
  0x21   : > { %8023 = sst [smem:[#allocation34_spill]] %s6018_s25  ;;  %p455_p2 = scmp.lt.s32.totalorder %s6050_s18, 9 }
  0x22   : > { %8024 = sst [smem:[#allocation35_spill]] %s6026_s27  ;;  %s6052_s16 = smov [#allocation14]  }
  0x23   : > { %8025 = sst [smem:[#allocation36_spill]] %s6030_s28  ;;  %p6229_p3 = pnand %p4183_p0, %p455_p2 }
  0x24   : > { %8026 = sst [smem:[#allocation37_spill]] %s6034_s29  ;;  %s467_s29 = sshll.u32 %s6052_s16, 4  ;;  %s6233_s29 = int_to_ptr.vmem [resolvable:$true] %s467_s29 }
  0x25   : > { %8027 = sst [smem:[#allocation38_spill]] %s6038_s30  ;;  %p5302_p4 = pneg %p6229_p3 }
  0x26   : > { %s8028_s20 = scalar_select %p6229_p3, 1, 0 }
  0x27   : > { %p6239_p5 = pnand %p5302_p4, %p7981_p1  ;;  %s6053_s14 = smov [#allocation17]  }
  0x28   : > { %8029 = sst [smem:[#allocation39_spill]] %s8028_s20  ;;  %s493_s13 = sshll.u32 %s6053_s14, 4  ;;  %s6243_s13 = int_to_ptr.vmem [resolvable:$true] %s493_s13 }
  0x29   : > { %s8030_s15 = scalar_select %p6239_p5, 1, 0 }
  0x2a   : > { %s6054_s11 = smov [#allocation20]   ;;  %s8031_s3 = sld [smem:[#allocation48_spill]] }
  0x2b   : > { %s6245_s9 = sshll.u32 %s6054_s11, 4  ;;  %p6255_p7 = pneg %p6239_p5  ;;  %s529_s9 = int_to_ptr.vmem [resolvable:$true] %s6245_s9 }
  0x30   : > { %s5634_s16 = scalar_lea.hbm %s8031_s3, 2048 }
  0x31   : > { %p5635_p6 = scmp.ne.s32.totalorder %s8031_s3, %s5634_s16  ;;  %p5641_p10 = scmp.lt.u32.totalorder %s5634_s16, %s8031_s3 }
  0x33   : > { %p5637_p8 = pnand %p6255_p7, %p5635_p6 }
  0x35   : > { %p5638_p9 = pneg %p5637_p8 }
  0x37   : > { %p5643_p11 = pnand %p5641_p10, %p5638_p9 }
  0x39   : > { %5646 = shalt.err (!%p5643_p11)
}
  0x3a   : > { %s5647_s7 = scalar_lea.vmem %s6233_s29, 2048  ;;  %p5655_p2 = scmp.lt.s32.totalorder %s6233_s29, %s6233_s29 }
  0x3b   : > { %p5648_p12 = scmp.ne.s32.totalorder %s6233_s29, %s5647_s7  ;;  %p5656_p4 = scmp.lt.s32.totalorder %s5647_s7, %s5647_s7 }
  0x3d   : > { %p5650_p13 = pnand %p5648_p12, %p6255_p7  ;;  %p5657_p6 = por %p5656_p4, %p5655_p2 }
  0x3f   : > { %p5651_p0 = pneg %p5650_p13 }
  0x41   : > { %p5658_p8 = pnand %p5657_p6, %p5651_p0 }
  0x43   : > { %5661 = shalt.err (!%p5658_p8)
}
  0x44   : > { %s7983_s8 = smov 128   ;;  %s7985_s27 = smov 8  }
  0x45   : > { %5305 = dma.hbm_to_vmem [thread:$0]  (!%p6239_p5), %s8031_s3, 2048, %s6233_s29, [#allocation15], %s7983_s8, %s7983_s8, %s7985_s27  }
  0x46   : > { %s8033_s5 = sld [smem:[#allocation49_spill]] }
  0x4c   : > { %s5662_s7 = scalar_lea.hbm %s8033_s5, 2048 }
  0x4d   : > { %p5663_p9 = scmp.ne.s32.totalorder %s8033_s5, %s5662_s7  ;;  %p5669_p12 = scmp.lt.u32.totalorder %s5662_s7, %s8033_s5 }
  0x4f   : > { %p5665_p10 = pnand %p5663_p9, %p6255_p7 }
  0x51   : > { %p5666_p11 = pneg %p5665_p10 }
  0x53   : > { %p5671_p13 = pnand %p5669_p12, %p5666_p11 }
  0x55   : > { %5674 = shalt.err (!%p5671_p13)
}
  0x56   : > { %s5675_s29 = scalar_lea.vmem %s6243_s13, 2048  ;;  %p5683_p6 = scmp.lt.s32.totalorder %s6243_s13, %s6243_s13 }
  0x57   : > { %p5676_p0 = scmp.ne.s32.totalorder %s6243_s13, %s5675_s29  ;;  %p5684_p8 = scmp.lt.s32.totalorder %s5675_s29, %s5675_s29 }
  0x59   : > { %p5678_p2 = pnand %p5676_p0, %p6255_p7  ;;  %p5685_p9 = por %p5684_p8, %p5683_p6 }
  0x5b   : > { %p5679_p4 = pneg %p5678_p2 }
  0x5d   : > { %p5686_p10 = pnand %p5685_p9, %p5679_p4 }
  0x5f   : > { %5689 = shalt.err (!%p5686_p10)
}
  0x60   : > { %5311 = dma.hbm_to_vmem [thread:$0]  (!%p6239_p5), %s8033_s5, 2048, %s6243_s13, [#allocation18], %s7983_s8, %s7983_s8, %s7985_s27  }
  0x61   : > { %s8034_s10 = sld [smem:[#allocation53_spill]] }
  0x67   : > { %s5690_s28 = scalar_lea.hbm %s8034_s10, 8192 }
  0x68   : > { %p5691_p11 = scmp.ne.s32.totalorder %s8034_s10, %s5690_s28  ;;  %p5697_p0 = scmp.lt.u32.totalorder %s5690_s28, %s8034_s10 }
  0x6a   : > { %p5693_p12 = pnand %p5691_p11, %p6255_p7 }
  0x6c   : > { %p5694_p13 = pneg %p5693_p12 }
  0x6e   : > { %p5699_p2 = pnand %p5697_p0, %p5694_p13 }
  0x70   : > { %5702 = shalt.err (!%p5699_p2)
}
  0x71   : > { %s5703_s29 = scalar_lea.vmem %s529_s9, 8192  ;;  %p5711_p9 = scmp.lt.s32.totalorder %s529_s9, %s529_s9 }
  0x72   : > { %p5704_p4 = scmp.ne.s32.totalorder %s529_s9, %s5703_s29  ;;  %p5712_p10 = scmp.lt.s32.totalorder %s5703_s29, %s5703_s29 }
  0x74   : > { %p5706_p6 = pnand %p5704_p4, %p6255_p7  ;;  %p5713_p1 = por %p5712_p10, %p5711_p9 }
  0x76   : > { %p5707_p8 = pneg %p5706_p6 }
  0x78   : > { %p5714_p3 = pnand %p5713_p1, %p5707_p8 }
  0x7a   : > { %5717 = shalt.err (!%p5714_p3)
}
  0x7b   : > { %s6057_s13 = smov 512   ;;  %s6058_s2 = smov 32  }
  0x7c   : > { %5317 = dma.hbm_to_vmem [thread:$0]  (!%p6239_p5), %s8034_s10, 8192, %s529_s9, [#allocation21], %s6057_s13, %s6057_s13, %s6058_s2  }
  0x7d   : > { %s50_s23 = sadd.s32 1, %s6038_s30  ;;  %s53_s28 = sadd.s32 1, %s6042_s0 }
  0x7e   : > { %p51_p1 = scmp.ge.s32.totalorder %s50_s23, 2  ;;  %s57_s16 = sadd.s32 1, %s6046_s17 }
  0x7f   : > { %p61_p3 = scmp.eq.s32.totalorder %s6042_s0, 0  ;;  %s70_s9 = sadd.s32 1, %s6022_s26 }
  0x80   : > { %s8117_s23 = smov (%p51_p1, %s50_s23), 0  ;;  %s8119_s28 = smov (!%p51_p1, %s53_s28), %s6042_s0 }
  0x81   : > { %8035 = sst [smem:[#allocation40_spill]] %s8117_s23  ;;  %p55_p11 = scmp.ge.s32.totalorder %s8119_s28, 2 }
  0x82   : > { %s6332_s14 = scalar_select %p61_p3, %s6038_s30, 0 }
  0x83   : > { %p77_p12 = scmp.ne.s32.totalorder %s6022_s26, %s6018_s25  ;;  %p7994_p13 = scmp.eq.s32.totalorder %s6050_s18, 0 }
  0x84   : > { %s8121_s28 = smov (%p55_p11, %s8119_s28), 0  ;;  %s8123_s16 = smov (!%p55_p11, %s57_s16), %s6046_s17 }
  0x85   : > { %8036 = sst [smem:[#allocation41_spill]] %s8121_s28  ;;  %p63_p0 = scmp.eq.s32.totalorder %s8121_s28, 0 }
  0x86   : > { %p6344_p2 = por %p7994_p13, %p77_p12  ;;  %p59_p4 = scmp.ge.s32.totalorder %s8123_s16, 2 }
  0x87   : > { %p83_p6 = scmp.ne.s32.totalorder %s6018_s25, %s6014_s24  ;;  %p8039_p8 = scmp.eq.s32.totalorder %s6224_s19, 0 }
  0x88   : > { %s64_s7 = scalar_select %p63_p0, %s8117_s23, 0 }
  0x89   : > { %s8125_s16 = smov (%p59_p4, %s8123_s16), 0  ;;  %p6356_p9 = por %p8039_p8, %p83_p6 }
  0x8a   : > { %8038 = sst [smem:[#allocation42_spill]] %s8125_s16  ;;  %s66_s29 = ssub.s32 %s6332_s14, %s64_s7 }
  0x8b   : > { %s8040_s13 = scalar_select %p6356_p9, 1, 0 }
  0x8c   : > { %s65_s2 = ssub.s32 %s6046_s17, %s8125_s16  ;;  %s126_s21 = ssub.s32 %s6042_s0, %s8121_s28 }
  0x8d   : > { %8041 = sst [smem:[#allocation43_spill]] %s8040_s13  ;;  %s67_s22 = sor.u32 %s66_s29, %s65_s2 }
  0x8e   : > { %s6364_s8 = sor.u32 %s126_s21, %s65_s2  ;;  %p68_p10 = scmp.eq.s32.totalorder %s67_s22, 0 }
  0x8f   : > { %p7993_p3 = scmp.lt.s32.totalorder %s6050_s18, 8  ;;  %s7987_s24 = sand.u32 1, %s6022_s26  }
  0x90   : > { %s6370_s27 = scalar_select %p68_p10, %s6022_s26, %s70_s9  }
  0x91   : > { %s6374_s7 = sshll.u32 %s7987_s24, 7  ;;  %s4192_s3 = sshll.u32 %s6332_s14, 4 }
  0x92   : > { %8042 = sst [smem:[#allocation44_spill]] %s6370_s27  ;;  %s7988_s5 = sshll.u32 %s6046_s17, 5 }
  0x93   : > { %p6382_p11 = pnand %p7993_p3, %p6344_p2  ;;  %s6388_s2 = sadd.s32 %s7988_s5, %s4192_s3 }
  0x94   : > { %s592_s9 = sand.u32 1, %s6050_s18   ;;  %s7990_s21 = sshll.u32 %s6388_s2, 7 }
  0x95   : > { %s8043_s29 = scalar_select %p6382_p11, 1, 0 }
  0x96   : > { %s8044_s1 = sld [smem:[#allocation46_spill]]  ;;  %s596_s11 = scalar_lea.vmem [#allocation11], %s6374_s7 }
  0x97   : > { %s607_s10 = sshll.u32 %s596_s11, 4  ;;  %s4200_s3 = sshll.u32 %s6042_s0, 4  ;;  %s6400_s10 = int_to_ptr.vmem [resolvable:$true] %s607_s10 }
  0x98   : > { %s6403_s5 = scalar_lea.sflag [#allocation12], %s592_s9  ;;  %p8002_p0 = pneg %p6382_p11 }
  0x9c   : > { %s6397_s14 = scalar_lea.hbm %s8044_s1, %s7990_s21  ;;  %s5723_s21 = scalar_lea.hbm %s8044_s1, 8192 }
  0x9d   : > { %s5718_s16 = scalar_lea.hbm %s6397_s14, 2048  ;;  %p5724_p6 = scmp.lt.u32.totalorder %s6397_s14, %s8044_s1 }
  0x9e   : > { %p5719_p12 = scmp.ne.s32.totalorder %s6397_s14, %s5718_s16  ;;  %p5725_p8 = scmp.lt.u32.totalorder %s5723_s21, %s5718_s16 }
  0x9f   : > { %p5727_p3 = scmp.lt.u32.totalorder %s5718_s16, %s6397_s14 }
  0xa0   : > { %p5721_p2 = pnand %p8002_p0, %p5719_p12  ;;  %p5726_p10 = por %p5725_p8, %p5724_p6 }
  0xa2   : > { %p5722_p4 = pneg %p5721_p2  ;;  %p5728_p13 = por %p5727_p3, %p5726_p10 }
  0xa4   : > { %p5729_p1 = pnand %p5728_p13, %p5722_p4 }
  0xa6   : > { %5732 = shalt.err (!%p5729_p1)
}
  0xa7   : > { %s5733_s9 = scalar_lea.vmem %s6400_s10, 2048  ;;  %s6059_s11 = smov [#allocation11]  }
  0xa8   : > { %p5734_p12 = scmp.ne.s32.totalorder %s6400_s10, %s5733_s9  ;;  %s5738_s24 = sshll.u32 %s6059_s11, 4  ;;  %s5739_s24 = int_to_ptr.vmem [resolvable:$false] %s5738_s24 }
  0xa9   : > { %s5740_s23 = scalar_lea.vmem %s5739_s24, 4096  ;;  %p5741_p5 = scmp.lt.s32.totalorder %s6400_s10, %s5739_s24 }
  0xaa   : > { %p5736_p2 = pnand %p5734_p12, %p8002_p0  ;;  %p5742_p6 = scmp.lt.s32.totalorder %s5740_s23, %s5733_s9 }
  0xac   : > { %p5737_p9 = pneg %p5736_p2  ;;  %p5743_p8 = por %p5742_p6, %p5741_p5 }
  0xae   : > { %p5744_p3 = pnand %p5743_p8, %p5737_p9 }
  0xb0   : > { %5747 = shalt.err (!%p5744_p3)
}
  0xb1   : > { %s8045_s28 = smov 8   ;;  %s8046_s16 = smov 128  }
  0xb2   : > { %5327 = dma.hbm_to_vmem [thread:$0]  (!%p6382_p11), %s6397_s14, 2048, %s6400_s10, %s6403_s5, %s8046_s16, %s8046_s16, %s8045_s28  }
  0xb3   : > { %s8047_s21 = sshll.u32 %s6046_s17, 5  ;;  %s6060_s9 = smov [#allocation16]  }
  0xb4   : > { %s6438_s22 = sadd.s32 %s4200_s3, %s8047_s21  ;;  %s480_s11 = sshll.u32 %s6060_s9, 4  ;;  %s481_s11 = int_to_ptr.vmem [resolvable:$true] %s480_s11 }
  0xb5   : > { %s6061_s24 = smov [#allocation19]   ;;  %s5748_s27 = scalar_lea.hbm %s7961_s4, 2048 }
  0xb6   : > { %s506_s23 = sshll.u32 %s6061_s24, 4  ;;  %p5749_p5 = scmp.ne.s32.totalorder %s7961_s4, %s5748_s27  ;;  %s507_s23 = int_to_ptr.vmem [resolvable:$true] %s506_s23 }
  0xb7   : > { %p5755_p1 = scmp.lt.u32.totalorder %s5748_s27, %s7961_s4 }
  0xb8   : > { %p5751_p13 = pnand %p5749_p5, %p6255_p7 }
  0xba   : > { %p5752_p9 = pneg %p5751_p13 }
  0xbc   : > { %p5757_p4 = pnand %p5755_p1, %p5752_p9 }
  0xbe   : > { %5760 = shalt.err (!%p5757_p4)
}
  0xbf   : > { %s5761_s3 = scalar_lea.vmem %s481_s11, 2048  ;;  %p5769_p6 = scmp.lt.s32.totalorder %s481_s11, %s481_s11 }
  0xc0   : > { %p5762_p10 = scmp.ne.s32.totalorder %s481_s11, %s5761_s3  ;;  %p5770_p8 = scmp.lt.s32.totalorder %s5761_s3, %s5761_s3 }
  0xc2   : > { %p5764_p12 = pnand %p5762_p10, %p6255_p7  ;;  %p5771_p3 = por %p5770_p8, %p5769_p6 }
  0xc4   : > { %p5765_p2 = pneg %p5764_p12 }
  0xc6   : > { %p5772_p0 = pnand %p5771_p3, %p5765_p2 }
  0xc8   : > { %5775 = shalt.err (!%p5772_p0)
}
  0xc9   : > { %p8048_p5 = scmp.ne.s32.totalorder %s8030_s15, 0  ;;  %s5776_s13 = scalar_lea.hbm %s7963_s6, 2048 }
  0xca   : > { %p5777_p13 = scmp.ne.s32.totalorder %s7963_s6, %s5776_s13  ;;  %p5783_p1 = scmp.lt.u32.totalorder %s5776_s13, %s7963_s6 }
  0xcb   : > { %5308 = dma.hbm_to_vmem [thread:$0]  (!%p8048_p5), %s7961_s4, 2048, %s481_s11, [#allocation15], %s8046_s16, %s8046_s16, %s8045_s28  }
  0xcc   : > { %p5779_p0 = pnand %p5777_p13, %p6255_p7 }
  0xce   : > { %p5780_p9 = pneg %p5779_p0 }
  0xd0   : > { %p5785_p4 = pnand %p5783_p1, %p5780_p9 }
  0xd2   : > { %5788 = shalt.err (!%p5785_p4)
}
  0xd3   : > { %s5789_s14 = scalar_lea.vmem %s507_s23, 2048  ;;  %p5797_p6 = scmp.lt.s32.totalorder %s507_s23, %s507_s23 }
  0xd4   : > { %p5790_p10 = scmp.ne.s32.totalorder %s507_s23, %s5789_s14  ;;  %p5798_p8 = scmp.lt.s32.totalorder %s5789_s14, %s5789_s14 }
  0xd6   : > { %p5792_p12 = pnand %p5790_p10, %p6255_p7  ;;  %p5799_p3 = por %p5798_p8, %p5797_p6 }
  0xd8   : > { %p5793_p2 = pneg %p5792_p12 }
  0xda   : > { %p5800_p11 = pnand %p5799_p3, %p5793_p2 }
  0xdc   : > { %5803 = shalt.err (!%p5800_p11)
}
  0xdd   : > { %5314 = dma.hbm_to_vmem [thread:$0]  (!%p8048_p5), %s7963_s6, 2048, %s507_s23, [#allocation18], %s8046_s16, %s8046_s16, %s8045_s28  }
  0xde   : > { %s6062_s1 = smov [#allocation22]   ;;  %s5804_s13 = scalar_lea.hbm %s7969_s12, 8192 }
  0xdf   : > { %s544_s25 = sshll.u32 %s6062_s1, 4  ;;  %p5805_p11 = scmp.ne.s32.totalorder %s7969_s12, %s5804_s13  ;;  %s545_s25 = int_to_ptr.vmem [resolvable:$true] %s544_s25 }
  0xe0   : > { %p5811_p9 = scmp.lt.u32.totalorder %s5804_s13, %s7969_s12 }
  0xe1   : > { %p5807_p13 = pnand %p5805_p11, %p6255_p7 }
  0xe3   : > { %p5808_p0 = pneg %p5807_p13 }
  0xe5   : > { %p5813_p1 = pnand %p5811_p9, %p5808_p0 }
  0xe7   : > { %5816 = shalt.err (!%p5813_p1)
}
  0xe8   : > { %s5817_s23 = scalar_lea.vmem %s545_s25, 8192  ;;  %p5825_p2 = scmp.lt.s32.totalorder %s545_s25, %s545_s25 }
  0xe9   : > { %p5818_p4 = scmp.ne.s32.totalorder %s545_s25, %s5817_s23  ;;  %p5826_p6 = scmp.lt.s32.totalorder %s5817_s23, %s5817_s23 }
  0xeb   : > { %p5820_p10 = pnand %p5818_p4, %p6255_p7  ;;  %p5827_p8 = por %p5826_p6, %p5825_p2 }
  0xed   : > { %p5821_p12 = pneg %p5820_p10 }
  0xef   : > { %p5828_p3 = pnand %p5827_p8, %p5821_p12 }
  0xf1   : > { %5831 = shalt.err (!%p5828_p3)
}
  0xf2   : > { %5320 = dma.hbm_to_vmem [thread:$0]  (!%p8048_p5), %s7969_s12, 8192, %s545_s25, [#allocation21], %s8046_s16, %s8046_s16, %s8045_s28  }
  0xf3   : > { %s8049_s20 = sshll.u32 %s6388_s2, 7  ;;  %s8050_s30 = sld [smem:[#allocation45_spill]] }
  0xf4   : > { %s571_s15 = scalar_lea.vmem [#allocation8], %s6374_s7  ;;  %s8052_s9 = sand.u32 1, %s6022_s26  }
  0xf5   : > { %s582_s21 = sshll.u32 %s571_s15, 4  ;;  %s6515_s24 = scalar_lea.sflag [#allocation9], %s8052_s9  ;;  %s6511_s21 = int_to_ptr.vmem [resolvable:$true] %s582_s21 }
  0xf6   : > { %p8053_p5 = scmp.ne.s32.totalorder %s8043_s29, 0 }
  0xf8   : > { %p8054_p11 = pneg %p8053_p5 }
  0xf9   : > { %s8051_s13 = smov %s8050_s30  ;;  %s6508_s27 = scalar_lea.hbm %s8050_s30, %s8049_s20 }
  0xfa   : > { %s5832_s10 = scalar_lea.hbm %s6508_s27, 2048  ;;  %s5837_s23 = scalar_lea.hbm %s8051_s13, 8192 }
  0xfb   : > { %p5833_p7 = scmp.ne.s32.totalorder %s6508_s27, %s5832_s10  ;;  %p5838_p9 = scmp.lt.u32.totalorder %s6508_s27, %s8051_s13 }
  0xfc   : > { %p5839_p1 = scmp.lt.u32.totalorder %s5837_s23, %s5832_s10  ;;  %p5841_p10 = scmp.lt.u32.totalorder %s5832_s10, %s6508_s27 }
  0xfd   : > { %p5835_p13 = pnand %p5833_p7, %p8054_p11 }
  0xfe   : > { %p5840_p4 = por %p5839_p1, %p5838_p9 }
  0xff   : > { %p5836_p0 = pneg %p5835_p13 }
 0x100   : > { %p5842_p12 = por %p5841_p10, %p5840_p4 }
 0x102   : > { %p5843_p2 = pnand %p5842_p12, %p5836_p0 }
 0x104   : > { %5846 = shalt.err (!%p5843_p2)
}
 0x105   : > { %s5847_s7 = scalar_lea.vmem %s6511_s21, 2048  ;;  %p8055_p8 = pmov %p8054_p11 }
 0x106   : > { %p5848_p6 = scmp.ne.s32.totalorder %s6511_s21, %s5847_s7  ;;  %s6063_s20 = smov [#allocation8]  }
 0x107   : > { %s5852_s3 = sshll.u32 %s6063_s20, 4  ;;  %s5853_s3 = int_to_ptr.vmem [resolvable:$false] %s5852_s3 }
 0x108   : > { %p5850_p3 = pnand %p5848_p6, %p8055_p8  ;;  %s5854_s1 = scalar_lea.vmem %s5853_s3, 4096 }
 0x109   : > { %p5855_p11 = scmp.lt.s32.totalorder %s6511_s21, %s5853_s3  ;;  %p5856_p13 = scmp.lt.s32.totalorder %s5854_s1, %s5847_s7 }
 0x10a   : > { %p5851_p7 = pneg %p5850_p3 }
 0x10b   : > { %p5857_p9 = por %p5856_p13, %p5855_p11 }
 0x10d   : > { %p5858_p1 = pnand %p5857_p9, %p5851_p7 }
 0x10f   : > { %5861 = shalt.err (!%p5858_p1)
}
 0x110   : > { %s8056_s30 = sld [smem:[#allocation33_spill]]  ;;  %s8057_s15 = sld [smem:[#allocation32_spill]] }
 0x111   : > { %s8058_s9 = sld [smem:[#allocation31_spill]]  ;;  %s4182_s29 = sadd.s32 4294967294, %s6050_s18  }
 0x112   : > { %5324 = dma.hbm_to_vmem [thread:$0]  (!%p8053_p5), %s6508_s27, 2048, %s6511_s21, %s6515_s24, %s8046_s16, %s8046_s16, %s8045_s28  }
 0x113   : > { %p8059_p4 = scmp.eq.s32.totalorder %s6364_s8, 0  ;;  %p8060_p10 = scmp.eq.s32.totalorder %s6050_s18, 0 }
 0x114   : > { %p442_p6 = scmp.eq.s32.totalorder %s6224_s19, 7  ;;  %p448_p8 = scmp.eq.s32.totalorder %s4182_s29, 7 }
 0x115   : > { %p8062_p3 = scmp.eq.s32.totalorder %s6224_s19, 0  ;;  %s4202_s14 = sshll.u32 %s6438_s22, 7 }
 0x116   : > { %s130_s10 = sadd.s32 1, %s8056_s30  ;;  %p137_p0 = scmp.ne.s32.totalorder %s8056_s30, %s8057_s15 }
 0x117   : > { %s6551_s2 = scalar_select %p8059_p4, %s8056_s30, %s130_s10  }
 0x118   : > { %p6555_p12 = por %p137_p0, %p8060_p10  ;;  %p143_p2 = scmp.ne.s32.totalorder %s8057_s15, %s8058_s9 }
 0x119   : > { %s619_s27 = sand.u32 1, %s8056_s30   ;;  %p6569_p5 = por %p442_p6, %p137_p0 }
 0x11a   : > { %p6564_p7 = por %p143_p2, %p8062_p3  ;;  %p6573_p11 = por %p448_p8, %p143_p2 }
 0x11b   : > { %s8064_s21 = scalar_select %p6569_p5, 1, 0 }
 0x11c   : > { %s8065_s8 = scalar_select %p6573_p11, 1, 0 }
 0x11d   : > { %s4199_s24 = sshll.u32 %s619_s27, 7  ;;  %s8066_s20 = sld [smem:[#allocation47_spill]] }
 0x11e   : > { %s621_s1 = scalar_lea.vmem [#allocation13], %s4199_s24  ;;  %p8067_p13 = scmp.lt.s32.totalorder %s6050_s18, 8 }
 0x11f   : > { %s630_s30 = sshll.u32 %s621_s1, 4  ;;  %s6591_s30 = int_to_ptr.vmem [resolvable:$true] %s630_s30 }
 0x120   : > { %p6587_p9 = pnand %p8067_p13, %p6555_p12 }
 0x122   : > { %p5864_p0 = pneg %p6587_p9 }
 0x123   : > { %s6581_s3 = scalar_lea.hbm %s8066_s20, %s4202_s14  ;;  %s5867_s10 = scalar_lea.hbm %s8066_s20, 8192 }
 0x124   : > { %s5862_s22 = scalar_lea.hbm %s6581_s3, 2048  ;;  %p5868_p12 = scmp.lt.u32.totalorder %s6581_s3, %s8066_s20 }
 0x125   : > { %p5863_p1 = scmp.ne.s32.totalorder %s6581_s3, %s5862_s22  ;;  %p5869_p2 = scmp.lt.u32.totalorder %s5867_s10, %s5862_s22 }
 0x126   : > { %p5871_p8 = scmp.lt.u32.totalorder %s5862_s22, %s6581_s3 }
 0x127   : > { %p5865_p4 = pnand %p5864_p0, %p5863_p1  ;;  %p5870_p6 = por %p5869_p2, %p5868_p12 }
 0x129   : > { %p5866_p10 = pneg %p5865_p4  ;;  %p5872_p3 = por %p5871_p8, %p5870_p6 }
 0x12b   : > { %p5873_p13 = pnand %p5872_p3, %p5866_p10 }
 0x12d   : > { %5876 = shalt.err (!%p5873_p13)
}
 0x12e   : > { %s5877_s24 = scalar_lea.vmem %s6591_s30, 2048  ;;  %s6064_s14 = smov [#allocation13]  }
 0x12f   : > { %p5878_p1 = scmp.ne.s32.totalorder %s6591_s30, %s5877_s24  ;;  %s5882_s11 = sshll.u32 %s6064_s14, 4  ;;  %s5883_s11 = int_to_ptr.vmem [resolvable:$false] %s5882_s11 }
 0x130   : > { %s5884_s7 = scalar_lea.vmem %s5883_s11, 4096  ;;  %p5885_p5 = scmp.lt.s32.totalorder %s6591_s30, %s5883_s11 }
 0x131   : > { %p5880_p4 = pnand %p5878_p1, %p5864_p0  ;;  %p5886_p12 = scmp.lt.s32.totalorder %s5884_s7, %s5877_s24 }
 0x133   : > { %p5881_p11 = pneg %p5880_p4  ;;  %p5887_p2 = por %p5886_p12, %p5885_p5 }
 0x135   : > { %p5888_p6 = pnand %p5887_p2, %p5881_p11 }
 0x137   : > { %5891 = shalt.err (!%p5888_p6)
}
 0x138   : > { %5330 = dma.hbm_to_vmem [thread:$0]  (!%p6587_p9), %s6581_s3, 2048, %s6591_s30, %s6403_s5, %s8046_s16, %s8046_s16, %s8045_s28  }
 0x139   : > { %s8069_s1 = sld [smem:[#allocation39_spill]] }
 0x13f   : > { %p8070_p0 = scmp.ne.s32.totalorder %s8069_s1, 0 }
 0x140   : > { %s8071_s22 = sld [smem:[#allocation34_spill]] (!%p8070_p0)  ;;  %s8072_s9 = sld [smem:[#allocation43_spill]] (!%p8070_p0) }
 0x141   : > { %642 = sbr.rel (%p8070_p0) target bundleno = 3251 (0xcb3), region = 84 }
 0x146   : > { %s644_s29 = sand.u32 (!%p8070_p0), 1, %s8071_s22   ;;  %p8073_p5 = scmp.ne.s32.totalorder (!%p8070_p0), %s8072_s9, 0 }
 0x147   : > { %s4204_s10 = sshll.u32 (!%p8070_p0), %s644_s29, 7  ;;  %s645_s25 = scalar_lea.sflag (!%p8070_p0), [#allocation9], %s644_s29 }
 0x148   : > { %s6625_s27 = scalar_lea.vmem [#allocation8], %s4204_s10 }
 0x149   : > { %5973 = dma.done.wait (%p8073_p5), %s645_s25, 2048  }
 0x14a   : > { %5975 = vsyncadd (%p8073_p5), %s645_s25, 4294965248  ;;  %s653_s15 = sand.u32 1, %s6224_s19   ;;  %s6632_s5 = scalar_lea.vmem [#allocation11], %s4204_s10 }
 0x14b   : > { %s654_s24 = scalar_lea.sflag [#allocation12], %s653_s15 }
 0x14c   : > { %5977 = dma.done.wait (%p8073_p5), %s654_s24, 2048  }
 0x14d   : > { %5979 = vsyncadd (%p8073_p5), %s654_s24, 4294965248  ;;  %s8074_s28 = sld [smem:[#allocation32_spill]] }
 0x153   : > { %s664_s16 = sand.u32 1, %s8074_s28  }
 0x154   : > { %s4206_s3 = sshll.u32 %s664_s16, 7 }
 0x155   : > { %s6641_s30 = scalar_lea.vmem [#allocation13], %s4206_s3 }
 0x156   : > { %5981 = dma.done.wait (%p6564_p7), %s654_s24, 2048  }
 0x157   : > { %5983 = vsyncadd (%p6564_p7), %s654_s24, 4294965248  ;;  %p8075_p11 = scmp.eq.s32.totalorder %s6224_s19, 0 }
 0x159   : > { %5985 = dma.done.wait (%p8075_p11), [#allocation15], 4096   ;;  %p8076_p9 = pmov %p8075_p11 }
 0x15b   : > { %5987 = vsyncadd (%p8076_p9), [#allocation15], 4294963200  ;;  %p8077_p10 = pmov %p8076_p9 }
 0x15c   : > { %p8078_p8 = pmov %p8076_p9 }
 0x15d   : > { %5989 = dma.done.wait (%p8077_p10), [#allocation18], 4096  }
 0x15e   : > { %5991 = vsyncadd (%p8078_p8), [#allocation18], 4294963200  ;;  %p8079_p3 = pmov %p8078_p8 }
 0x160   : > { %5993 = dma.done.wait (%p8079_p3), [#allocation21], 16384   ;;  %p8080_p13 = pmov %p8079_p3 }
 0x161   : > { %s6659_s23 = scalar_lea.vmem [#allocation23], %s4206_s3  ;;  %s8081_s14 = sld [smem:[#allocation35_spill]] }
 0x162   : > { %5995 = vsyncadd (%p8080_p13), [#allocation21], 4294950912 }
 0x167   : > { %p4214_p7 = scmp.ne.s32.totalorder %s8081_s14, 0 }
 0x168   : > { %v777_v0 = vld [vmem:[#allocation14] sm:$0xff] (!%p4214_p7)  ;;  %v778_v1 = vld [vmem:[#allocation14 + $0x8] sm:$0xff] (!%p4214_p7)  ;;  %v779_v2 = vld [vmem:[#allocation14 + $0x10] sm:$0xff] (!%p4214_p7)  ;;  %vm970_vm0 = vcmask (!%p4214_p7), 7168   ;;  %v6065_v40 = vmov (!%p4214_p7), -inf   ;;  %v6066_v41 = vmov (!%p4214_p7), 0.0  }
 0x169   : > { %760 = sbr.rel (%p4214_p7) target bundleno = 623 (0x26f), region = 124  ;;  %v4918_v3 = vpack.c.bf16 (!%p4214_p7), %v778_v1, %v777_v0  ;;  %v780_v4 = vld [vmem:[#allocation14 + $0x18] sm:$0xff] (!%p4214_p7)  ;;  %v781_v6 = vld [vmem:[#allocation14 + $0x20] sm:$0xff] (!%p4214_p7)  ;;  %v782_v7 = vld [vmem:[#allocation14 + $0x28] sm:$0xff] (!%p4214_p7)  ;;  %971 = vst.msk [vmem:[#allocation3] sm:$0xff] (!%p4214_p7), %vm970_vm0, %v6065_v40 }
 0x16a   : > { %v4922_v5 = vpack.c.bf16 (!%p4214_p7), %v780_v4, %v779_v2  ;;  %v4926_v8 = vpack.c.bf16 (!%p4214_p7), %v782_v7, %v781_v6  ;;  %v761_v9 = vld [vmem:[%s6641_s30] sm:$0xff] (!%p4214_p7)  ;;  %v783_v11 = vld [vmem:[#allocation14 + $0x30] sm:$0xff] (!%p4214_p7)  ;;  %v784_v12 = vld [vmem:[#allocation14 + $0x38] sm:$0xff] (!%p4214_p7)  ;;  %972 = vst.msk [vmem:[#allocation3 + $0x8] sm:$0xff] (!%p4214_p7), %vm970_vm0, %v6065_v40 }
 0x16b   : > { %4919 = vmatprep.subr.bf16.mxu0 (!%p4214_p7), %v4918_v3  ;;  %5238 = vmatprep.subr.bf16.mxu1 (!%p4214_p7), %v4918_v3  ;;  %v769_v10 = vld [vmem:[%s6641_s30 + $0x40] sm:$0xff] (!%p4214_p7)  ;;  %v4930_v13 = vpack.c.bf16 (!%p4214_p7), %v784_v12, %v783_v11  ;;  %v786_v15 = vld [vmem:[#allocation14 + $0x48] sm:$0xff] (!%p4214_p7)  ;;  %v787_v17 = vld [vmem:[#allocation14 + $0x50] sm:$0xff] (!%p4214_p7)  ;;  %973 = vst.msk [vmem:[#allocation3 + $0x10] sm:$0xff] (!%p4214_p7), %vm970_vm0, %v6065_v40 }
 0x16c   : > { %4921 = vmatpush3.bf16.msra.mxu0 (!%p4214_p7), %v4918_v3  ;;  %5246 = vmatpush3.bf16.msra.mxu1 (!%p4214_p7), %v4918_v3  ;;  %v785_v14 = vld [vmem:[#allocation14 + $0x40] sm:$0xff] (!%p4214_p7)  ;;  %v788_v18 = vld [vmem:[#allocation14 + $0x58] sm:$0xff] (!%p4214_p7)  ;;  %v790_v21 = vld [vmem:[#allocation14 + $0x68] sm:$0xff] (!%p4214_p7)  ;;  %974 = vst.msk [vmem:[#allocation3 + $0x18] sm:$0xff] (!%p4214_p7), %vm970_vm0, %v6065_v40 }
 0x16d   : > { %4923 = vmatprep.subr.bf16.mxu0 (!%p4214_p7), %v4922_v5  ;;  %5239 = vmatprep.subr.bf16.mxu1 (!%p4214_p7), %v4922_v5  ;;  %v4934_v16 = vpack.c.bf16 (!%p4214_p7), %v786_v15, %v785_v14  ;;  %v4938_v19 = vpack.c.bf16 (!%p4214_p7), %v788_v18, %v787_v17  ;;  %v789_v20 = vld [vmem:[#allocation14 + $0x60] sm:$0xff] (!%p4214_p7)  ;;  %v791_v23 = vld [vmem:[#allocation14 + $0x70] sm:$0xff] (!%p4214_p7)  ;;  %v792_v24 = vld [vmem:[#allocation14 + $0x78] sm:$0xff] (!%p4214_p7)  ;;  %975 = vst.msk [vmem:[#allocation3 + $0x20] sm:$0xff] (!%p4214_p7), %vm970_vm0, %v6065_v40 }
 0x16e   : > { %4614 = vmatprep.mubr.f32.mxu0 (!%p4214_p7), %v761_v9  ;;  %4626 = vmatprep.mubr.f32.mxu1 (!%p4214_p7), %v769_v10  ;;  %v4942_v22 = vpack.c.bf16 (!%p4214_p7), %v790_v21, %v789_v20  ;;  %v4946_v25 = vpack.c.bf16 (!%p4214_p7), %v792_v24, %v791_v23  ;;  %v762_v26 = vld [vmem:[%s6641_s30 + $0x8] sm:$0xff] (!%p4214_p7)  ;;  %v763_v28 = vld [vmem:[%s6641_s30 + $0x10] sm:$0xff] (!%p4214_p7)  ;;  %v764_v30 = vld [vmem:[%s6641_s30 + $0x18] sm:$0xff] (!%p4214_p7)  ;;  %976 = vst.msk [vmem:[#allocation3 + $0x28] sm:$0xff] (!%p4214_p7), %vm970_vm0, %v6065_v40 }
 0x16f   : > { %v770_v27 = vld [vmem:[%s6641_s30 + $0x48] sm:$0xff] (!%p4214_p7)  ;;  %v771_v29 = vld [vmem:[%s6641_s30 + $0x50] sm:$0xff] (!%p4214_p7)  ;;  %v772_v31 = vld [vmem:[%s6641_s30 + $0x58] sm:$0xff] (!%p4214_p7)  ;;  %977 = vst.msk [vmem:[#allocation3 + $0x30] sm:$0xff] (!%p4214_p7), %vm970_vm0, %v6065_v40 }
 0x170   : > { %4925 = vmatpush3.bf16.msra.mxu0 %v4922_v5  ;;  %5247 = vmatpush3.bf16.msra.mxu1 %v4922_v5  ;;  %v765_v32 = vld [vmem:[%s6641_s30 + $0x20] sm:$0xff]  ;;  %v766_v34 = vld [vmem:[%s6641_s30 + $0x28] sm:$0xff]  ;;  %v767_v36 = vld [vmem:[%s6641_s30 + $0x30] sm:$0xff]  ;;  %978 = vst.msk [vmem:[#allocation3 + $0x38] sm:$0xff] %vm970_vm0, %v6065_v40 }
 0x171   : > { %4927 = vmatprep.subr.bf16.mxu0 %v4926_v8  ;;  %5240 = vmatprep.subr.bf16.mxu1 %v4926_v8  ;;  %v773_v33 = vld [vmem:[%s6641_s30 + $0x60] sm:$0xff]  ;;  %v774_v35 = vld [vmem:[%s6641_s30 + $0x68] sm:$0xff]  ;;  %v775_v37 = vld [vmem:[%s6641_s30 + $0x70] sm:$0xff]  ;;  %979 = vst.msk [vmem:[#allocation3 + $0x40] sm:$0xff] %vm970_vm0, %v6065_v40 }
 0x172   : > { %v768_v38 = vld [vmem:[%s6641_s30 + $0x38] sm:$0xff]  ;;  %980 = vst.msk [vmem:[#allocation3 + $0x48] sm:$0xff] %vm970_vm0, %v6065_v40  ;;  %981 = vst.msk [vmem:[#allocation3 + $0x50] sm:$0xff] %vm970_vm0, %v6065_v40 }
 0x173   : > { %v776_v39 = vld [vmem:[%s6641_s30 + $0x78] sm:$0xff]  ;;  %982 = vst.msk [vmem:[#allocation3 + $0x58] sm:$0xff] %vm970_vm0, %v6065_v40  ;;  %983 = vst.msk [vmem:[#allocation3 + $0x60] sm:$0xff] %vm970_vm0, %v6065_v40 }
 0x174   : > { %4929 = vmatpush3.bf16.msra.mxu0 %v4926_v8  ;;  %5248 = vmatpush3.bf16.msra.mxu1 %v4926_v8  ;;  %984 = vst.msk [vmem:[#allocation3 + $0x68] sm:$0xff] %vm970_vm0, %v6065_v40  ;;  %985 = vst.msk [vmem:[#allocation3 + $0x70] sm:$0xff] %vm970_vm0, %v6065_v40 }
 0x175   : > { %4931 = vmatprep.subr.bf16.mxu0 %v4930_v13  ;;  %5241 = vmatprep.subr.bf16.mxu1 %v4930_v13  ;;  %986 = vst.msk [vmem:[#allocation3 + $0x78] sm:$0xff] %vm970_vm0, %v6065_v40  ;;  %987 = vst.msk [vmem:[#allocation4] sm:$0xff] %vm970_vm0, %v6066_v41 }
 0x176   : > { %988 = vst.msk [vmem:[#allocation4 + $0x8] sm:$0xff] %vm970_vm0, %v6066_v41  ;;  %989 = vst.msk [vmem:[#allocation4 + $0x10] sm:$0xff] %vm970_vm0, %v6066_v41 }
 0x177   : > { %990 = vst.msk [vmem:[#allocation4 + $0x18] sm:$0xff] %vm970_vm0, %v6066_v41  ;;  %991 = vst.msk [vmem:[#allocation4 + $0x20] sm:$0xff] %vm970_vm0, %v6066_v41 }
 0x178   : > { %4933 = vmatpush3.bf16.msra.mxu0 %v4930_v13  ;;  %5249 = vmatpush3.bf16.msra.mxu1 %v4930_v13  ;;  %992 = vst.msk [vmem:[#allocation4 + $0x28] sm:$0xff] %vm970_vm0, %v6066_v41  ;;  %993 = vst.msk [vmem:[#allocation4 + $0x30] sm:$0xff] %vm970_vm0, %v6066_v41 }
 0x179   : > { %4935 = vmatprep.subr.bf16.mxu0 %v4934_v16  ;;  %5242 = vmatprep.subr.bf16.mxu1 %v4934_v16  ;;  %994 = vst.msk [vmem:[#allocation4 + $0x38] sm:$0xff] %vm970_vm0, %v6066_v41  ;;  %995 = vst.msk [vmem:[#allocation4 + $0x40] sm:$0xff] %vm970_vm0, %v6066_v41 }
 0x17a   : > { %996 = vst.msk [vmem:[#allocation4 + $0x48] sm:$0xff] %vm970_vm0, %v6066_v41  ;;  %997 = vst.msk [vmem:[#allocation4 + $0x50] sm:$0xff] %vm970_vm0, %v6066_v41 }
 0x17b   : > { %998 = vst.msk [vmem:[#allocation4 + $0x58] sm:$0xff] %vm970_vm0, %v6066_v41  ;;  %999 = vst.msk [vmem:[#allocation4 + $0x60] sm:$0xff] %vm970_vm0, %v6066_v41 }
 0x17c   : > { %4937 = vmatpush3.bf16.msra.mxu0 %v4934_v16  ;;  %5250 = vmatpush3.bf16.msra.mxu1 %v4934_v16  ;;  %1000 = vst.msk [vmem:[#allocation4 + $0x68] sm:$0xff] %vm970_vm0, %v6066_v41  ;;  %1001 = vst.msk [vmem:[#allocation4 + $0x70] sm:$0xff] %vm970_vm0, %v6066_v41 }
 0x17d   : > { %4939 = vmatprep.subr.bf16.mxu0 %v4938_v19  ;;  %5243 = vmatprep.subr.bf16.mxu1 %v4938_v19  ;;  %1002 = vst.msk [vmem:[#allocation4 + $0x78] sm:$0xff] %vm970_vm0, %v6066_v41  ;;  %1003 = vst [vmem:[#allocation5] sm:$0xff] %v6066_v41 }
 0x17e   : > { %1004 = vst [vmem:[#allocation5 + $0x8] sm:$0xff] %v6066_v41  ;;  %1005 = vst [vmem:[#allocation5 + $0x10] sm:$0xff] %v6066_v41 }
 0x17f   : > { %1006 = vst [vmem:[#allocation5 + $0x18] sm:$0xff] %v6066_v41  ;;  %1007 = vst [vmem:[#allocation5 + $0x20] sm:$0xff] %v6066_v41 }
 0x180   : > { %4941 = vmatpush3.bf16.msra.mxu0 %v4938_v19  ;;  %5251 = vmatpush3.bf16.msra.mxu1 %v4938_v19  ;;  %1008 = vst [vmem:[#allocation5 + $0x28] sm:$0xff] %v6066_v41  ;;  %1009 = vst [vmem:[#allocation5 + $0x30] sm:$0xff] %v6066_v41 }
 0x181   : > { %4943 = vmatprep.subr.bf16.mxu0 %v4942_v22  ;;  %5244 = vmatprep.subr.bf16.mxu1 %v4942_v22  ;;  %1010 = vst [vmem:[#allocation5 + $0x38] sm:$0xff] %v6066_v41  ;;  %1011 = vst [vmem:[#allocation5 + $0x40] sm:$0xff] %v6066_v41 }
 0x182   : > { %1012 = vst [vmem:[#allocation5 + $0x48] sm:$0xff] %v6066_v41  ;;  %1013 = vst [vmem:[#allocation5 + $0x50] sm:$0xff] %v6066_v41 }
 0x183   : > { %1014 = vst [vmem:[#allocation5 + $0x58] sm:$0xff] %v6066_v41  ;;  %1015 = vst [vmem:[#allocation5 + $0x60] sm:$0xff] %v6066_v41 }
 0x184   : > { %4945 = vmatpush3.bf16.msra.mxu0 %v4942_v22  ;;  %5252 = vmatpush3.bf16.msra.mxu1 %v4942_v22  ;;  %1016 = vst [vmem:[#allocation5 + $0x68] sm:$0xff] %v6066_v41  ;;  %1017 = vst [vmem:[#allocation5 + $0x70] sm:$0xff] %v6066_v41 }
 0x185   : > { %4947 = vmatprep.subr.bf16.mxu0 %v4946_v25  ;;  %5245 = vmatprep.subr.bf16.mxu1 %v4946_v25  ;;  %1018 = vst [vmem:[#allocation5 + $0x78] sm:$0xff] %v6066_v41 }
 0x188   : > { %4949 = vmatpush3.bf16.msra.mxu0 %v4946_v25  ;;  %5253 = vmatpush3.bf16.msra.mxu1 %v4946_v25 }
 0x18b   : > { %4615 = vmatmul.mubr.f32.vlgmr.msra.gmra.mrb[0].mxu0 %v762_v26  ;;  %4627 = vmatmul.mubr.f32.vlgmr.msra.gmra.mrb[0].mxu1 %v770_v27 }
 0x18c   : > { %4617 = vmatprep.mubr.f32.mxu0 %v763_v28  ;;  %4629 = vmatprep.mubr.f32.mxu1 %v771_v29 }
 0x18f   : > { %4618 = vmatmul.mubr.f32.gmra.mrb[2].mxu0 %v764_v30  ;;  %4630 = vmatmul.mubr.f32.gmra.mrb[2].mxu1 %v772_v31 }
 0x190   : > { %4620 = vmatprep.mubr.f32.mxu0 %v765_v32  ;;  %4632 = vmatprep.mubr.f32.mxu1 %v773_v33 }
 0x193   : > { %4621 = vmatmul.mubr.f32.gmra.mrb[4].mxu0 %v766_v34  ;;  %4633 = vmatmul.mubr.f32.gmra.mrb[4].mxu1 %v774_v35 }
 0x194   : > { %4623 = vmatprep.mubr.f32.mxu0 %v767_v36  ;;  %4635 = vmatprep.mubr.f32.mxu1 %v775_v37 }
 0x197   : > { %4624 = vmatmul.mubr.f32.gmra.mrb[6].mxu0 %v768_v38  ;;  %4636 = vmatmul.mubr.f32.gmra.mrb[6].mxu1 %v776_v39 }
 0x25e   : > { %v4616_v42 = vpop.f32.mrb[0].mxu0  ;;  %v4628_v43 = vpop.f32.mrb[0].mxu1 }
 0x25f   : > { %v939_v44 = vmul.f32 0.088388346, %v4616_v42  ;;  %v947_v45 = vmul.f32 0.088388346, %v4628_v43  ;;  %v859_v46 = vpop.f32.mrb[1].mxu0  ;;  %v899_v47 = vpop.f32.mrb[1].mxu1 }
 0x260   : > { %v938_v48 = vmul.f32 0.088388346, %v859_v46  ;;  %v946_v49 = vmul.f32 0.088388346, %v899_v47 }
 0x261   : > { %955 = vst [vmem:[#allocation2 + $0x8] sm:$0xff] %v939_v44  ;;  %963 = vst [vmem:[#allocation2 + $0x48] sm:$0xff] %v947_v45 }
 0x262   : > { %954 = vst [vmem:[#allocation2] sm:$0xff] %v938_v48  ;;  %962 = vst [vmem:[#allocation2 + $0x40] sm:$0xff] %v946_v49  ;;  %v4619_v50 = vpop.f32.mrb[2].mxu0  ;;  %v4631_v51 = vpop.f32.mrb[2].mxu1 }
 0x263   : > { %v941_v52 = vmul.f32 0.088388346, %v4619_v50  ;;  %v949_v53 = vmul.f32 0.088388346, %v4631_v51  ;;  %v869_v54 = vpop.f32.mrb[3].mxu0  ;;  %v909_v55 = vpop.f32.mrb[3].mxu1 }
 0x264   : > { %v940_v56 = vmul.f32 0.088388346, %v869_v54  ;;  %v948_v57 = vmul.f32 0.088388346, %v909_v55 }
 0x265   : > { %957 = vst [vmem:[#allocation2 + $0x18] sm:$0xff] %v941_v52  ;;  %965 = vst [vmem:[#allocation2 + $0x58] sm:$0xff] %v949_v53 }
 0x266   : > { %956 = vst [vmem:[#allocation2 + $0x10] sm:$0xff] %v940_v56  ;;  %964 = vst [vmem:[#allocation2 + $0x50] sm:$0xff] %v948_v57  ;;  %v4622_v58 = vpop.f32.mrb[4].mxu0  ;;  %v4634_v59 = vpop.f32.mrb[4].mxu1 }
 0x267   : > { %v943_v60 = vmul.f32 0.088388346, %v4622_v58  ;;  %v951_v61 = vmul.f32 0.088388346, %v4634_v59  ;;  %v879_v62 = vpop.f32.mrb[5].mxu0  ;;  %v919_v63 = vpop.f32.mrb[5].mxu1 }
 0x268   : > { %v942_v0 = vmul.f32 0.088388346, %v879_v62  ;;  %v950_v1 = vmul.f32 0.088388346, %v919_v63 }
 0x269   : > { %959 = vst [vmem:[#allocation2 + $0x28] sm:$0xff] %v943_v60  ;;  %967 = vst [vmem:[#allocation2 + $0x68] sm:$0xff] %v951_v61 }
 0x26a   : > { %958 = vst [vmem:[#allocation2 + $0x20] sm:$0xff] %v942_v0  ;;  %966 = vst [vmem:[#allocation2 + $0x60] sm:$0xff] %v950_v1  ;;  %v4625_v2 = vpop.f32.mrb[6].mxu0  ;;  %v4637_v3 = vpop.f32.mrb[6].mxu1 }
 0x26b   : > { %v945_v4 = vmul.f32 0.088388346, %v4625_v2  ;;  %v953_v5 = vmul.f32 0.088388346, %v4637_v3  ;;  %v889_v6 = vpop.f32.mrb[7].mxu0  ;;  %v929_v7 = vpop.f32.mrb[7].mxu1 }
 0x26c   : > { %v944_v8 = vmul.f32 0.088388346, %v889_v6  ;;  %v952_v9 = vmul.f32 0.088388346, %v929_v7 }
 0x26d   : > { %961 = vst [vmem:[#allocation2 + $0x38] sm:$0xff] %v945_v4  ;;  %969 = vst [vmem:[#allocation2 + $0x78] sm:$0xff] %v953_v5 }
 0x26e   : > { %960 = vst [vmem:[#allocation2 + $0x30] sm:$0xff] %v944_v8  ;;  %968 = vst [vmem:[#allocation2 + $0x70] sm:$0xff] %v952_v9 }
 0x26f PF: > { %s8082_s19 = sld [smem:[#allocation35_spill]]  ;;  %s8083_s7 = sld [smem:[#allocation36_spill]] }
 0x275   : > { %s6711_s11 = sshll.u32 %s8082_s19, 7  ;;  %p4216_p1 = scmp.ne.s32.totalorder %s8083_s7, 0 }
 0x276   : > { %v1040_v10 = vld [vmem:[#allocation16] sm:$0xff] (!%p4216_p1)  ;;  %v1041_v11 = vld [vmem:[#allocation16 + $0x8] sm:$0xff] (!%p4216_p1)  ;;  %v1042_v15 = vld [vmem:[#allocation16 + $0x10] sm:$0xff] (!%p4216_p1)  ;;  %s6747_s1 = scalar_lea.vmem (!%p4216_p1), [#allocation6], %s6711_s11  ;;  %s6751_s22 = scalar_lea.vmem (!%p4216_p1), [#allocation7], %s6711_s11 }
 0x277   : > { %1023 = sbr.rel (%p4216_p1) target bundleno = 908 (0x38c), region = 128  ;;  %v1217_v12 = vld [vmem:[#allocation17] sm:$0xff] (!%p4216_p1)  ;;  %v4950_v13 = vpack.c.bf16 (!%p4216_p1), %v1041_v11, %v1040_v10  ;;  %v1218_v14 = vld [vmem:[#allocation17 + $0x8] sm:$0xff] (!%p4216_p1)  ;;  %v1043_v16 = vld [vmem:[#allocation16 + $0x18] sm:$0xff] (!%p4216_p1) }
 0x278   : > { %v4982_v17 = vpack.c.bf16 (!%p4216_p1), %v1218_v14, %v1217_v12  ;;  %v4954_v18 = vpack.c.bf16 (!%p4216_p1), %v1043_v16, %v1042_v15  ;;  %v1219_v19 = vld [vmem:[#allocation17 + $0x10] sm:$0xff] (!%p4216_p1)  ;;  %v1220_v20 = vld [vmem:[#allocation17 + $0x18] sm:$0xff] (!%p4216_p1)  ;;  %v1044_v21 = vld [vmem:[#allocation16 + $0x20] sm:$0xff] (!%p4216_p1) }
 0x279   : > { %4951 = vmatprep.subr.bf16.mxu0 (!%p4216_p1), %v4950_v13  ;;  %v4986_v22 = vpack.c.bf16 (!%p4216_p1), %v1220_v20, %v1219_v19  ;;  %v1045_v23 = vld [vmem:[#allocation16 + $0x28] sm:$0xff] (!%p4216_p1)  ;;  %v1221_v24 = vld [vmem:[#allocation17 + $0x20] sm:$0xff] (!%p4216_p1)  ;;  %v1046_v28 = vld [vmem:[#allocation16 + $0x30] sm:$0xff] (!%p4216_p1) }
 0x27a   : > { %v1222_v25 = vld [vmem:[#allocation17 + $0x28] sm:$0xff] (!%p4216_p1)  ;;  %4983 = vmatprep.subr.bf16.mxu1 (!%p4216_p1), %v4982_v17  ;;  %4953 = vmatpush3.bf16.msra.mxu0 (!%p4216_p1), %v4950_v13  ;;  %v4958_v26 = vpack.c.bf16 (!%p4216_p1), %v1045_v23, %v1044_v21  ;;  %v1047_v29 = vld [vmem:[#allocation16 + $0x38] sm:$0xff] (!%p4216_p1)  ;;  %v1223_v30 = vld [vmem:[#allocation17 + $0x30] sm:$0xff] (!%p4216_p1) }
 0x27b   : > { %4985 = vmatpush3.bf16.msra.mxu1 (!%p4216_p1), %v4982_v17  ;;  %4955 = vmatprep.subr.bf16.mxu0 (!%p4216_p1), %v4954_v18  ;;  %v4990_v27 = vpack.c.bf16 (!%p4216_p1), %v1222_v25, %v1221_v24  ;;  %v1224_v31 = vld [vmem:[#allocation17 + $0x38] sm:$0xff] (!%p4216_p1)  ;;  %v4962_v32 = vpack.c.bf16 (!%p4216_p1), %v1047_v29, %v1046_v28  ;;  %v1048_v34 = vld [vmem:[#allocation16 + $0x40] sm:$0xff] (!%p4216_p1)  ;;  %v1049_v35 = vld [vmem:[#allocation16 + $0x48] sm:$0xff] (!%p4216_p1) }
 0x27c   : > { %4987 = vmatprep.subr.bf16.mxu1 (!%p4216_p1), %v4986_v22  ;;  %v4994_v33 = vpack.c.bf16 (!%p4216_p1), %v1224_v31, %v1223_v30  ;;  %v1024_v36 = vld [vmem:[%s6632_s5] sm:$0xff] (!%p4216_p1)  ;;  %v1226_v38 = vld [vmem:[#allocation17 + $0x48] sm:$0xff] (!%p4216_p1)  ;;  %v4966_v40 = vpack.c.bf16 (!%p4216_p1), %v1049_v35, %v1048_v34  ;;  %v1050_v42 = vld [vmem:[#allocation16 + $0x50] sm:$0xff] (!%p4216_p1) }
 0x27d   : > { %v1225_v37 = vld [vmem:[#allocation17 + $0x40] sm:$0xff] (!%p4216_p1)  ;;  %4670 = vmatprep.mubr.f32.mxu0 (!%p4216_p1), %v1024_v36  ;;  %v1051_v43 = vld [vmem:[#allocation16 + $0x58] sm:$0xff] (!%p4216_p1)  ;;  %v1227_v44 = vld [vmem:[#allocation17 + $0x50] sm:$0xff] (!%p4216_p1) }
 0x27e   : > { %4957 = vmatpush3.bf16.msra.mxu0 %v4954_v18  ;;  %v1201_v39 = vld [vmem:[%s6625_s27] sm:$0xff]  ;;  %v4998_v41 = vpack.c.bf16 %v1226_v38, %v1225_v37  ;;  %v1228_v45 = vld [vmem:[#allocation17 + $0x58] sm:$0xff]  ;;  %v4970_v46 = vpack.c.bf16 %v1051_v43, %v1050_v42  ;;  %v1053_v49 = vld [vmem:[#allocation16 + $0x68] sm:$0xff] }
 0x27f   : > { %4989 = vmatpush3.bf16.msra.mxu1 %v4986_v22  ;;  %4959 = vmatprep.subr.bf16.mxu0 %v4958_v26  ;;  %v5002_v47 = vpack.c.bf16 %v1228_v45, %v1227_v44  ;;  %v1052_v48 = vld [vmem:[#allocation16 + $0x60] sm:$0xff]  ;;  %v1230_v51 = vld [vmem:[#allocation17 + $0x68] sm:$0xff]  ;;  %v1054_v54 = vld [vmem:[#allocation16 + $0x70] sm:$0xff] }
 0x280   : > { %4991 = vmatprep.subr.bf16.mxu1 %v4990_v27  ;;  %4726 = vmatprep.mubr.f32.mxu1 %v1201_v39  ;;  %v1229_v50 = vld [vmem:[#allocation17 + $0x60] sm:$0xff]  ;;  %v4974_v52 = vpack.c.bf16 %v1053_v49, %v1052_v48  ;;  %v1055_v55 = vld [vmem:[#allocation16 + $0x78] sm:$0xff]  ;;  %v1231_v56 = vld [vmem:[#allocation17 + $0x70] sm:$0xff] }
 0x281   : > { %v5006_v53 = vpack.c.bf16 %v1230_v51, %v1229_v50  ;;  %v1232_v57 = vld [vmem:[#allocation17 + $0x78] sm:$0xff]  ;;  %v4978_v58 = vpack.c.bf16 %v1055_v55, %v1054_v54  ;;  %v1025_v60 = vld [vmem:[%s6632_s5 + $0x8] sm:$0xff]  ;;  %v1026_v62 = vld [vmem:[%s6632_s5 + $0x10] sm:$0xff] }
 0x282   : > { %4961 = vmatpush3.bf16.msra.mxu0 %v4958_v26  ;;  %v5010_v59 = vpack.c.bf16 %v1232_v57, %v1231_v56  ;;  %v1202_v61 = vld [vmem:[%s6625_s27 + $0x8] sm:$0xff]  ;;  %v1203_v63 = vld [vmem:[%s6625_s27 + $0x10] sm:$0xff]  ;;  %v1027_v0 = vld [vmem:[%s6632_s5 + $0x18] sm:$0xff] }
 0x283   : > { %4993 = vmatpush3.bf16.msra.mxu1 %v4990_v27  ;;  %4963 = vmatprep.subr.bf16.mxu0 %v4962_v32  ;;  %v1204_v1 = vld [vmem:[%s6625_s27 + $0x18] sm:$0xff]  ;;  %v1028_v2 = vld [vmem:[%s6632_s5 + $0x20] sm:$0xff]  ;;  %v1029_v4 = vld [vmem:[%s6632_s5 + $0x28] sm:$0xff] }
 0x284   : > { %4995 = vmatprep.subr.bf16.mxu1 %v4994_v33  ;;  %v1205_v3 = vld [vmem:[%s6625_s27 + $0x20] sm:$0xff]  ;;  %v1206_v5 = vld [vmem:[%s6625_s27 + $0x28] sm:$0xff]  ;;  %v1030_v6 = vld [vmem:[%s6632_s5 + $0x30] sm:$0xff] }
 0x285   : > { %v1207_v7 = vld [vmem:[%s6625_s27 + $0x30] sm:$0xff]  ;;  %v1031_v8 = vld [vmem:[%s6632_s5 + $0x38] sm:$0xff]  ;;  %v1032_v10 = vld [vmem:[%s6632_s5 + $0x40] sm:$0xff] }
 0x286   : > { %4965 = vmatpush3.bf16.msra.mxu0 %v4962_v32  ;;  %v1208_v9 = vld [vmem:[%s6625_s27 + $0x38] sm:$0xff]  ;;  %v1209_v11 = vld [vmem:[%s6625_s27 + $0x40] sm:$0xff]  ;;  %v1033_v12 = vld [vmem:[%s6632_s5 + $0x48] sm:$0xff] }
 0x287   : > { %4997 = vmatpush3.bf16.msra.mxu1 %v4994_v33  ;;  %4967 = vmatprep.subr.bf16.mxu0 %v4966_v40  ;;  %v1210_v13 = vld [vmem:[%s6625_s27 + $0x48] sm:$0xff]  ;;  %v1034_v14 = vld [vmem:[%s6632_s5 + $0x50] sm:$0xff]  ;;  %v1035_v16 = vld [vmem:[%s6632_s5 + $0x58] sm:$0xff] }
 0x288   : > { %4999 = vmatprep.subr.bf16.mxu1 %v4998_v41  ;;  %v1211_v15 = vld [vmem:[%s6625_s27 + $0x50] sm:$0xff]  ;;  %v1212_v17 = vld [vmem:[%s6625_s27 + $0x58] sm:$0xff]  ;;  %v1036_v18 = vld [vmem:[%s6632_s5 + $0x60] sm:$0xff] }
 0x289   : > { %v1213_v19 = vld [vmem:[%s6625_s27 + $0x60] sm:$0xff]  ;;  %v1037_v20 = vld [vmem:[%s6632_s5 + $0x68] sm:$0xff]  ;;  %v1038_v22 = vld [vmem:[%s6632_s5 + $0x70] sm:$0xff] }
 0x28a   : > { %4969 = vmatpush3.bf16.msra.mxu0 %v4966_v40  ;;  %v1214_v21 = vld [vmem:[%s6625_s27 + $0x68] sm:$0xff]  ;;  %v1215_v23 = vld [vmem:[%s6625_s27 + $0x70] sm:$0xff]  ;;  %v1039_v24 = vld [vmem:[%s6632_s5 + $0x78] sm:$0xff] }
 0x28b   : > { %5001 = vmatpush3.bf16.msra.mxu1 %v4998_v41  ;;  %4971 = vmatprep.subr.bf16.mxu0 %v4970_v46  ;;  %v1216_v25 = vld [vmem:[%s6625_s27 + $0x78] sm:$0xff] }
 0x28c   : > { %5003 = vmatprep.subr.bf16.mxu1 %v5002_v47 }
 0x28e   : > { %4973 = vmatpush3.bf16.msra.mxu0 %v4970_v46 }
 0x28f   : > { %5005 = vmatpush3.bf16.msra.mxu1 %v5002_v47  ;;  %4975 = vmatprep.subr.bf16.mxu0 %v4974_v52 }
 0x290   : > { %5007 = vmatprep.subr.bf16.mxu1 %v5006_v53 }
 0x292   : > { %4977 = vmatpush3.bf16.msra.mxu0 %v4974_v52 }
 0x293   : > { %5009 = vmatpush3.bf16.msra.mxu1 %v5006_v53  ;;  %4979 = vmatprep.subr.bf16.mxu0 %v4978_v58 }
 0x294   : > { %5011 = vmatprep.subr.bf16.mxu1 %v5010_v59 }
 0x296   : > { %4981 = vmatpush3.bf16.msra.mxu0 %v4978_v58 }
 0x297   : > { %5013 = vmatpush3.bf16.msra.mxu1 %v5010_v59 }
 0x299   : > { %4671 = vmatmul.mubr.f32.vlgmr.msra.gmra.mrb[0].mxu0 %v1025_v60 }
 0x29a   : > { %4727 = vmatmul.mubr.f32.vlgmr.msra.gmra.mrb[0].mxu1 %v1202_v61  ;;  %4673 = vmatprep.mubr.f32.mxu0 %v1026_v62 }
 0x29b   : > { %4729 = vmatprep.mubr.f32.mxu1 %v1203_v63 }
 0x29d   : > { %4674 = vmatmul.mubr.f32.gmra.mrb[2].mxu0 %v1027_v0 }
 0x29e   : > { %4730 = vmatmul.mubr.f32.gmra.mrb[2].mxu1 %v1204_v1  ;;  %4676 = vmatprep.mubr.f32.mxu0 %v1028_v2 }
 0x29f   : > { %4732 = vmatprep.mubr.f32.mxu1 %v1205_v3 }
 0x2a1   : > { %4677 = vmatmul.mubr.f32.gmra.mrb[4].mxu0 %v1029_v4 }
 0x2a2   : > { %4733 = vmatmul.mubr.f32.gmra.mrb[4].mxu1 %v1206_v5  ;;  %4679 = vmatprep.mubr.f32.mxu0 %v1030_v6 }
 0x2a3   : > { %4735 = vmatprep.mubr.f32.mxu1 %v1207_v7 }
 0x2a5   : > { %4680 = vmatmul.mubr.f32.gmra.mrb[6].mxu0 %v1031_v8 }
 0x2a6   : > { %4736 = vmatmul.mubr.f32.gmra.mrb[6].mxu1 %v1208_v9  ;;  %4682 = vmatprep.mubr.f32.mxu0 %v1032_v10 }
 0x2a7   : > { %4738 = vmatprep.mubr.f32.mxu1 %v1209_v11 }
 0x2a9   : > { %4683 = vmatmul.mubr.f32.gmra.mrb[8].mxu0 %v1033_v12 }
 0x2aa   : > { %4739 = vmatmul.mubr.f32.gmra.mrb[8].mxu1 %v1210_v13  ;;  %4685 = vmatprep.mubr.f32.mxu0 %v1034_v14 }
 0x2ab   : > { %4741 = vmatprep.mubr.f32.mxu1 %v1211_v15 }
 0x2ad   : > { %4686 = vmatmul.mubr.f32.gmra.mrb[10].mxu0 %v1035_v16 }
 0x2ae   : > { %4742 = vmatmul.mubr.f32.gmra.mrb[10].mxu1 %v1212_v17  ;;  %4688 = vmatprep.mubr.f32.mxu0 %v1036_v18 }
 0x2af   : > { %4744 = vmatprep.mubr.f32.mxu1 %v1213_v19 }
 0x2b1   : > { %4689 = vmatmul.mubr.f32.gmra.mrb[12].mxu0 %v1037_v20 }
 0x2b2   : > { %4745 = vmatmul.mubr.f32.gmra.mrb[12].mxu1 %v1214_v21  ;;  %4691 = vmatprep.mubr.f32.mxu0 %v1038_v22 }
 0x2b3   : > { %4747 = vmatprep.mubr.f32.mxu1 %v1215_v23 }
 0x2b5   : > { %4692 = vmatmul.mubr.f32.gmra.mrb[14].mxu0 %v1039_v24 }
 0x2b6   : > { %4748 = vmatmul.mubr.f32.gmra.mrb[14].mxu1 %v1216_v25 }
 0x36c   : > { %v4672_v26 = vpop.f32.mrb[0].mxu0 }
 0x36d   : > { %1380 = vst [vmem:[%s6747_s1 + $0x8] sm:$0xff] %v4672_v26  ;;  %v4728_v27 = vpop.f32.mrb[0].mxu1  ;;  %v1122_v28 = vpop.f32.mrb[1].mxu0 }
 0x36e   : > { %1397 = vst [vmem:[%s6751_s22 + $0x8] sm:$0xff] %v4728_v27  ;;  %1379 = vst [vmem:[%s6747_s1] sm:$0xff] %v1122_v28  ;;  %v1299_v29 = vpop.f32.mrb[1].mxu1 }
 0x36f   : > { %1396 = vst [vmem:[%s6751_s22] sm:$0xff] %v1299_v29 }
 0x370   : > { %v4675_v30 = vpop.f32.mrb[2].mxu0 }
 0x371   : > { %1382 = vst [vmem:[%s6747_s1 + $0x18] sm:$0xff] %v4675_v30  ;;  %v4731_v31 = vpop.f32.mrb[2].mxu1  ;;  %v1132_v32 = vpop.f32.mrb[3].mxu0 }
 0x372   : > { %1399 = vst [vmem:[%s6751_s22 + $0x18] sm:$0xff] %v4731_v31  ;;  %1381 = vst [vmem:[%s6747_s1 + $0x10] sm:$0xff] %v1132_v32  ;;  %v1309_v33 = vpop.f32.mrb[3].mxu1 }
 0x373   : > { %1398 = vst [vmem:[%s6751_s22 + $0x10] sm:$0xff] %v1309_v33 }
 0x374   : > { %v4678_v34 = vpop.f32.mrb[4].mxu0 }
 0x375   : > { %1384 = vst [vmem:[%s6747_s1 + $0x28] sm:$0xff] %v4678_v34  ;;  %v4734_v35 = vpop.f32.mrb[4].mxu1  ;;  %v1142_v36 = vpop.f32.mrb[5].mxu0 }
 0x376   : > { %1401 = vst [vmem:[%s6751_s22 + $0x28] sm:$0xff] %v4734_v35  ;;  %1383 = vst [vmem:[%s6747_s1 + $0x20] sm:$0xff] %v1142_v36  ;;  %v1319_v37 = vpop.f32.mrb[5].mxu1 }
 0x377   : > { %1400 = vst [vmem:[%s6751_s22 + $0x20] sm:$0xff] %v1319_v37 }
 0x378   : > { %v4681_v38 = vpop.f32.mrb[6].mxu0 }
 0x379   : > { %1386 = vst [vmem:[%s6747_s1 + $0x38] sm:$0xff] %v4681_v38  ;;  %v4737_v39 = vpop.f32.mrb[6].mxu1  ;;  %v1152_v40 = vpop.f32.mrb[7].mxu0 }
 0x37a   : > { %1403 = vst [vmem:[%s6751_s22 + $0x38] sm:$0xff] %v4737_v39  ;;  %1385 = vst [vmem:[%s6747_s1 + $0x30] sm:$0xff] %v1152_v40  ;;  %v1329_v41 = vpop.f32.mrb[7].mxu1 }
 0x37b   : > { %1402 = vst [vmem:[%s6751_s22 + $0x30] sm:$0xff] %v1329_v41 }
 0x37c   : > { %v4684_v42 = vpop.f32.mrb[8].mxu0 }
 0x37d   : > { %1388 = vst [vmem:[%s6747_s1 + $0x48] sm:$0xff] %v4684_v42  ;;  %v4740_v43 = vpop.f32.mrb[8].mxu1  ;;  %v1162_v44 = vpop.f32.mrb[9].mxu0 }
 0x37e   : > { %1405 = vst [vmem:[%s6751_s22 + $0x48] sm:$0xff] %v4740_v43  ;;  %1387 = vst [vmem:[%s6747_s1 + $0x40] sm:$0xff] %v1162_v44  ;;  %v1339_v45 = vpop.f32.mrb[9].mxu1 }
 0x37f   : > { %1404 = vst [vmem:[%s6751_s22 + $0x40] sm:$0xff] %v1339_v45 }
 0x380   : > { %v4687_v46 = vpop.f32.mrb[10].mxu0 }
 0x381   : > { %1390 = vst [vmem:[%s6747_s1 + $0x58] sm:$0xff] %v4687_v46  ;;  %v4743_v47 = vpop.f32.mrb[10].mxu1  ;;  %v1172_v48 = vpop.f32.mrb[11].mxu0 }
 0x382   : > { %1407 = vst [vmem:[%s6751_s22 + $0x58] sm:$0xff] %v4743_v47  ;;  %1389 = vst [vmem:[%s6747_s1 + $0x50] sm:$0xff] %v1172_v48  ;;  %v1349_v49 = vpop.f32.mrb[11].mxu1 }
 0x383   : > { %1406 = vst [vmem:[%s6751_s22 + $0x50] sm:$0xff] %v1349_v49 }
 0x384   : > { %v4690_v50 = vpop.f32.mrb[12].mxu0 }
 0x385   : > { %1392 = vst [vmem:[%s6747_s1 + $0x68] sm:$0xff] %v4690_v50  ;;  %v4746_v51 = vpop.f32.mrb[12].mxu1  ;;  %v1182_v52 = vpop.f32.mrb[13].mxu0 }
 0x386   : > { %1409 = vst [vmem:[%s6751_s22 + $0x68] sm:$0xff] %v4746_v51  ;;  %1391 = vst [vmem:[%s6747_s1 + $0x60] sm:$0xff] %v1182_v52  ;;  %v1359_v53 = vpop.f32.mrb[13].mxu1 }
 0x387   : > { %1408 = vst [vmem:[%s6751_s22 + $0x60] sm:$0xff] %v1359_v53 }
 0x388   : > { %v4693_v54 = vpop.f32.mrb[14].mxu0 }
 0x389   : > { %1394 = vst [vmem:[%s6747_s1 + $0x78] sm:$0xff] %v4693_v54  ;;  %v4749_v55 = vpop.f32.mrb[14].mxu1  ;;  %v1192_v56 = vpop.f32.mrb[15].mxu0 }
 0x38a   : > { %1411 = vst [vmem:[%s6751_s22 + $0x78] sm:$0xff] %v4749_v55  ;;  %1393 = vst [vmem:[%s6747_s1 + $0x70] sm:$0xff] %v1192_v56  ;;  %v1369_v57 = vpop.f32.mrb[15].mxu1 }
 0x38b   : > { %1410 = vst [vmem:[%s6751_s22 + $0x70] sm:$0xff] %v1369_v57 }
 0x38c PF: > { %v1446_v58 = vld [vmem:[#allocation2] sm:$0xff]  ;;  %s6785_s9 = scalar_lea.vmem [#allocation6], %s6711_s11  ;;  %v1447_v19 = vld [vmem:[#allocation2 + $0x8] sm:$0xff]  ;;  %v1448_v20 = vld [vmem:[#allocation2 + $0x10] sm:$0xff]  ;;  %v6067_v44 = vmov 0   ;;  %s6852_s29 = scalar_lea.vmem [#allocation7], %s6711_s11 }
 0x38d   : > { %4782 = vmatprep.mubr.f32.mxu0 %v1446_v58  ;;  %v1449_v21 = vld [vmem:[#allocation2 + $0x18] sm:$0xff]  ;;  %v1450_v22 = vld [vmem:[#allocation2 + $0x20] sm:$0xff]  ;;  %v1451_v23 = vld [vmem:[#allocation2 + $0x28] sm:$0xff]  ;;  %5470 = vset.pattern.permute.xlu0 %v6067_v44  ;;  %vm1927_vm1 = vcmask 7168   ;;  %s8084_s10 = sld [smem:[#allocation35_spill]] }
 0x38e   : > { %v1452_v24 = vld [vmem:[#allocation2 + $0x30] sm:$0xff]  ;;  %v1453_v25 = vld [vmem:[#allocation2 + $0x38] sm:$0xff]  ;;  %v1454_v26 = vld [vmem:[#allocation2 + $0x40] sm:$0xff]  ;;  %5471 = vset.pattern.permute.xlu1 %v6067_v44 }
 0x38f   : > { %v1455_v27 = vld [vmem:[#allocation2 + $0x48] sm:$0xff]  ;;  %v1456_v28 = vld [vmem:[#allocation2 + $0x50] sm:$0xff]  ;;  %v1457_v29 = vld [vmem:[#allocation2 + $0x58] sm:$0xff] }
 0x390   : > { %v1458_v30 = vld [vmem:[#allocation2 + $0x60] sm:$0xff]  ;;  %v1459_v31 = vld [vmem:[#allocation2 + $0x68] sm:$0xff]  ;;  %v1460_v32 = vld [vmem:[#allocation2 + $0x70] sm:$0xff] }
 0x391   : > { %v1413_v59 = vld [vmem:[%s6785_s9] sm:$0xff]  ;;  %v1414_v60 = vld [vmem:[%s6785_s9 + $0x8] sm:$0xff]  ;;  %v1415_v61 = vld [vmem:[%s6785_s9 + $0x10] sm:$0xff] }
 0x392   : > { %v5014_v62 = vpack.c.bf16 %v1414_v60, %v1413_v59  ;;  %v1416_v63 = vld [vmem:[%s6785_s9 + $0x18] sm:$0xff]  ;;  %v1417_v1 = vld [vmem:[%s6785_s9 + $0x20] sm:$0xff]  ;;  %v1418_v2 = vld [vmem:[%s6785_s9 + $0x28] sm:$0xff] }
 0x393   : > { %v5018_v0 = vpack.c.bf16 %v1416_v63, %v1415_v61  ;;  %v5022_v3 = vpack.c.bf16 %v1418_v2, %v1417_v1  ;;  %v1419_v4 = vld [vmem:[%s6785_s9 + $0x30] sm:$0xff]  ;;  %v1420_v5 = vld [vmem:[%s6785_s9 + $0x38] sm:$0xff]  ;;  %v1421_v7 = vld [vmem:[%s6785_s9 + $0x40] sm:$0xff]  ;;  %p4217_p4 = scmp.ne.s32.totalorder %s8084_s10, 1 }
 0x394   : > { %5015 = vmatprep.subr.bf16.mxu0 %v5014_v62  ;;  %v5026_v6 = vpack.c.bf16 %v1420_v5, %v1419_v4  ;;  %v1422_v8 = vld [vmem:[%s6785_s9 + $0x48] sm:$0xff]  ;;  %v1423_v10 = vld [vmem:[%s6785_s9 + $0x50] sm:$0xff]  ;;  %v1424_v11 = vld [vmem:[%s6785_s9 + $0x58] sm:$0xff]  ;;  %s8085_s15 = sld [smem:[#allocation50_spill]] (!%p4217_p4)  ;;  %s8086_s28 = sld [smem:[#allocation51_spill]] (!%p4217_p4) }
 0x395   : > { %5017 = vmatpush3.bf16.xpose.msra.mxu0 %v5014_v62  ;;  %v5030_v9 = vpack.c.bf16 %v1422_v8, %v1421_v7  ;;  %v5034_v12 = vpack.c.bf16 %v1424_v11, %v1423_v10  ;;  %v1425_v13 = vld [vmem:[%s6785_s9 + $0x60] sm:$0xff]  ;;  %v1426_v14 = vld [vmem:[%s6785_s9 + $0x68] sm:$0xff]  ;;  %v1427_v16 = vld [vmem:[%s6785_s9 + $0x70] sm:$0xff]  ;;  %s8087_s14 = sld [smem:[#allocation52_spill]] (!%p4217_p4)  ;;  %s8088_s7 = sld [smem:[#allocation54_spill]] (!%p4217_p4) }
 0x396   : > { %5019 = vmatprep.subr.bf16.mxu0 %v5018_v0  ;;  %v5038_v15 = vpack.c.bf16 %v1426_v14, %v1425_v13  ;;  %v1428_v17 = vld [vmem:[%s6785_s9 + $0x78] sm:$0xff]  ;;  %v1430_v51 = vld [vmem:[%s6852_s29] sm:$0xff]  ;;  %v1431_v52 = vld [vmem:[%s6852_s29 + $0x8] sm:$0xff]  ;;  %s8089_s9 = sld [smem:[#allocation55_spill]] (!%p4217_p4)  ;;  %s8090_s25 = sld [smem:[#allocation56_spill]] (!%p4217_p4) }
 0x397   : > { %v5042_v18 = vpack.c.bf16 %v1428_v17, %v1427_v16  ;;  %v1461_v33 = vld [vmem:[#allocation2 + $0x78] sm:$0xff]  ;;  %v1432_v53 = vld [vmem:[%s6852_s29 + $0x10] sm:$0xff]  ;;  %v5046_v54 = vpack.c.bf16 %v1431_v52, %v1430_v51  ;;  %v1434_v57 = vld [vmem:[%s6852_s29 + $0x20] sm:$0xff]  ;;  %s8091_s24 = sld [smem:[#allocation57_spill]] (!%p4217_p4) }
 0x398   : > { %v1433_v55 = vld [vmem:[%s6852_s29 + $0x18] sm:$0xff]  ;;  %v1435_v58 = vld [vmem:[%s6852_s29 + $0x28] sm:$0xff]  ;;  %v1436_v60 = vld [vmem:[%s6852_s29 + $0x30] sm:$0xff] }
 0x399   : > { %v5050_v56 = vpack.c.bf16 %v1433_v55, %v1432_v53  ;;  %5047 = vmatprep.subr.bf16.mxu1 %v5046_v54  ;;  %v5054_v59 = vpack.c.bf16 %v1435_v58, %v1434_v57  ;;  %v1437_v61 = vld [vmem:[%s6852_s29 + $0x38] sm:$0xff]  ;;  %v6862_v63 = vld [vmem:[#allocation3] sm:$0xff]  ;;  %v6882_v11 = vld [vmem:[#allocation3 + $0x10] sm:$0xff] }
 0x39a   : > { %5049 = vmatpush3.bf16.msra.mxu1 %v5046_v54  ;;  %v5058_v62 = vpack.c.bf16 %v1437_v61, %v1436_v60  ;;  %v6867_v2 = vld [vmem:[#allocation3 + $0x18] sm:$0xff]  ;;  %v1438_v5 = vld [vmem:[%s6852_s29 + $0x40] sm:$0xff]  ;;  %v1440_v14 = vld [vmem:[%s6852_s29 + $0x50] sm:$0xff] }
 0x39b   : > { %5051 = vmatprep.subr.bf16.mxu1 %v5050_v56  ;;  %v1616_v53 = vld [vmem:[#allocation3 + $0x48] sm:$0xff]  ;;  %v6929_v55 = vld [vmem:[#allocation3 + $0x50] sm:$0xff]  ;;  %v1618_v60 = vld [vmem:[#allocation3 + $0x58] sm:$0xff] }
 0x39d   : > { %5021 = vmatpush3.bf16.xpose.msra.mxu0 %v5018_v0 }
 0x39e   : > { %5023 = vmatprep.subr.bf16.mxu0 %v5022_v3  ;;  %5053 = vmatpush3.bf16.msra.mxu1 %v5050_v56 }
 0x39f   : > { %5055 = vmatprep.subr.bf16.mxu1 %v5054_v59 }
 0x3a2   : > { %5057 = vmatpush3.bf16.msra.mxu1 %v5054_v59 }
 0x3a3   : > { %5059 = vmatprep.subr.bf16.mxu1 %v5058_v62 }
 0x3a5   : > { %5025 = vmatpush3.bf16.xpose.msra.mxu0 %v5022_v3  ;;  %v6869_v3 = vld [vmem:[#allocation3 + $0x8] sm:$0xff] }
 0x3a6   : > { %5027 = vmatprep.subr.bf16.mxu0 %v5026_v6  ;;  %5061 = vmatpush3.bf16.msra.mxu1 %v5058_v62  ;;  %v6939_v62 = vld [vmem:[#allocation3 + $0x60] sm:$0xff] }
 0x3ad   : > { %5029 = vmatpush3.bf16.xpose.msra.mxu0 %v5026_v6  ;;  %v1439_v6 = vld [vmem:[%s6852_s29 + $0x48] sm:$0xff] }
 0x3ae   : > { %5031 = vmatprep.subr.bf16.mxu0 %v5030_v9 }
 0x3b5   : > { %5033 = vmatpush3.bf16.xpose.msra.mxu0 %v5030_v9  ;;  %v5062_v9 = vpack.c.bf16 %v1439_v6, %v1438_v5  ;;  %v1620_v6 = vld [vmem:[#allocation3 + $0x68] sm:$0xff] }
 0x3b6   : > { %5035 = vmatprep.subr.bf16.mxu0 %v5034_v12 }
 0x3b7   : > { %5063 = vmatprep.subr.bf16.mxu1 %v5062_v9 }
 0x3b8   : > { %5065 = vmatpush3.bf16.msra.mxu1 %v5062_v9  ;;  %v6950_v9 = vld [vmem:[#allocation3 + $0x70] sm:$0xff] }
 0x3bd   : > { %5037 = vmatpush3.bf16.xpose.msra.mxu0 %v5034_v12  ;;  %v6886_v12 = vld [vmem:[#allocation3 + $0x20] sm:$0xff] }
 0x3be   : > { %5039 = vmatprep.subr.bf16.mxu0 %v5038_v15 }
 0x3c5   : > { %5041 = vmatpush3.bf16.xpose.msra.mxu0 %v5038_v15  ;;  %v1441_v15 = vld [vmem:[%s6852_s29 + $0x58] sm:$0xff] }
 0x3c6   : > { %5043 = vmatprep.subr.bf16.mxu0 %v5042_v18 }
 0x3cd   : > { %5045 = vmatpush3.bf16.xpose.msra.mxu0 %v5042_v18  ;;  %v5066_v18 = vpack.c.bf16 %v1441_v15, %v1440_v14 }
 0x3cf   : > { %5067 = vmatprep.subr.bf16.mxu1 %v5066_v18 }
 0x3d0   : > { %5069 = vmatpush3.bf16.msra.mxu1 %v5066_v18 }
 0x3d4   : > { %4783 = vmatmul.mubr.f32.vlgmr.msra.gmra.mrb[0].mxu0 %v1447_v19  ;;  %v6896_v19 = vld [vmem:[#allocation3 + $0x28] sm:$0xff] }
 0x3d5   : > { %4785 = vmatprep.mubr.f32.mxu0 %v1448_v20 }
 0x3d8   : > { %4786 = vmatmul.mubr.f32.gmra.mrb[2].mxu0 %v1449_v21  ;;  %v6903_v21 = vld [vmem:[#allocation3 + $0x30] sm:$0xff] }
 0x3d9   : > { %4788 = vmatprep.mubr.f32.mxu0 %v1450_v22 }
 0x3dc   : > { %4789 = vmatmul.mubr.f32.gmra.mrb[4].mxu0 %v1451_v23  ;;  %v1442_v23 = vld [vmem:[%s6852_s29 + $0x60] sm:$0xff] }
 0x3dd   : > { %4791 = vmatprep.mubr.f32.mxu0 %v1452_v24  ;;  %v1443_v24 = vld [vmem:[%s6852_s29 + $0x68] sm:$0xff] }
 0x3e0   : > { %4792 = vmatmul.mubr.f32.gmra.mrb[6].mxu0 %v1453_v25 }
 0x3e1   : > { %4794 = vmatprep.mubr.f32.mxu0 %v1454_v26 }
 0x3e4   : > { %4795 = vmatmul.mubr.f32.gmra.mrb[8].mxu0 %v1455_v27  ;;  %v5070_v27 = vpack.c.bf16 %v1443_v24, %v1442_v23 }
 0x3e5   : > { %4797 = vmatprep.mubr.f32.mxu0 %v1456_v28  ;;  %v6911_v28 = vld [vmem:[#allocation3 + $0x38] sm:$0xff] }
 0x3e6   : > { %5071 = vmatprep.subr.bf16.mxu1 %v5070_v27 }
 0x3e7   : > { %5073 = vmatpush3.bf16.msra.mxu1 %v5070_v27 }
 0x3e8   : > { %4798 = vmatmul.mubr.f32.gmra.mrb[10].mxu0 %v1457_v29 }
 0x3e9   : > { %4800 = vmatprep.mubr.f32.mxu0 %v1458_v30  ;;  %v6917_v30 = vld [vmem:[#allocation3 + $0x40] sm:$0xff] }
 0x3ec   : > { %4801 = vmatmul.mubr.f32.gmra.mrb[12].mxu0 %v1459_v31 }
 0x3ed   : > { %4803 = vmatprep.mubr.f32.mxu0 %v1460_v32  ;;  %v1444_v32 = vld [vmem:[%s6852_s29 + $0x70] sm:$0xff] }
 0x3f0   : > { %4804 = vmatmul.mubr.f32.gmra.mrb[14].mxu0 %v1461_v33  ;;  %v1445_v33 = vld [vmem:[%s6852_s29 + $0x78] sm:$0xff] }
 0x3f1   : > { %v5074_v52 = vpack.c.bf16 %v1445_v33, %v1444_v32 }
 0x3f3   : > { %5075 = vmatprep.subr.bf16.mxu1 %v5074_v52 }
 0x3f4   : > { %5077 = vmatpush3.bf16.msra.mxu1 %v5074_v52 }
 0x4a7   : > { %v6803_v34 = vpop.f32.mrb[0].mxu0 }
 0x4a8   : > { %v6805_v35 = vpop.f32.mrb[1].mxu0 }
 0x4a9   : > { %1623 = vmax.xlane.f32.xlu0 %v6805_v35 }
 0x4ab   : > { %v6808_v36 = vpop.f32.mrb[2].mxu0 }
 0x4ac   : > { %1629 = vmax.xlane.f32.xlu1 %v6808_v36  ;;  %v6811_v37 = vpop.f32.mrb[3].mxu0 }
 0x4ad   : > { %1625 = vmax.xlane.f32.xlu0 %v6803_v34 }
 0x4af   : > { %v6814_v38 = vpop.f32.mrb[4].mxu0 }
 0x4b0   : > { %1627 = vmax.xlane.f32.xlu1 %v6811_v37  ;;  %v6817_v39 = vpop.f32.mrb[5].mxu0 }
 0x4b1   : > { %1631 = vmax.xlane.f32.xlu0 %v6817_v39 }
 0x4b3   : > { %v6820_v40 = vpop.f32.mrb[6].mxu0 }
 0x4b4   : > { %1633 = vmax.xlane.f32.xlu1 %v6814_v38  ;;  %v6823_v41 = vpop.f32.mrb[7].mxu0 }
 0x4b5   : > { %1635 = vmax.xlane.f32.xlu0 %v6823_v41 }
 0x4b7   : > { %v6826_v42 = vpop.f32.mrb[8].mxu0 }
 0x4b8   : > { %1637 = vmax.xlane.f32.xlu1 %v6820_v40  ;;  %v6829_v43 = vpop.f32.mrb[9].mxu0 }
 0x4b9   : > { %1639 = vmax.xlane.f32.xlu0 %v6829_v43 }
 0x4bb   : > { %v6832_v45 = vpop.f32.mrb[10].mxu0 }
 0x4bc   : > { %1641 = vmax.xlane.f32.xlu1 %v6826_v42  ;;  %v6835_v46 = vpop.f32.mrb[11].mxu0 }
 0x4bd   : > { %1643 = vmax.xlane.f32.xlu0 %v6835_v46 }
 0x4bf   : > { %v6838_v47 = vpop.f32.mrb[12].mxu0 }
 0x4c0   : > { %1645 = vmax.xlane.f32.xlu1 %v6832_v45  ;;  %v6841_v48 = vpop.f32.mrb[13].mxu0 }
 0x4c1   : > { %1647 = vmax.xlane.f32.xlu0 %v6841_v48 }
 0x4c3   : > { %v6844_v49 = vpop.f32.mrb[14].mxu0 }
 0x4c4   : > { %1649 = vmax.xlane.f32.xlu1 %v6838_v47  ;;  %v6847_v50 = vpop.f32.mrb[15].mxu0 }
 0x4c5   : > { %1651 = vmax.xlane.f32.xlu0 %v6847_v50 }
 0x4c8   : > { %1653 = vmax.xlane.f32.xlu1 %v6844_v49 }
 0x536   : > { %v1624_v0 = vpop.xlane.xlu0 %1623 }
 0x537   : > { %v6865_v1 = vmax.f32 %v6862_v63, %v1624_v0 }
 0x539   : > { %2233 = vst.msk [vmem:[#allocation3] sm:$0xff] %vm1927_vm1, %v6865_v1  ;;  %v1630_v4 = vpop.xlane.xlu1 %1629  ;;  %1721 = vperm.xlu0 %5470, %v6865_v1   ;;  %v1671_v56 = vsub.f32 %v6862_v63, %v6865_v1 }
 0x53a   : > { %v6877_v7 = vmax.f32 %v6867_v2, %v1630_v4  ;;  %v1626_v8 = vpop.xlane.xlu0 %1625 }
 0x53b   : > { %v6880_v10 = vmax.f32 %v6869_v3, %v1626_v8  ;;  %v1687_v0 = vmul.f32 1.442695, %v1671_v56 }
 0x53c   : > { %2236 = vst.msk [vmem:[#allocation3 + $0x18] sm:$0xff] %vm1927_vm1, %v6877_v7  ;;  %v1674_v63 = vsub.f32 %v6867_v2, %v6877_v7 }
 0x53d   : > { %2234 = vst.msk [vmem:[#allocation3 + $0x8] sm:$0xff] %vm1927_vm1, %v6880_v10  ;;  %v1628_v13 = vpop.xlane.xlu1 %1627  ;;  %1726 = vperm.xlu1 %5471, %v6880_v10   ;;  %5472 = vpow2.f32 %v1687_v0 }
 0x53e   : > { %v6894_v16 = vmax.f32 %v6882_v11, %v1628_v13  ;;  %v1632_v17 = vpop.xlane.xlu0 %1631  ;;  %v1693_v13 = vmul.f32 1.442695, %v1674_v63 }
 0x53f   : > { %v6899_v20 = vmax.f32 %v6886_v12, %v1632_v17  ;;  %v6955_v17 = vld [vmem:[#allocation3 + $0x78] sm:$0xff] }
 0x540   : > { %2235 = vst.msk [vmem:[#allocation3 + $0x10] sm:$0xff] %vm1927_vm1, %v6894_v16  ;;  %5474 = vpow2.f32 %v1693_v13 }
 0x541   : > { %v1634_v22 = vpop.xlane.xlu1 %1633  ;;  %1736 = vperm.xlu1 %5471, %v6877_v7   ;;  %2237 = vst.msk [vmem:[#allocation3 + $0x20] sm:$0xff] %vm1927_vm1, %v6899_v20  ;;  %v1675_v52 = vsub.f32 %v6886_v12, %v6899_v20 }
 0x542   : > { %v1660_v25 = vmax.f32 %v6896_v19, %v1634_v22  ;;  %v1636_v26 = vpop.xlane.xlu0 %1635 }
 0x543   : > { %v6914_v29 = vmax.f32 %v6903_v21, %v1636_v26  ;;  %v1695_v56 = vmul.f32 1.442695, %v1675_v52 }
 0x544   : > { %2238 = vst.msk [vmem:[#allocation3 + $0x28] sm:$0xff] %vm1927_vm1, %v1660_v25  ;;  %v1676_v2 = vsub.f32 %v6896_v19, %v1660_v25 }
 0x545   : > { %v1638_v31 = vpop.xlane.xlu1 %1637  ;;  %1731 = vperm.xlu1 %5471, %v6894_v16   ;;  %2239 = vst.msk [vmem:[#allocation3 + $0x30] sm:$0xff] %vm1927_vm1, %v6914_v29 }
 0x546   : > { %v1662_v44 = vmax.f32 %v6911_v28, %v1638_v31  ;;  %v1640_v51 = vpop.xlane.xlu0 %1639  ;;  %v1697_v22 = vmul.f32 1.442695, %v1676_v2 }
 0x547   : > { %v6926_v54 = vmax.f32 %v6917_v30, %v1640_v51 }
 0x548   : > { %2240 = vst.msk [vmem:[#allocation3 + $0x38] sm:$0xff] %vm1927_vm1, %v1662_v44  ;;  %v1678_v23 = vsub.f32 %v6911_v28, %v1662_v44  ;;  %5476 = vpow2.f32 %v1697_v22 }
 0x549   : > { %v1642_v57 = vpop.xlane.xlu1 %1641  ;;  %1746 = vperm.xlu1 %5471, %v1660_v25   ;;  %2241 = vst.msk [vmem:[#allocation3 + $0x40] sm:$0xff] %vm1927_vm1, %v6926_v54  ;;  %v1672_v25 = vsub.f32 %v6869_v3, %v6880_v10  ;;  %v1673_v3 = vsub.f32 %v6882_v11, %v6894_v16  ;;  %v6980_v10 = vpop.eup %5472 }
 0x54a   : > { %v1664_v58 = vmax.f32 %v1616_v53, %v1642_v57  ;;  %v1644_v59 = vpop.xlane.xlu0 %1643  ;;  %v1701_v28 = vmul.f32 1.442695, %v1678_v23  ;;  %v1677_v57 = vsub.f32 %v6903_v21, %v6914_v29 }
 0x54b   : > { %v6936_v61 = vmax.f32 %v6929_v55, %v1644_v59  ;;  %v1689_v32 = vmul.f32 1.442695, %v1672_v25  ;;  %v1691_v51 = vmul.f32 1.442695, %v1673_v3  ;;  %v1679_v59 = vsub.f32 %v6917_v30, %v6926_v54 }
 0x54c   : > { %2242 = vst.msk [vmem:[#allocation3 + $0x48] sm:$0xff] %vm1927_vm1, %v1664_v58  ;;  %1766 = vperm.xlu0 %5470, %v1664_v58   ;;  %v1680_v31 = vsub.f32 %v1616_v53, %v1664_v58  ;;  %5478 = vpow2.f32 %v1701_v28  ;;  %v6986_v53 = vpop.eup %5474 }
 0x54d   : > { %v1646_v1 = vpop.xlane.xlu1 %1645  ;;  %1741 = vperm.xlu1 %5471, %v6899_v20   ;;  %2243 = vst.msk [vmem:[#allocation3 + $0x50] sm:$0xff] %vm1927_vm1, %v6936_v61  ;;  %5480 = vpow2.f32 %v1689_v32  ;;  %v1699_v20 = vmul.f32 1.442695, %v1677_v57  ;;  %v1703_v21 = vmul.f32 1.442695, %v1679_v59 }
 0x54e   : > { %v1666_v4 = vmax.f32 %v1618_v60, %v1646_v1  ;;  %v1648_v5 = vpop.xlane.xlu0 %1647  ;;  %v1705_v33 = vmul.f32 1.442695, %v1680_v31 }
 0x54f   : > { %v6947_v8 = vmax.f32 %v6939_v62, %v1648_v5 }
 0x550   : > { %2244 = vst.msk [vmem:[#allocation3 + $0x58] sm:$0xff] %vm1927_vm1, %v1666_v4  ;;  %1776 = vperm.xlu0 %5470, %v1666_v4   ;;  %5482 = vpow2.f32 %v1705_v33 }
 0x551   : > { %v1650_v7 = vpop.xlane.xlu1 %1649  ;;  %1756 = vperm.xlu1 %5471, %v1662_v44   ;;  %2245 = vst.msk [vmem:[#allocation3 + $0x60] sm:$0xff] %vm1927_vm1, %v6947_v8  ;;  %v1682_v44 = vsub.f32 %v1618_v60, %v1666_v4  ;;  %5484 = vpow2.f32 %v1691_v51 }
 0x552   : > { %v1668_v14 = vmax.f32 %v1620_v6, %v1650_v7  ;;  %v1652_v15 = vpop.xlane.xlu0 %1651  ;;  %v6992_v58 = vpop.eup %5476 }
 0x553   : > { %v6958_v18 = vmax.f32 %v6950_v9, %v1652_v15  ;;  %v1709_v11 = vmul.f32 1.442695, %v1682_v44 }
 0x554   : > { %2246 = vst.msk [vmem:[#allocation3 + $0x68] sm:$0xff] %vm1927_vm1, %v1668_v14  ;;  %1786 = vperm.xlu0 %5470, %v1668_v14   ;;  %v1684_v16 = vsub.f32 %v1620_v6, %v1668_v14 }
 0x555   : > { %1751 = vperm.xlu1 %5471, %v6914_v29   ;;  %v1654_v19 = vpop.xlane.xlu1 %1653  ;;  %v1685_v24 = vsub.f32 %v6950_v9, %v6958_v18  ;;  %2247 = vst.msk [vmem:[#allocation3 + $0x70] sm:$0xff] %vm1927_vm1, %v6958_v18  ;;  %5486 = vpow2.f32 %v1709_v11  ;;  %v1681_v29 = vsub.f32 %v6929_v55, %v6936_v61 }
 0x556   : > { %v6970_v26 = vmax.f32 %v6955_v17, %v1654_v19  ;;  %v1713_v12 = vmul.f32 1.442695, %v1684_v16  ;;  %5488 = vpow2.f32 %v1695_v56  ;;  %v6998_v60 = vpop.eup %5478 }
 0x557   : > { %v7000_v0 = vpop.eup %5480  ;;  %v1707_v30 = vmul.f32 1.442695, %v1681_v29 }
 0x558   : > { %v1686_v27 = vsub.f32 %v6955_v17, %v6970_v26  ;;  %2248 = vst.msk [vmem:[#allocation3 + $0x78] sm:$0xff] %vm1927_vm1, %v6970_v26  ;;  %1796 = vperm.xlu0 %5470, %v6970_v26   ;;  %5490 = vpow2.f32 %v1713_v12 }
 0x559   : > { %1761 = vperm.xlu1 %5471, %v6926_v54   ;;  %5492 = vpow2.f32 %v1699_v20  ;;  %v1683_v54 = vsub.f32 %v6939_v62, %v6947_v8 }
 0x55a   : > { %v7006_v63 = vpop.eup %5482  ;;  %5494 = vpow2.f32 %v1703_v21 }
 0x55b   : > { %v7008_v1 = vpop.eup %5484  ;;  %5496 = vpow2.f32 %v1707_v30  ;;  %v1711_v55 = vmul.f32 1.442695, %v1683_v54 }
 0x55c   : > { %1962 = vperm.xlu0 %5470, %v6980_v10  }
 0x55d   : > { %1771 = vperm.xlu1 %5471, %v6936_v61   ;;  %5498 = vpow2.f32 %v1711_v55 }
 0x55f   : > { %v7014_v4 = vpop.eup %5486 }
 0x560   : > { %1977 = vperm.xlu0 %5470, %v6986_v53   ;;  %v7016_v5 = vpop.eup %5488 }
 0x561   : > { %1781 = vperm.xlu1 %5471, %v6947_v8  }
 0x562   : > { %v7020_v61 = vpop.eup %5490 }
 0x563   : > { %v7022_v6 = vpop.eup %5492 }
 0x564   : > { %1987 = vperm.xlu0 %5470, %v6992_v58   ;;  %v7026_v62 = vpop.eup %5494 }
 0x565   : > { %1791 = vperm.xlu1 %5471, %v6958_v18   ;;  %v7029_v8 = vpop.eup %5496 }
 0x567   : > { %v7032_v13 = vpop.eup %5498 }
 0x568   : > { %1997 = vperm.xlu0 %5470, %v6998_v60  }
 0x569   : > { %1967 = vperm.xlu1 %5471, %v7000_v0  }
 0x56c   : > { %2007 = vperm.xlu0 %5470, %v7006_v63  }
 0x56d   : > { %1972 = vperm.xlu1 %5471, %v7008_v1  }
 0x570   : > { %2017 = vperm.xlu0 %5470, %v7014_v4  }
 0x571   : > { %1982 = vperm.xlu1 %5471, %v7016_v5  }
 0x574   : > { %2027 = vperm.xlu0 %5470, %v7020_v61  }
 0x575   : > { %1992 = vperm.xlu1 %5471, %v7022_v6  }
 0x579   : > { %2002 = vperm.xlu1 %5471, %v7026_v62  }
 0x57d   : > { %2012 = vperm.xlu1 %5471, %v7029_v8  }
 0x581   : > { %2022 = vperm.xlu1 %5471, %v7032_v13  }
 0x5b8   : > { %v1722_v2 = vpop.permute.xlu0 %1721 }
 0x5b9   : > { %v1799_v7 = vsub.f32 %v6805_v35, %v1722_v2 }
 0x5bb   : > { %v1815_v14 = vmul.f32 1.442695, %v1799_v7 }
 0x5bc   : > { %v1727_v15 = vpop.permute.xlu1 %1726 }
 0x5bd   : > { %5500 = vpow2.f32 %v1815_v14  ;;  %v1800_v22 = vsub.f32 %v6803_v34, %v1727_v15 }
 0x5bf   : > { %v1817_v23 = vmul.f32 1.442695, %v1800_v22 }
 0x5c0   : > { %v1737_v19 = vpop.permute.xlu1 %1736 }
 0x5c1   : > { %5502 = vpow2.f32 %v1817_v23  ;;  %v1802_v25 = vsub.f32 %v6808_v36, %v1737_v19 }
 0x5c3   : > { %v1821_v28 = vmul.f32 1.442695, %v1802_v25 }
 0x5c4   : > { %v1732_v31 = vpop.permute.xlu1 %1731 }
 0x5c5   : > { %5504 = vpow2.f32 %v1821_v28  ;;  %v1801_v32 = vsub.f32 %v6811_v37, %v1732_v31 }
 0x5c7   : > { %v5501_v3 = vpop.eup %5500  ;;  %v1819_v33 = vmul.f32 1.442695, %v1801_v32 }
 0x5c8   : > { %v1747_v44 = vpop.permute.xlu1 %1746  ;;  %1879 = vadd.xlane.f32.xlu1 %v5501_v3  ;;  %4838 = vmatprep.mubr.f32.mxu1 %v5501_v3 }
 0x5c9   : > { %5506 = vpow2.f32 %v1819_v33  ;;  %v1804_v35 = vsub.f32 %v6814_v38, %v1747_v44 }
 0x5cb   : > { %v5503_v51 = vpop.eup %5502  ;;  %v1825_v34 = vmul.f32 1.442695, %v1804_v35  ;;  %v1767_v52 = vpop.permute.xlu0 %1766 }
 0x5cc   : > { %v1742_v11 = vpop.permute.xlu1 %1741  ;;  %1881 = vadd.xlane.f32.xlu0 %v5503_v51  ;;  %4839 = vmatmul.mubr.f32.vlgmr.msra.gmra.mrb[0].mxu1 %v5503_v51  ;;  %v1808_v20 = vsub.f32 %v6826_v42, %v1767_v52 }
 0x5cd   : > { %5508 = vpow2.f32 %v1825_v34  ;;  %v1803_v36 = vsub.f32 %v6817_v39, %v1742_v11 }
 0x5ce   : > { %v1833_v39 = vmul.f32 1.442695, %v1808_v20 }
 0x5cf   : > { %v5505_v16 = vpop.eup %5504  ;;  %v1823_v56 = vmul.f32 1.442695, %v1803_v36  ;;  %v1777_v37 = vpop.permute.xlu0 %1776 }
 0x5d0   : > { %v1757_v57 = vpop.permute.xlu1 %1756  ;;  %1885 = vadd.xlane.f32.xlu1 %v5505_v16  ;;  %v1810_v54 = vsub.f32 %v6832_v45, %v1777_v37 }
 0x5d1   : > { %5510 = vpow2.f32 %v1823_v56  ;;  %v1806_v12 = vsub.f32 %v6820_v40, %v1757_v57  ;;  %v1717_v56 = vmul.f32 1.442695, %v1686_v27 }
 0x5d2   : > { %v1837_v42 = vmul.f32 1.442695, %v1810_v54 }
 0x5d3   : > { %v5507_v38 = vpop.eup %5506  ;;  %v1829_v59 = vmul.f32 1.442695, %v1806_v12  ;;  %v1787_v29 = vpop.permute.xlu0 %1786 }
 0x5d4   : > { %v1752_v21 = vpop.permute.xlu1 %1751  ;;  %1883 = vadd.xlane.f32.xlu0 %v5507_v38  ;;  %4841 = vmatprep.mubr.f32.mxu1 %v5507_v38  ;;  %v1812_v14 = vsub.f32 %v6838_v47, %v1787_v29 }
 0x5d5   : > { %5512 = vpow2.f32 %v1829_v59  ;;  %v1805_v30 = vsub.f32 %v6823_v41, %v1752_v21  ;;  %4842 = vmatmul.mubr.f32.gmra.mrb[2].mxu1 %v5505_v16  ;;  %v1715_v16 = vmul.f32 1.442695, %v1685_v24 }
 0x5d6   : > { %v1841_v45 = vmul.f32 1.442695, %v1812_v14 }
 0x5d7   : > { %v5509_v55 = vpop.eup %5508  ;;  %v1827_v2 = vmul.f32 1.442695, %v1805_v30  ;;  %v1797_v22 = vpop.permute.xlu0 %1796 }
 0x5d8   : > { %v1762_v7 = vpop.permute.xlu1 %1761  ;;  %1889 = vadd.xlane.f32.xlu1 %v5509_v55  ;;  %v1814_v25 = vsub.f32 %v6844_v49, %v1797_v22 }
 0x5d9   : > { %5514 = vpow2.f32 %v1827_v2  ;;  %v1807_v40 = vsub.f32 %v6829_v43, %v1762_v7  ;;  %v1848_v7 = vld [vmem:[#allocation4 + $0x8] sm:$0xff] }
 0x5da   : > { %5516 = vpow2.f32 %v1833_v39  ;;  %v1845_v32 = vmul.f32 1.442695, %v1814_v25  ;;  %v1847_v39 = vld [vmem:[#allocation4] sm:$0xff] }
 0x5db   : > { %v5511_v15 = vpop.eup %5510  ;;  %v1831_v23 = vmul.f32 1.442695, %v1807_v40  ;;  %v7065_v9 = vpop.permute.xlu0 %1962  ;;  %v1863_v54 = vmul.f32 %v6980_v10, %v1847_v39  ;;  %v1857_v39 = vld [vmem:[#allocation4 + $0x50] sm:$0xff] }
 0x5dc   : > { %v1772_v19 = vpop.permute.xlu1 %1771  ;;  %1887 = vadd.xlane.f32.xlu0 %v5511_v15  ;;  %4844 = vmatprep.mubr.f32.mxu1 %v5511_v15  ;;  %v1850_v15 = vld [vmem:[#allocation4 + $0x18] sm:$0xff] }
 0x5dd   : > { %5518 = vpow2.f32 %v1831_v23  ;;  %v1809_v41 = vsub.f32 %v6835_v46, %v1772_v19  ;;  %4845 = vmatmul.mubr.f32.gmra.mrb[4].mxu1 %v5509_v55  ;;  %v1866_v23 = vmul.f32 %v6986_v53, %v1850_v15 }
 0x5de   : > { %5520 = vpow2.f32 %v1837_v42  ;;  %v1864_v42 = vmul.f32 %v7000_v0, %v1848_v7  ;;  %v1873_v7 = vmul.f32 %v7029_v8, %v1857_v39  ;;  %v1861_v8 = vld [vmem:[#allocation4 + $0x70] sm:$0xff] }
 0x5df   : > { %v5513_v28 = vpop.eup %5512  ;;  %v1835_v43 = vmul.f32 1.442695, %v1809_v41  ;;  %v7069_v24 = vpop.permute.xlu0 %1977  ;;  %v1849_v41 = vld [vmem:[#allocation4 + $0x10] sm:$0xff] }
 0x5e0   : > { %v1782_v31 = vpop.permute.xlu1 %1781  ;;  %1893 = vadd.xlane.f32.xlu1 %v5513_v28  ;;  %v1865_v10 = vmul.f32 %v7008_v1, %v1849_v41 }
 0x5e1   : > { %5522 = vpow2.f32 %v1835_v43  ;;  %v1811_v47 = vsub.f32 %v6841_v48, %v1782_v31 }
 0x5e2   : > { %5524 = vpow2.f32 %v1841_v45 }
 0x5e3   : > { %v5515_v3 = vpop.eup %5514  ;;  %v1839_v33 = vmul.f32 1.442695, %v1811_v47  ;;  %v7073_v17 = vpop.permute.xlu0 %1987  ;;  %v1851_v47 = vld [vmem:[#allocation4 + $0x20] sm:$0xff] }
 0x5e4   : > { %v5517_v44 = vpop.eup %5516  ;;  %1891 = vadd.xlane.f32.xlu0 %v5515_v3  ;;  %v1792_v35 = vpop.permute.xlu1 %1791  ;;  %4847 = vmatprep.mubr.f32.mxu1 %v5515_v3  ;;  %v1867_v53 = vmul.f32 %v7016_v5, %v1851_v47 }
 0x5e5   : > { %5526 = vpow2.f32 %v1839_v33  ;;  %v1813_v46 = vsub.f32 %v6847_v50, %v1792_v35  ;;  %1897 = vadd.xlane.f32.xlu1 %v5517_v44  ;;  %4848 = vmatmul.mubr.f32.gmra.mrb[6].mxu1 %v5513_v28  ;;  %v1852_v28 = vld [vmem:[#allocation4 + $0x28] sm:$0xff]  ;;  %v1854_v33 = vld [vmem:[#allocation4 + $0x38] sm:$0xff] }
 0x5e6   : > { %5528 = vpow2.f32 %v1845_v32  ;;  %v1868_v0 = vmul.f32 %v6992_v58, %v1852_v28  ;;  %v1870_v1 = vmul.f32 %v6998_v60, %v1854_v33  ;;  %v1947_v33 = vld [vmem:[#allocation5 + $0x18] sm:$0xff] }
 0x5e7   : > { %v5519_v49 = vpop.eup %5518  ;;  %v1843_v51 = vmul.f32 1.442695, %v1813_v46  ;;  %v7077_v27 = vpop.permute.xlu0 %1997  ;;  %v1853_v46 = vld [vmem:[#allocation4 + $0x30] sm:$0xff] }
 0x5e8   : > { %v5521_v34 = vpop.eup %5520  ;;  %1895 = vadd.xlane.f32.xlu0 %v5519_v49  ;;  %4850 = vmatprep.mubr.f32.mxu1 %v5519_v49  ;;  %v7063_v12 = vpop.permute.xlu1 %1967  ;;  %v1869_v58 = vmul.f32 %v7022_v6, %v1853_v46 }
 0x5e9   : > { %5530 = vpow2.f32 %v1843_v51  ;;  %1901 = vadd.xlane.f32.xlu1 %v5521_v34  ;;  %4851 = vmatmul.mubr.f32.gmra.mrb[8].mxu1 %v5517_v44  ;;  %v1856_v51 = vld [vmem:[#allocation4 + $0x48] sm:$0xff] }
 0x5ea   : > { %5532 = vpow2.f32 %v1715_v16 }
 0x5eb   : > { %v5523_v48 = vpop.eup %5522  ;;  %5534 = vpow2.f32 %v1717_v56  ;;  %v7081_v59 = vpop.permute.xlu0 %2007 }
 0x5ec   : > { %v5525_v52 = vpop.eup %5524  ;;  %1899 = vadd.xlane.f32.xlu0 %v5523_v48  ;;  %4853 = vmatprep.mubr.f32.mxu1 %v5523_v48  ;;  %v7067_v18 = vpop.permute.xlu1 %1972 }
 0x5ed   : > { %1905 = vadd.xlane.f32.xlu1 %v5525_v52  ;;  %4854 = vmatmul.mubr.f32.gmra.mrb[10].mxu1 %v5521_v34  ;;  %v1872_v34 = vmul.f32 %v7006_v63, %v1856_v51 }
 0x5ef   : > { %v5527_v11 = vpop.eup %5526  ;;  %v7085_v29 = vpop.permute.xlu0 %2017 }
 0x5f0   : > { %v5529_v36 = vpop.eup %5528  ;;  %1903 = vadd.xlane.f32.xlu0 %v5527_v11  ;;  %4856 = vmatprep.mubr.f32.mxu1 %v5527_v11  ;;  %v7071_v20 = vpop.permute.xlu1 %1982 }
 0x5f1   : > { %1909 = vadd.xlane.f32.xlu1 %v5529_v36  ;;  %4857 = vmatmul.mubr.f32.gmra.mrb[12].mxu1 %v5525_v52  ;;  %v1855_v52 = vld [vmem:[#allocation4 + $0x40] sm:$0xff] }
 0x5f2   : > { %v1871_v60 = vmul.f32 %v7026_v62, %v1855_v52  ;;  %v1859_v62 = vld [vmem:[#allocation4 + $0x60] sm:$0xff] }
 0x5f3   : > { %v5531_v50 = vpop.eup %5530  ;;  %v7090_v55 = vpop.permute.xlu0 %2027 }
 0x5f4   : > { %1907 = vadd.xlane.f32.xlu0 %v5531_v50  ;;  %4859 = vmatprep.mubr.f32.mxu1 %v5531_v50  ;;  %v7057_v37 = vpop.eup %5532  ;;  %v7075_v26 = vpop.permute.xlu1 %1992 }
 0x5f5   : > { %4860 = vmatmul.mubr.f32.gmra.mrb[14].mxu1 %v5529_v36  ;;  %v7060_v57 = vpop.eup %5534  ;;  %v1858_v36 = vld [vmem:[#allocation4 + $0x58] sm:$0xff] }
 0x5f6   : > { %v1874_v16 = vmul.f32 %v7014_v4, %v1858_v36 }
 0x5f8   : > { %v7079_v38 = vpop.permute.xlu1 %2002 }
 0x5fc   : > { %v7083_v21 = vpop.permute.xlu1 %2012 }
 0x600   : > { %v7087_v30 = vpop.permute.xlu1 %2022 }
 0x602   : > { %2032 = vperm.xlu1 %5471, %v7057_v37  }
 0x60a   : > { %2037 = vperm.xlu0 %5470, %v7060_v57  }
 0x655   : > { %v1880_v2 = vpop.xlane.xlu1 %1879 }
 0x656   : > { %v1911_v40 = vadd.f32 %v1880_v2, %v1863_v54  ;;  %v1860_v2 = vld [vmem:[#allocation4 + $0x68] sm:$0xff] }
 0x658   : > { %1928 = vst.msk [vmem:[#allocation4] sm:$0xff] %vm1927_vm1, %v1911_v40  ;;  %v1876_v40 = vmul.f32 %v7020_v61, %v1860_v2  ;;  %v1877_v61 = vmul.f32 %v7057_v37, %v1861_v8  ;;  %v1946_v37 = vld [vmem:[#allocation5 + $0x10] sm:$0xff] }
 0x659   : > { %v1882_v14 = vpop.xlane.xlu0 %1881 }
 0x65a   : > { %v1912_v22 = vadd.f32 %v1882_v14, %v1864_v42 }
 0x65c   : > { %1929 = vst.msk [vmem:[#allocation4 + $0x8] sm:$0xff] %vm1927_vm1, %v1912_v22  ;;  %v1862_v22 = vld [vmem:[#allocation4 + $0x78] sm:$0xff] }
 0x65d   : > { %v1886_v19 = vpop.xlane.xlu1 %1885 }
 0x65e   : > { %v1914_v45 = vadd.f32 %v1886_v19, %v1866_v23  ;;  %v1875_v23 = vmul.f32 %v7032_v13, %v1859_v62  ;;  %v1878_v19 = vmul.f32 %v7060_v57, %v1862_v22  ;;  %v1945_v13 = vld [vmem:[#allocation5 + $0x8] sm:$0xff]  ;;  %v1956_v22 = vld [vmem:[#allocation5 + $0x60] sm:$0xff] }
 0x660   : > { %1931 = vst.msk [vmem:[#allocation4 + $0x18] sm:$0xff] %vm1927_vm1, %v1914_v45 }
 0x661   : > { %v1884_v25 = vpop.xlane.xlu0 %1883 }
 0x662   : > { %v1913_v43 = vadd.f32 %v1884_v25, %v1865_v10 }
 0x664   : > { %1930 = vst.msk [vmem:[#allocation4 + $0x10] sm:$0xff] %vm1927_vm1, %v1913_v43 }
 0x665   : > { %v1890_v31 = vpop.xlane.xlu1 %1889 }
 0x666   : > { %v1916_v32 = vadd.f32 %v1890_v31, %v1868_v0  ;;  %v1944_v0 = vld [vmem:[#allocation5] sm:$0xff]  ;;  %v2041_v31 = vmul.f32 %v7063_v12, %v1945_v13  ;;  %v1949_v12 = vld [vmem:[#allocation5 + $0x28] sm:$0xff] }
 0x667   : > { %v2040_v57 = vmul.f32 %v7065_v9, %v1944_v0  ;;  %v1948_v9 = vld [vmem:[#allocation5 + $0x20] sm:$0xff] }
 0x668   : > { %1933 = vst.msk [vmem:[#allocation4 + $0x28] sm:$0xff] %vm1927_vm1, %v1916_v32 }
 0x669   : > { %v1888_v3 = vpop.xlane.xlu0 %1887 }
 0x66a   : > { %v1915_v44 = vadd.f32 %v1888_v3, %v1867_v53 }
 0x66c   : > { %1932 = vst.msk [vmem:[#allocation4 + $0x20] sm:$0xff] %vm1927_vm1, %v1915_v44  ;;  %v2043_v44 = vmul.f32 %v7069_v24, %v1947_v33  ;;  %v1951_v24 = vld [vmem:[#allocation5 + $0x38] sm:$0xff] }
 0x66d   : > { %v1894_v35 = vpop.xlane.xlu1 %1893  ;;  %v2047_v36 = vmul.f32 %v7077_v27, %v1951_v24 }
 0x66e   : > { %v1918_v49 = vadd.f32 %v1894_v35, %v1870_v1  ;;  %v2042_v1 = vmul.f32 %v7067_v18, %v1946_v37  ;;  %v1950_v18 = vld [vmem:[#allocation5 + $0x30] sm:$0xff] }
 0x670   : > { %1935 = vst.msk [vmem:[#allocation4 + $0x38] sm:$0xff] %vm1927_vm1, %v1918_v49 }
 0x671   : > { %v1892_v48 = vpop.xlane.xlu0 %1891 }
 0x672   : > { %v1898_v5 = vpop.xlane.xlu1 %1897  ;;  %v1917_v11 = vadd.f32 %v1892_v48, %v1869_v58  ;;  %v2045_v58 = vmul.f32 %v7073_v17, %v1949_v12  ;;  %v2448_v12 = vld [vmem:[#allocation19 + $0x18] sm:$0xff] (!%p4217_p4) }
 0x673   : > { %v1920_v50 = vadd.f32 %v1898_v5, %v1872_v34  ;;  %v2044_v34 = vmul.f32 %v7071_v20, %v1948_v9  ;;  %v2257_v33 = vld [vmem:[#allocation4 + $0x20] sm:$0xff] (!%p4217_p4) }
 0x674   : > { %1934 = vst.msk [vmem:[#allocation4 + $0x30] sm:$0xff] %vm1927_vm1, %v1917_v11 }
 0x675   : > { %1937 = vst.msk [vmem:[#allocation4 + $0x48] sm:$0xff] %vm1927_vm1, %v1920_v50  ;;  %v1896_v56 = vpop.xlane.xlu0 %1895  ;;  %v1953_v50 = vld [vmem:[#allocation5 + $0x48] sm:$0xff] }
 0x676   : > { %v1902_v54 = vpop.xlane.xlu1 %1901  ;;  %v1919_v6 = vadd.f32 %v1896_v56, %v1871_v60  ;;  %v2046_v60 = vmul.f32 %v7075_v26, %v1950_v18  ;;  %v1952_v56 = vld [vmem:[#allocation5 + $0x40] sm:$0xff]  ;;  %v2049_v20 = vmul.f32 %v7081_v59, %v1953_v50  ;;  %v1957_v26 = vld [vmem:[#allocation5 + $0x68] sm:$0xff]  ;;  %v2451_v18 = vld [vmem:[#allocation19 + $0x30] sm:$0xff] (!%p4217_p4) }
 0x677   : > { %v1922_v63 = vadd.f32 %v1902_v54, %v1874_v16  ;;  %v2048_v2 = vmul.f32 %v7079_v38, %v1952_v56  ;;  %v2053_v38 = vmul.f32 %v7090_v55, %v1957_v26  ;;  %v2260_v37 = vld [vmem:[#allocation4 + $0x38] sm:$0xff] (!%p4217_p4) }
 0x678   : > { %1936 = vst.msk [vmem:[#allocation4 + $0x40] sm:$0xff] %vm1927_vm1, %v1919_v6  ;;  %v1955_v6 = vld [vmem:[#allocation5 + $0x58] sm:$0xff] }
 0x679   : > { %1939 = vst.msk [vmem:[#allocation4 + $0x58] sm:$0xff] %vm1927_vm1, %v1922_v63  ;;  %v1900_v42 = vpop.xlane.xlu0 %1899  ;;  %v2051_v62 = vmul.f32 %v7085_v29, %v1955_v6  ;;  %v1958_v29 = vld [vmem:[#allocation5 + $0x70] sm:$0xff] }
 0x67a   : > { %v1906_v14 = vpop.xlane.xlu1 %1905  ;;  %v1921_v15 = vadd.f32 %v1900_v42, %v1873_v7  ;;  %v1954_v7 = vld [vmem:[#allocation5 + $0x50] sm:$0xff] }
 0x67b   : > { %v1924_v4 = vadd.f32 %v1906_v14, %v1876_v40  ;;  %v2050_v14 = vmul.f32 %v7083_v21, %v1954_v7 }
 0x67c   : > { %1938 = vst.msk [vmem:[#allocation4 + $0x50] sm:$0xff] %vm1927_vm1, %v1921_v15 }
 0x67d   : > { %1941 = vst.msk [vmem:[#allocation4 + $0x68] sm:$0xff] %vm1927_vm1, %v1924_v4  ;;  %v1904_v41 = vpop.xlane.xlu0 %1903 }
 0x67e   : > { %v1910_v45 = vpop.xlane.xlu1 %1909  ;;  %v1923_v10 = vadd.f32 %v1904_v41, %v1875_v23  ;;  %v1959_v41 = vld [vmem:[#allocation5 + $0x78] sm:$0xff] }
 0x67f   : > { %v1926_v25 = vadd.f32 %v1910_v45, %v1878_v19  ;;  %v2052_v19 = vmul.f32 %v7087_v30, %v1956_v22  ;;  %v2255_v30 = vld [vmem:[#allocation4 + $0x10] sm:$0xff] (!%p4217_p4)  ;;  %v7142_v9 = vld [vmem:[#allocation4 + $0x40] sm:$0xff] (!%p4217_p4) }
 0x680   : > { %1940 = vst.msk [vmem:[#allocation4 + $0x60] sm:$0xff] %vm1927_vm1, %v1923_v10  ;;  %5538 = vrcp.f32 (!%p4217_p4), %v2255_v30 }
 0x681   : > { %1943 = vst.msk [vmem:[#allocation4 + $0x78] sm:$0xff] %vm1927_vm1, %v1926_v25  ;;  %v1908_v28 = vpop.xlane.xlu0 %1907 }
 0x682   : > { %v1925_v43 = vadd.f32 %v1908_v28, %v1877_v61  ;;  %v2033_v10 = vpop.permute.xlu1 %2032 }
 0x683   : > { %v7149_v24 = vld [vmem:[#allocation4 + $0x50] sm:$0xff] (!%p4217_p4) }
 0x684   : > { %1942 = vst.msk [vmem:[#allocation4 + $0x70] sm:$0xff] %vm1927_vm1, %v1925_v43  ;;  %v2054_v43 = vmul.f32 %v2033_v10, %v1958_v29  ;;  %v2455_v10 = vld [vmem:[#allocation19 + $0x50] sm:$0xff] (!%p4217_p4) }
 0x688   : > { %v2268_v29 = vld [vmem:[#allocation4 + $0x78] sm:$0xff] (!%p4217_p4) }
 0x689   : > { %v2038_v8 = vpop.permute.xlu0 %2037 }
 0x68a   : > { %v2055_v28 = vmul.f32 %v2038_v8, %v1959_v41 }
 0x69f   : > { %v4840_v47 = vpop.f32.mrb[0].mxu1 }
 0x6a0   : > { %v2202_v32 = vadd.f32 %v4840_v47, %v2041_v31  ;;  %v2122_v53 = vpop.f32.mrb[1].mxu1  ;;  %v2256_v47 = vld [vmem:[#allocation4 + $0x18] sm:$0xff] (!%p4217_p4) }
 0x6a1   : > { %v2201_v3 = vadd.f32 %v2122_v53, %v2040_v57  ;;  %v2253_v57 = vld [vmem:[#allocation4] sm:$0xff] (!%p4217_p4)  ;;  %v2254_v53 = vld [vmem:[#allocation4 + $0x8] sm:$0xff] (!%p4217_p4) }
 0x6a2   : > { %2218 = vst [vmem:[#allocation5 + $0x8] sm:$0xff] %v2202_v32  ;;  %v6068_v32 = vmov (!%p4217_p4), 0   ;;  %5540 = vrcp.f32 (!%p4217_p4), %v2253_v57 }
 0x6a3   : > { %2217 = vst [vmem:[#allocation5] sm:$0xff] %v2201_v3  ;;  %5537 = vset.pattern.permute.xlu1 (!%p4217_p4), %v6068_v32  ;;  %5536 = vset.pattern.permute.xlu0 (!%p4217_p4), %v6068_v32  ;;  %v2258_v3 = vld [vmem:[#allocation4 + $0x28] sm:$0xff] (!%p4217_p4)  ;;  %5542 = vrcp.f32 (!%p4217_p4), %v2256_v47 }
 0x6a4   : > { %5544 = vrcp.f32 (!%p4217_p4), %v2254_v53 }
 0x6a5   : > { %5546 = vrcp.f32 (!%p4217_p4), %v2258_v3 }
 0x6a6   : > { %5548 = vrcp.f32 (!%p4217_p4), %v2257_v33 }
 0x6a7   : > { %5550 = vrcp.f32 (!%p4217_p4), %v2260_v37 }
 0x6a8   : > { %v4843_v35 = vpop.f32.mrb[2].mxu1 }
 0x6a9   : > { %v2204_v46 = vadd.f32 %v4843_v35, %v2043_v44  ;;  %v2132_v49 = vpop.f32.mrb[3].mxu1  ;;  %v7138_v44 = vld [vmem:[#allocation4 + $0x30] sm:$0xff] (!%p4217_p4)  ;;  %v2446_v35 = vld [vmem:[#allocation19 + $0x8] sm:$0xff] (!%p4217_p4) }
 0x6aa   : > { %v2203_v51 = vadd.f32 %v2132_v49, %v2042_v1  ;;  %v2445_v1 = vld [vmem:[#allocation19] sm:$0xff] (!%p4217_p4)  ;;  %5552 = vrcp.f32 (!%p4217_p4), %v7138_v44 }
 0x6ab   : > { %2220 = vst [vmem:[#allocation5 + $0x18] sm:$0xff] %v2204_v46  ;;  %v7140_v46 = vld [vmem:[#allocation4 + $0x48] sm:$0xff] (!%p4217_p4)  ;;  %v5078_v49 = vpack.c.bf16 (!%p4217_p4), %v2446_v35, %v2445_v1 }
 0x6ac   : > { %2219 = vst [vmem:[#allocation5 + $0x10] sm:$0xff] %v2203_v51  ;;  %v2447_v51 = vld [vmem:[#allocation19 + $0x10] sm:$0xff] (!%p4217_p4)  ;;  %5554 = vrcp.f32 (!%p4217_p4), %v7140_v46 }
 0x6ad   : > { %5079 = vmatprep.subr.bf16.mxu0 (!%p4217_p4), %v5078_v49  ;;  %5556 = vrcp.f32 (!%p4217_p4), %v7142_v9 }
 0x6ae   : > { %5081 = vmatpush3.bf16.msra.mxu0 (!%p4217_p4), %v5078_v49 }
 0x6b0   : > { %v4846_v48 = vpop.f32.mrb[4].mxu1 }
 0x6b1   : > { %v2206_v52 = vadd.f32 %v4846_v48, %v2045_v58  ;;  %v2142_v5 = vpop.f32.mrb[5].mxu1  ;;  %v5082_v58 = vpack.c.bf16 (!%p4217_p4), %v2448_v12, %v2447_v51  ;;  %v2450_v48 = vld [vmem:[#allocation19 + $0x28] sm:$0xff] (!%p4217_p4) }
 0x6b2   : > { %v2205_v11 = vadd.f32 %v2142_v5, %v2044_v34  ;;  %v2449_v34 = vld [vmem:[#allocation19 + $0x20] sm:$0xff] (!%p4217_p4) }
 0x6b3   : > { %2222 = vst [vmem:[#allocation5 + $0x28] sm:$0xff] %v2206_v52  ;;  %v7147_v52 = vld [vmem:[#allocation4 + $0x58] sm:$0xff] (!%p4217_p4)  ;;  %5083 = vmatprep.subr.bf16.mxu0 (!%p4217_p4), %v5082_v58  ;;  %v5086_v5 = vpack.c.bf16 (!%p4217_p4), %v2450_v48, %v2449_v34  ;;  %v2459_v48 = vld [vmem:[#allocation19 + $0x70] sm:$0xff] (!%p4217_p4) }
 0x6b4   : > { %2221 = vst [vmem:[#allocation5 + $0x20] sm:$0xff] %v2205_v11  ;;  %v5539_v11 = vpop.eup (!%p4217_p4), %5538  ;;  %5558 = vrcp.f32 (!%p4217_p4), %v7147_v52  ;;  %5085 = vmatpush3.bf16.msra.mxu0 (!%p4217_p4), %v5082_v58 }
 0x6b5   : > { %v5541_v50 = vpop.eup (!%p4217_p4), %5540  ;;  %5560 = vrcp.f32 (!%p4217_p4), %v7149_v24  ;;  %5087 = vmatprep.subr.bf16.mxu0 (!%p4217_p4), %v5086_v5 }
 0x6b6   : > { %v2285_v56 = vmul.f32 (!%p4217_p4), %v5541_v50, %v2253_v57 }
 0x6b8   : > { %v4849_v16 = vpop.f32.mrb[6].mxu1  ;;  %5089 = vmatpush3.bf16.msra.mxu0 (!%p4217_p4), %v5086_v5  ;;  %v2460_v5 = vld [vmem:[#allocation19 + $0x78] sm:$0xff] (!%p4217_p4) }
 0x6b9   : > { %v2208_v39 = vadd.f32 %v4849_v16, %v2047_v36  ;;  %v2152_v54 = vpop.f32.mrb[7].mxu1  ;;  %v2452_v36 = vld [vmem:[#allocation19 + $0x38] sm:$0xff] (!%p4217_p4)  ;;  %v5543_v16 = vpop.eup (!%p4217_p4), %5542 }
 0x6ba   : > { %v2207_v17 = vadd.f32 %v2152_v54, %v2046_v60  ;;  %v2287_v60 = vmul.f32 (!%p4217_p4), %v5539_v11, %v2255_v30  ;;  %v2454_v54 = vld [vmem:[#allocation19 + $0x48] sm:$0xff] (!%p4217_p4)  ;;  %v2288_v6 = vmul.f32 (!%p4217_p4), %v5543_v16, %v2256_v47 }
 0x6bb   : > { %2224 = vst [vmem:[#allocation5 + $0x38] sm:$0xff] %v2208_v39  ;;  %v2453_v39 = vld [vmem:[#allocation19 + $0x40] sm:$0xff] (!%p4217_p4) }
 0x6bc   : > { %2223 = vst [vmem:[#allocation5 + $0x30] sm:$0xff] %v2207_v17  ;;  %v4852_v63 = vpop.f32.mrb[8].mxu1  ;;  %v5545_v17 = vpop.eup (!%p4217_p4), %5544  ;;  %v5094_v22 = vpack.c.bf16 (!%p4217_p4), %v2454_v54, %v2453_v39 }
 0x6bd   : > { %v2210_v40 = vadd.f32 %v4852_v63, %v2049_v20  ;;  %v2162_v42 = vpop.f32.mrb[9].mxu1  ;;  %v2303_v20 = vsub.f32 (!%p4217_p4), 2.0, %v2287_v60  ;;  %v5090_v63 = vpack.c.bf16 (!%p4217_p4), %v2452_v36, %v2451_v18  ;;  %v5547_v7 = vpop.eup (!%p4217_p4), %5546 }
 0x6be   : > { %v2209_v27 = vadd.f32 %v2162_v42, %v2048_v2  ;;  %v7153_v2 = vld [vmem:[#allocation4 + $0x68] sm:$0xff] (!%p4217_p4)  ;;  %v2286_v42 = vmul.f32 (!%p4217_p4), %v5545_v17, %v2254_v53 }
 0x6bf   : > { %2226 = vst [vmem:[#allocation5 + $0x48] sm:$0xff] %v2210_v40  ;;  %v2301_v40 = vsub.f32 (!%p4217_p4), 2.0, %v2285_v56  ;;  %v2319_v26 = vmul.f32 (!%p4217_p4), %v5539_v11, %v2303_v20  ;;  %5562 = vrcp.f32 (!%p4217_p4), %v7153_v2  ;;  %5091 = vmatprep.subr.bf16.mxu0 (!%p4217_p4), %v5090_v63 }
 0x6c0   : > { %2225 = vst [vmem:[#allocation5 + $0x40] sm:$0xff] %v2209_v27  ;;  %v4855_v15 = vpop.f32.mrb[10].mxu1  ;;  %v7155_v27 = vld [vmem:[#allocation4 + $0x60] sm:$0xff] (!%p4217_p4)  ;;  %5093 = vmatpush3.bf16.msra.mxu0 (!%p4217_p4), %v5090_v63 }
 0x6c1   : > { %v2212_v59 = vadd.f32 %v4855_v15, %v2051_v62  ;;  %v2172_v4 = vpop.f32.mrb[11].mxu1  ;;  %v5549_v62 = vpop.eup (!%p4217_p4), %5548  ;;  %v2290_v15 = vmul.f32 (!%p4217_p4), %v5547_v7, %v2258_v3  ;;  %2361 = vperm.xlu1 (!%p4217_p4), %5537, %v2319_v26   ;;  %5564 = vrcp.f32 (!%p4217_p4), %v7155_v27  ;;  %5095 = vmatprep.subr.bf16.mxu0 (!%p4217_p4), %v5094_v22  ;;  %v2333_v26 = vld [vmem:[#allocation5] sm:$0xff] (!%p4217_p4) }
 0x6c2   : > { %v2211_v23 = vadd.f32 %v2172_v4, %v2050_v14  ;;  %v2304_v14 = vsub.f32 (!%p4217_p4), 2.0, %v2288_v6  ;;  %v2317_v4 = vmul.f32 (!%p4217_p4), %v5541_v50, %v2301_v40  ;;  %5566 = vrcp.f32 (!%p4217_p4), %v2268_v29 }
 0x6c3   : > { %2228 = vst [vmem:[#allocation5 + $0x58] sm:$0xff] %v2212_v59  ;;  %v5551_v59 = vpop.eup (!%p4217_p4), %5550  ;;  %v2306_v8 = vsub.f32 (!%p4217_p4), 2.0, %v2290_v15  ;;  %v5106_v50 = vpack.c.bf16 (!%p4217_p4), %v2460_v5, %v2459_v48 }
 0x6c4   : > { %2227 = vst [vmem:[#allocation5 + $0x50] sm:$0xff] %v2211_v23  ;;  %v4858_v45 = vpop.f32.mrb[12].mxu1  ;;  %v2302_v23 = vsub.f32 (!%p4217_p4), 2.0, %v2286_v42  ;;  %v2320_v41 = vmul.f32 (!%p4217_p4), %v5543_v16, %v2304_v14  ;;  %2351 = vperm.xlu0 (!%p4217_p4), %5536, %v2317_v4   ;;  %5097 = vmatpush3.bf16.msra.mxu0 (!%p4217_p4), %v5094_v22  ;;  %v2335_v22 = vld [vmem:[#allocation5 + $0x10] sm:$0xff] (!%p4217_p4)  ;;  %v2334_v4 = vld [vmem:[#allocation5 + $0x8] sm:$0xff] (!%p4217_p4) }
 0x6c5   : > { %v2214_v25 = vadd.f32 %v4858_v45, %v2053_v38  ;;  %v2182_v61 = vpop.f32.mrb[13].mxu1  ;;  %v2289_v38 = vmul.f32 (!%p4217_p4), %v5549_v62, %v2257_v33  ;;  %v2292_v45 = vmul.f32 (!%p4217_p4), %v5551_v59, %v2260_v37  ;;  %v2457_v33 = vld [vmem:[#allocation19 + $0x60] sm:$0xff] (!%p4217_p4)  ;;  %v2458_v37 = vld [vmem:[#allocation19 + $0x68] sm:$0xff] (!%p4217_p4) }
 0x6c6   : > { %v2213_v21 = vadd.f32 %v2182_v61, %v2052_v19  ;;  %2252 = sbr.rel (%p4217_p4) target bundleno = 3221 (0xc95), region = 132  ;;  %v5553_v19 = vpop.eup (!%p4217_p4), %5552  ;;  %2366 = vperm.xlu1 (!%p4217_p4), %5537, %v2320_v41   ;;  %v5102_v51 = vpack.c.bf16 (!%p4217_p4), %v2458_v37, %v2457_v33 }
 0x6c7   : > { %2230 = vst [vmem:[#allocation5 + $0x68] sm:$0xff] %v2214_v25  ;;  %v2456_v25 = vld [vmem:[#allocation19 + $0x58] sm:$0xff] (!%p4217_p4)  ;;  %v5555_v61 = vpop.eup (!%p4217_p4), %5554  ;;  %v2308_v30 = vsub.f32 (!%p4217_p4), 2.0, %v2292_v45  ;;  %v2337_v45 = vld [vmem:[#allocation5 + $0x20] sm:$0xff] (!%p4217_p4) }
 0x6c8   : > { %2229 = vst [vmem:[#allocation5 + $0x60] sm:$0xff] %v2213_v21  ;;  %v4861_v13 = vpop.f32.mrb[14].mxu1  ;;  %v2318_v21 = vmul.f32 (!%p4217_p4), %v5545_v17, %v2302_v23  ;;  %v2294_v57 = vmul.f32 (!%p4217_p4), %v5555_v61, %v7140_v46 }
 0x6c9   : > { %v2216_v0 = vadd.f32 %v4861_v13, %v2055_v28  ;;  %v2192_v31 = vpop.f32.mrb[15].mxu1  ;;  %v2305_v28 = vsub.f32 (!%p4217_p4), 2.0, %v2289_v38  ;;  %v2267_v13 = vld [vmem:[#allocation4 + $0x70] sm:$0xff] (!%p4217_p4)  ;;  %v2324_v1 = vmul.f32 (!%p4217_p4), %v5551_v59, %v2308_v30  ;;  %v2341_v30 = vld [vmem:[#allocation5 + $0x40] sm:$0xff] (!%p4217_p4) }
 0x6ca   : > { %v2215_v55 = vadd.f32 %v2192_v31, %v2054_v43  ;;  %v2291_v43 = vmul.f32 (!%p4217_p4), %v5553_v19, %v7138_v44  ;;  %v5098_v31 = vpack.c.bf16 (!%p4217_p4), %v2456_v25, %v2455_v10  ;;  %5568 = vrcp.f32 (!%p4217_p4), %v2267_v13  ;;  %2356 = vperm.xlu0 (!%p4217_p4), %5536, %v2318_v21   ;;  %v2338_v21 = vld [vmem:[#allocation5 + $0x28] sm:$0xff] (!%p4217_p4) }
 0x6cb   : > { %2232 = vst [vmem:[#allocation5 + $0x78] sm:$0xff] %v2216_v0  ;;  %v5557_v0 = vpop.eup (!%p4217_p4), %5556  ;;  %v2321_v32 = vmul.f32 (!%p4217_p4), %v5549_v62, %v2305_v28  ;;  %v2310_v35 = vsub.f32 (!%p4217_p4), 2.0, %v2294_v57  ;;  %v2339_v28 = vld [vmem:[#allocation5 + $0x30] sm:$0xff] (!%p4217_p4) }
 0x6cc   : > { %2231 = vst [vmem:[#allocation5 + $0x70] sm:$0xff] %v2215_v55  ;;  %v2322_v55 = vmul.f32 (!%p4217_p4), %v5547_v7, %v2306_v8  ;;  %v5559_v47 = vpop.eup (!%p4217_p4), %5558  ;;  %v2307_v53 = vsub.f32 (!%p4217_p4), 2.0, %v2291_v43  ;;  %v2293_v3 = vmul.f32 (!%p4217_p4), %v5557_v0, %v7142_v9  ;;  %5099 = vmatprep.subr.bf16.mxu0 (!%p4217_p4), %v5098_v31  ;;  %v2343_v33 = vld [vmem:[#allocation5 + $0x50] sm:$0xff] (!%p4217_p4) }
 0x6cd   : > { %v5561_v44 = vpop.eup %5560  ;;  %v2296_v49 = vmul.f32 %v5559_v47, %v7147_v52  ;;  %5101 = vmatpush3.bf16.msra.mxu0 %v5098_v31  ;;  %v2326_v11 = vmul.f32 %v5555_v61, %v2310_v35 }
 0x6ce   : > { %2376 = vperm.xlu1 %5537, %v2322_v55   ;;  %v5563_v46 = vpop.eup %5562  ;;  %2371 = vperm.xlu0 %5536, %v2321_v32   ;;  %v2323_v12 = vmul.f32 %v5553_v19, %v2307_v53  ;;  %v2309_v58 = vsub.f32 2.0, %v2293_v3  ;;  %v2295_v34 = vmul.f32 %v5561_v44, %v7149_v24  ;;  %v2336_v19 = vld [vmem:[#allocation5 + $0x18] sm:$0xff]  ;;  %v2342_v3 = vld [vmem:[#allocation5 + $0x48] sm:$0xff] }
 0x6cf   : > { %v5565_v9 = vpop.eup %5564  ;;  %v2312_v18 = vsub.f32 2.0, %v2296_v49  ;;  %v2298_v36 = vmul.f32 %v5563_v46, %v7153_v2  ;;  %5103 = vmatprep.subr.bf16.mxu0 %v5102_v51  ;;  %v2340_v55 = vld [vmem:[#allocation5 + $0x38] sm:$0xff]  ;;  %v2346_v48 = vld [vmem:[#allocation5 + $0x68] sm:$0xff] }
 0x6d0   : > { %v5567_v52 = vpop.eup %5566  ;;  %v2325_v60 = vmul.f32 %v5557_v0, %v2309_v58  ;;  %v2311_v16 = vsub.f32 2.0, %v2295_v34  ;;  %v2297_v56 = vmul.f32 %v5565_v9, %v7155_v27  ;;  %v2344_v49 = vld [vmem:[#allocation5 + $0x58] sm:$0xff] }
 0x6d1   : > { %5105 = vmatpush3.bf16.msra.mxu0 %v5102_v51  ;;  %v2328_v24 = vmul.f32 %v5559_v47, %v2312_v18  ;;  %v2314_v54 = vsub.f32 2.0, %v2298_v36  ;;  %v2300_v17 = vmul.f32 %v5567_v52, %v2268_v29  ;;  %v2345_v51 = vld [vmem:[#allocation5 + $0x60] sm:$0xff] }
 0x6d2   : > { %2386 = vperm.xlu1 %5537, %v2324_v1   ;;  %2381 = vperm.xlu0 %5536, %v2323_v12   ;;  %v2327_v20 = vmul.f32 %v5561_v44, %v2311_v16  ;;  %v2313_v6 = vsub.f32 2.0, %v2297_v56  ;;  %v2348_v36 = vld [vmem:[#allocation5 + $0x78] sm:$0xff]  ;;  %v2614_v56 = vld [vmem:[%s6641_s30 + $0x8] sm:$0xff] }
 0x6d3   : > { %5107 = vmatprep.subr.bf16.mxu0 %v5106_v50  ;;  %v2330_v2 = vmul.f32 %v5563_v46, %v2314_v54  ;;  %v2316_v7 = vsub.f32 2.0, %v2300_v17  ;;  %v2347_v5 = vld [vmem:[#allocation5 + $0x70] sm:$0xff]  ;;  %v2613_v54 = vld [vmem:[%s6641_s30] sm:$0xff] }
 0x6d4   : > { %v5569_v39 = vpop.eup %5568  ;;  %v2329_v40 = vmul.f32 %v5565_v9, %v2313_v6 }
 0x6d5   : > { %v2299_v63 = vmul.f32 %v5569_v39, %v2267_v13  ;;  %5109 = vmatpush3.bf16.msra.mxu0 %v5106_v50  ;;  %v2332_v27 = vmul.f32 %v5567_v52, %v2316_v7  ;;  %v2615_v7 = vld [vmem:[%s6641_s30 + $0x10] sm:$0xff] }
 0x6d6   : > { %2396 = vperm.xlu1 %5537, %v2326_v11   ;;  %2391 = vperm.xlu0 %5536, %v2325_v60   ;;  %v7169_v60 = vld [vmem:[%s8085_s15] ss:$0 sm:$0xff] }
 0x6d7   : > { %v2315_v42 = vsub.f32 2.0, %v2299_v63 }
 0x6d9   : > { %v2331_v62 = vmul.f32 %v5569_v39, %v2315_v42 }
 0x6da   : > { %2406 = vperm.xlu1 %5537, %v2328_v24   ;;  %2401 = vperm.xlu0 %5536, %v2327_v20  }
 0x6de   : > { %2416 = vperm.xlu1 %5537, %v2330_v2   ;;  %2411 = vperm.xlu0 %5536, %v2329_v40  }
 0x6e2   : > { %2426 = vperm.xlu1 %5537, %v2332_v27   ;;  %2421 = vperm.xlu0 %5536, %v2331_v62  }
 0x740   : > { %v2362_v14 = vpop.permute.xlu1 %2361 }
 0x741   : > { %v2431_v38 = vmul.f32 %v2362_v14, %v2335_v22  ;;  %v2616_v14 = vld [vmem:[%s6641_s30 + $0x18] sm:$0xff] }
 0x743   : > { %v2352_v15 = vpop.permute.xlu0 %2351 }
 0x744   : > { %v2429_v59 = vmul.f32 %v2352_v15, %v2333_v26  ;;  %v2617_v15 = vld [vmem:[%s6641_s30 + $0x20] sm:$0xff] }
 0x745   : > { %v2367_v23 = vpop.permute.xlu1 %2366 }
 0x746   : > { %4894 = vmatprep.mubr.f32.mxu0 %v2429_v59  ;;  %v2432_v29 = vmul.f32 %v2367_v23, %v2336_v19 }
 0x749   : > { %v2357_v41 = vpop.permute.xlu0 %2356 }
 0x74a   : > { %v2430_v8 = vmul.f32 %v2357_v41, %v2334_v4  ;;  %v2618_v41 = vld [vmem:[%s6641_s30 + $0x28] sm:$0xff] }
 0x74c   : > { %4895 = vmatmul.mubr.f32.vlgmr.msra.gmra.mrb[0].mxu0 %v2430_v8  ;;  %v2619_v8 = vld [vmem:[%s6641_s30 + $0x30] sm:$0xff] }
 0x74d   : > { %v2377_v10 = vpop.permute.xlu1 %2376  ;;  %v2372_v25 = vpop.permute.xlu0 %2371  ;;  %4897 = vmatprep.mubr.f32.mxu0 %v2431_v38 }
 0x74e   : > { %v2433_v61 = vmul.f32 %v2372_v25, %v2337_v45  ;;  %v2434_v0 = vmul.f32 %v2377_v10, %v2338_v21 }
 0x750   : > { %4898 = vmatmul.mubr.f32.gmra.mrb[2].mxu0 %v2432_v29 }
 0x751   : > { %v2387_v43 = vpop.permute.xlu1 %2386  ;;  %4900 = vmatprep.mubr.f32.mxu0 %v2433_v61  ;;  %v2382_v13 = vpop.permute.xlu0 %2381 }
 0x752   : > { %v2435_v31 = vmul.f32 %v2382_v13, %v2339_v28  ;;  %v2436_v32 = vmul.f32 %v2387_v43, %v2340_v55  ;;  %v2620_v28 = vld [vmem:[%s6641_s30 + $0x38] sm:$0xff]  ;;  %v2621_v43 = vld [vmem:[%s6641_s30 + $0x40] sm:$0xff] }
 0x754   : > { %4901 = vmatmul.mubr.f32.gmra.mrb[4].mxu0 %v2434_v0 }
 0x755   : > { %v2397_v57 = vpop.permute.xlu1 %2396  ;;  %4903 = vmatprep.mubr.f32.mxu0 %v2435_v31  ;;  %v2392_v47 = vpop.permute.xlu0 %2391 }
 0x756   : > { %v2437_v53 = vmul.f32 %v2392_v47, %v2341_v30  ;;  %v2438_v1 = vmul.f32 %v2397_v57, %v2342_v3  ;;  %v2622_v47 = vld [vmem:[%s6641_s30 + $0x48] sm:$0xff] }
 0x758   : > { %4904 = vmatmul.mubr.f32.gmra.mrb[6].mxu0 %v2436_v32  ;;  %v2623_v32 = vld [vmem:[%s6641_s30 + $0x50] sm:$0xff] }
 0x759   : > { %v2407_v37 = vpop.permute.xlu1 %2406  ;;  %4906 = vmatprep.mubr.f32.mxu0 %v2437_v53  ;;  %v2402_v44 = vpop.permute.xlu0 %2401 }
 0x75a   : > { %v2439_v35 = vmul.f32 %v2402_v44, %v2343_v33  ;;  %v2440_v58 = vmul.f32 %v2407_v37, %v2344_v49  ;;  %v2625_v49 = vld [vmem:[%s6641_s30 + $0x60] sm:$0xff] }
 0x75c   : > { %4907 = vmatmul.mubr.f32.gmra.mrb[8].mxu0 %v2438_v1 }
 0x75d   : > { %v2417_v46 = vpop.permute.xlu1 %2416  ;;  %4909 = vmatprep.mubr.f32.mxu0 %v2439_v35  ;;  %v2412_v12 = vpop.permute.xlu0 %2411  ;;  %v2624_v35 = vld [vmem:[%s6641_s30 + $0x58] sm:$0xff] }
 0x75e   : > { %v2441_v34 = vmul.f32 %v2412_v12, %v2345_v51  ;;  %v2442_v11 = vmul.f32 %v2417_v46, %v2346_v48 }
 0x760   : > { %4910 = vmatmul.mubr.f32.gmra.mrb[10].mxu0 %v2440_v58 }
 0x761   : > { %4912 = vmatprep.mubr.f32.mxu0 %v2441_v34  ;;  %v2422_v9 = vpop.permute.xlu0 %2421  ;;  %v2427_v50 = vpop.permute.xlu1 %2426 }
 0x762   : > { %v2443_v18 = vmul.f32 %v2422_v9, %v2347_v5  ;;  %v2444_v52 = vmul.f32 %v2427_v50, %v2348_v36  ;;  %v2626_v5 = vld [vmem:[%s6641_s30 + $0x68] sm:$0xff]  ;;  %v2627_v9 = vld [vmem:[%s6641_s30 + $0x70] sm:$0xff] }
 0x764   : > { %4913 = vmatmul.mubr.f32.gmra.mrb[12].mxu0 %v2442_v11 }
 0x765   : > { %4915 = vmatprep.mubr.f32.mxu0 %v2443_v18 }
 0x768   : > { %4916 = vmatmul.mubr.f32.gmra.mrb[14].mxu0 %v2444_v52  ;;  %v2628_v52 = vld [vmem:[%s6641_s30 + $0x78] sm:$0xff] }
 0x81f   : > { %v4896_v16 = vpop.f32.mrb[0].mxu0 }
 0x820   : > { %v2540_v39 = vadd.f32 %v4896_v16, %v7169_v60  ;;  %v2534_v24 = vpop.f32.mrb[1].mxu0 }
 0x821   : > { %v2535_v17 = vadd.f32 %v7169_v60, %v2534_v24  ;;  %v2871_v24 = vld [vmem:[#allocation20 + $0x18] sm:$0xff] }
 0x822   : > { %v7175_v20 = vadd.f32 %v2614_v56, %v2540_v39  ;;  %v2869_v56 = vld [vmem:[#allocation20 + $0x8] sm:$0xff] }
 0x823   : > { %v4899_v6 = vpop.f32.mrb[2].mxu0  ;;  %v7177_v63 = vadd.f32 %v2613_v54, %v2535_v17  ;;  %v2873_v39 = vld [vmem:[#allocation20 + $0x28] sm:$0xff]  ;;  %v2875_v17 = vld [vmem:[#allocation20 + $0x38] sm:$0xff] }
 0x824   : > { %2649 = vadd.xlane.f32.xlu1 %v7175_v20  ;;  %v2544_v2 = vpop.f32.mrb[3].mxu0  ;;  %v2550_v42 = vadd.f32 %v4899_v6, %v7169_v60  ;;  %v5110_v54 = vpack.c.bf16 %v2873_v39, %v2869_v56  ;;  %v2868_v6 = vld [vmem:[#allocation20] sm:$0xff] }
 0x825   : > { %v2545_v40 = vadd.f32 %v7169_v60, %v2544_v2  ;;  %2647 = vadd.xlane.f32.xlu0 %v7177_v63  ;;  %v5142_v2 = vpack.c.bf16 %v2875_v17, %v2871_v24 }
 0x826   : > { %v7191_v23 = vadd.f32 %v2616_v14, %v2550_v42  ;;  %v2874_v42 = vld [vmem:[#allocation20 + $0x30] sm:$0xff]  ;;  %5111 = vmatprep.subr.bf16.mxu1 %v5110_v54  ;;  %v2881_v14 = vld [vmem:[#allocation20 + $0x68] sm:$0xff] }
 0x827   : > { %v4902_v27 = vpop.f32.mrb[4].mxu0  ;;  %v7184_v62 = vadd.f32 %v2615_v7, %v2545_v40  ;;  %v2870_v40 = vld [vmem:[#allocation20 + $0x10] sm:$0xff]  ;;  %5143 = vmatprep.subr.bf16.mxu0 %v5142_v2 }
 0x828   : > { %v2554_v26 = vpop.f32.mrb[5].mxu0  ;;  %v2560_v59 = vadd.f32 %v4902_v27, %v7169_v60  ;;  %v2877_v27 = vld [vmem:[#allocation20 + $0x48] sm:$0xff] }
 0x829   : > { %v2555_v22 = vadd.f32 %v7169_v60, %v2554_v26  ;;  %2651 = vadd.xlane.f32.xlu0 %v7184_v62  ;;  %v5144_v26 = vpack.c.bf16 %v2874_v42, %v2870_v40 }
 0x82a   : > { %v7201_v25 = vadd.f32 %v2618_v41, %v2560_v59  ;;  %v5114_v59 = vpack.c.bf16 %v2881_v14, %v2877_v27  ;;  %v2880_v41 = vld [vmem:[#allocation20 + $0x60] sm:$0xff] }
 0x82b   : > { %v4905_v4 = vpop.f32.mrb[6].mxu0  ;;  %v7193_v38 = vadd.f32 %v2617_v15, %v2555_v22  ;;  %v2879_v15 = vld [vmem:[#allocation20 + $0x58] sm:$0xff]  ;;  %5145 = vmatpush1.bf16.msra.mxu0 %v5144_v26 }
 0x82c   : > { %v2564_v19 = vpop.f32.mrb[7].mxu0  ;;  %v2570_v29 = vadd.f32 %v4905_v4, %v7169_v60  ;;  %v2883_v22 = vld [vmem:[#allocation20 + $0x78] sm:$0xff] }
 0x82d   : > { %v2565_v45 = vadd.f32 %v7169_v60, %v2564_v19  ;;  %2653 = vadd.xlane.f32.xlu0 %v7191_v23  ;;  %2655 = vadd.xlane.f32.xlu1 %v7193_v38  ;;  %v5146_v4 = vpack.c.bf16 %v2883_v22, %v2879_v15  ;;  %v2876_v19 = vld [vmem:[#allocation20 + $0x40] sm:$0xff] }
 0x82e   : > { %v7211_v55 = vadd.f32 %v2620_v28, %v2570_v29  ;;  %v2882_v29 = vld [vmem:[#allocation20 + $0x70] sm:$0xff] }
 0x82f   : > { %v4908_v10 = vpop.f32.mrb[8].mxu0  ;;  %v7203_v61 = vadd.f32 %v2619_v8, %v2565_v45  ;;  %v2878_v8 = vld [vmem:[#allocation20 + $0x50] sm:$0xff]  ;;  %v5116_v45 = vpack.c.bf16 %v2880_v41, %v2876_v19  ;;  %5147 = vmatprep.subr.bf16.mxu0 %v5146_v4  ;;  %v2895_v4 = vld [vmem:[#allocation20 + $0xd8] sm:$0xff] }
 0x830   : > { %v2574_v21 = vpop.f32.mrb[9].mxu0  ;;  %v2580_v0 = vadd.f32 %v4908_v10, %v7169_v60  ;;  %v2885_v10 = vld [vmem:[#allocation20 + $0x88] sm:$0xff]  ;;  %v5148_v28 = vpack.c.bf16 %v2882_v29, %v2878_v8  ;;  %v2892_v29 = vld [vmem:[#allocation20 + $0xc0] sm:$0xff] }
 0x831   : > { %v2575_v13 = vadd.f32 %v7169_v60, %v2574_v21  ;;  %2657 = vadd.xlane.f32.xlu0 %v7201_v25  ;;  %2659 = vadd.xlane.f32.xlu1 %v7203_v61  ;;  %v2889_v21 = vld [vmem:[#allocation20 + $0xa8] sm:$0xff] }
 0x832   : > { %v7221_v37 = vadd.f32 %v2622_v47, %v2580_v0  ;;  %v2891_v0 = vld [vmem:[#allocation20 + $0xb8] sm:$0xff]  ;;  %v2888_v47 = vld [vmem:[#allocation20 + $0xa0] sm:$0xff]  ;;  %5149 = vmatpush1.bf16.msra.mxu0 %v5148_v28 }
 0x833   : > { %v4911_v31 = vpop.f32.mrb[10].mxu0  ;;  %v7213_v30 = vadd.f32 %v2621_v43, %v2575_v13  ;;  %v5118_v43 = vpack.c.bf16 %v2889_v21, %v2885_v10  ;;  %v2887_v13 = vld [vmem:[#allocation20 + $0x98] sm:$0xff]  ;;  %v2896_v10 = vld [vmem:[#allocation20 + $0xe0] sm:$0xff] }
 0x834   : > { %v2584_v57 = vpop.f32.mrb[11].mxu0  ;;  %v2590_v3 = vadd.f32 %v4911_v31, %v7169_v60  ;;  %v2884_v31 = vld [vmem:[#allocation20 + $0x80] sm:$0xff] }
 0x835   : > { %v2585_v53 = vadd.f32 %v7169_v60, %v2584_v57  ;;  %2661 = vadd.xlane.f32.xlu0 %v7211_v55  ;;  %2663 = vadd.xlane.f32.xlu1 %v7213_v30  ;;  %v5150_v57 = vpack.c.bf16 %v2891_v0, %v2887_v13  ;;  %v2898_v13 = vld [vmem:[#allocation20 + $0xf0] sm:$0xff] }
 0x836   : > { %v7231_v58 = vadd.f32 %v2624_v35, %v2590_v3  ;;  %v5120_v3 = vpack.c.bf16 %v2888_v47, %v2884_v31  ;;  %v5124_v31 = vpack.c.bf16 %v2896_v10, %v2892_v29 }
 0x837   : > { %v4914_v33 = vpop.f32.mrb[12].mxu0  ;;  %v7223_v44 = vadd.f32 %v2623_v32, %v2585_v53  ;;  %v2886_v32 = vld [vmem:[#allocation20 + $0x90] sm:$0xff]  ;;  %5151 = vmatprep.subr.bf16.mxu0 %v5150_v57 }
 0x838   : > { %v2594_v1 = vpop.f32.mrb[13].mxu0  ;;  %v2600_v46 = vadd.f32 %v4914_v33, %v7169_v60  ;;  %v2890_v53 = vld [vmem:[#allocation20 + $0xb0] sm:$0xff] }
 0x839   : > { %v2595_v51 = vadd.f32 %v7169_v60, %v2594_v1  ;;  %2665 = vadd.xlane.f32.xlu0 %v7221_v37  ;;  %2667 = vadd.xlane.f32.xlu1 %v7223_v44  ;;  %v5152_v33 = vpack.c.bf16 %v2890_v53, %v2886_v32  ;;  %v2901_v53 = vld [vmem:[#allocation20 + $0x108] sm:$0xff] }
 0x83a   : > { %v7241_v36 = vadd.f32 %v2626_v5, %v2600_v46 }
 0x83b   : > { %v4917_v12 = vpop.f32.mrb[14].mxu0  ;;  %v7233_v34 = vadd.f32 %v2625_v49, %v2595_v51  ;;  %5153 = vmatpush1.bf16.msra.mxu0 %v5152_v33  ;;  %v2903_v33 = vld [vmem:[#allocation20 + $0x118] sm:$0xff] }
 0x83c   : > { %v2604_v48 = vpop.f32.mrb[15].mxu0  ;;  %v2610_v18 = vadd.f32 %v4917_v12, %v7169_v60 }
 0x83d   : > { %v2605_v11 = vadd.f32 %v7169_v60, %v2604_v48  ;;  %2669 = vadd.xlane.f32.xlu0 %v7231_v58  ;;  %2671 = vadd.xlane.f32.xlu1 %v7233_v34  ;;  %v2872_v60 = vld [vmem:[#allocation20 + $0x20] sm:$0xff] }
 0x83e   : > { %v7248_v16 = vadd.f32 %v2628_v52, %v2610_v18  ;;  %v5112_v7 = vpack.c.bf16 %v2872_v60, %v2868_v6 }
 0x83f   : > { %v7243_v50 = vadd.f32 %v2627_v9, %v2605_v11 }
 0x840   : > { %5113 = vmatpush1.bf16.msra.mxu1 %v5112_v7 }
 0x841   : > { %2673 = vadd.xlane.f32.xlu0 %v7241_v36  ;;  %2675 = vadd.xlane.f32.xlu1 %v7243_v50 }
 0x842   : > { %5115 = vmatprep.subr.bf16.mxu1 %v5114_v59  ;;  %v2897_v59 = vld [vmem:[#allocation20 + $0xe8] sm:$0xff] }
 0x844   : > { %5117 = vmatpush1.bf16.msra.mxu1 %v5116_v45  ;;  %v2899_v45 = vld [vmem:[#allocation20 + $0xf8] sm:$0xff] }
 0x845   : > { %2677 = vadd.xlane.f32.xlu0 %v7248_v16  ;;  %5119 = vmatprep.subr.bf16.mxu1 %v5118_v43  ;;  %v2894_v43 = vld [vmem:[#allocation20 + $0xd0] sm:$0xff]  ;;  %v5154_v0 = vpack.c.bf16 %v2899_v45, %v2895_v4 }
 0x846   : > { %v5156_v57 = vpack.c.bf16 %v2898_v13, %v2894_v43  ;;  %v2923_v13 = vld [vmem:[#allocation20 + $0x1b8] sm:$0xff] }
 0x847   : > { %5155 = vmatprep.subr.bf16.mxu0 %v5154_v0  ;;  %v2916_v0 = vld [vmem:[#allocation20 + $0x180] sm:$0xff] }
 0x848   : > { %5121 = vmatpush1.bf16.msra.mxu1 %v5120_v3  ;;  %v2905_v3 = vld [vmem:[#allocation20 + $0x128] sm:$0xff]  ;;  %5157 = vmatpush1.bf16.msra.mxu0 %v5156_v57 }
 0x8b1   : > { %v2650_v1 = vpop.xlane.xlu1 %2649 }
 0x8b2   : > { %v2681_v35 = vmul.f32 0.0078125, %v2650_v1  ;;  %v2648_v49 = vpop.xlane.xlu0 %2647 }
 0x8b3   : > { %v2680_v51 = vmul.f32 0.0078125, %v2648_v49  ;;  %v5126_v49 = vpack.c.bf16 %v2905_v3, %v2901_v53  ;;  %v2918_v3 = vld [vmem:[#allocation20 + $0x190] sm:$0xff] }
 0x8b4   : > { %v7252_v46 = vsub.f32 %v7175_v20, %v2681_v35 }
 0x8b5   : > { %v7255_v12 = vsub.f32 %v7177_v63, %v2680_v51  ;;  %v2907_v51 = vld [vmem:[#allocation20 + $0x138] sm:$0xff] }
 0x8b6   : > { %v2652_v48 = vpop.xlane.xlu0 %2651  ;;  %v2713_v5 = vmul.f32 %v7252_v46, %v7252_v46 }
 0x8b7   : > { %v2682_v9 = vmul.f32 0.0078125, %v2652_v48  ;;  %v2712_v11 = vmul.f32 %v7255_v12, %v7255_v12  ;;  %v2900_v48 = vld [vmem:[#allocation20 + $0x100] sm:$0xff] }
 0x8b8   : > { %2730 = vadd.xlane.f32.xlu0 %v2713_v5  ;;  %v2904_v5 = vld [vmem:[#allocation20 + $0x120] sm:$0xff] }
 0x8b9   : > { %v7262_v18 = vsub.f32 %v7184_v62, %v2682_v9  ;;  %2728 = vadd.xlane.f32.xlu1 %v2712_v11 }
 0x8ba   : > { %v2656_v52 = vpop.xlane.xlu1 %2655  ;;  %v2654_v56 = vpop.xlane.xlu0 %2653 }
 0x8bb   : > { %v2684_v20 = vmul.f32 0.0078125, %v2656_v52  ;;  %v2683_v39 = vmul.f32 0.0078125, %v2654_v56  ;;  %v2714_v63 = vmul.f32 %v7262_v18, %v7262_v18  ;;  %v2902_v52 = vld [vmem:[#allocation20 + $0x110] sm:$0xff] }
 0x8bc   : > { %v2906_v56 = vld [vmem:[#allocation20 + $0x130] sm:$0xff] }
 0x8bd   : > { %v7267_v24 = vsub.f32 %v7193_v38, %v2684_v20  ;;  %v7270_v54 = vsub.f32 %v7191_v23, %v2683_v39  ;;  %2732 = vadd.xlane.f32.xlu1 %v2714_v63  ;;  %v5158_v20 = vpack.c.bf16 %v2907_v51, %v2903_v33  ;;  %v5128_v39 = vpack.c.bf16 %v2904_v5, %v2900_v48  ;;  %v2922_v33 = vld [vmem:[#allocation20 + $0x1b0] sm:$0xff]  ;;  %v2929_v51 = vld [vmem:[#allocation20 + $0x1e8] sm:$0xff]  ;;  %v2927_v48 = vld [vmem:[#allocation20 + $0x1d8] sm:$0xff] }
 0x8be   : > { %v2660_v17 = vpop.xlane.xlu1 %2659  ;;  %v2658_v6 = vpop.xlane.xlu0 %2657  ;;  %v5160_v63 = vpack.c.bf16 %v2906_v56, %v2902_v52  ;;  %v2926_v56 = vld [vmem:[#allocation20 + $0x1d0] sm:$0xff] }
 0x8bf   : > { %v2686_v60 = vmul.f32 0.0078125, %v2660_v17  ;;  %v2685_v62 = vmul.f32 0.0078125, %v2658_v6  ;;  %v2716_v2 = vmul.f32 %v7267_v24, %v7267_v24  ;;  %v2715_v7 = vmul.f32 %v7270_v54, %v7270_v54  ;;  %5159 = vmatprep.subr.bf16.mxu0 %v5158_v20  ;;  %v2930_v20 = vld [vmem:[#allocation20 + $0x1f0] sm:$0xff] }
 0x8c0   : > { %5161 = vmatpush1.bf16.msra.mxu0 %v5160_v63  ;;  %v6069_v63 = vmov 0.0  }
 0x8c1   : > { %v7277_v40 = vsub.f32 %v7203_v61, %v2686_v60  ;;  %v7280_v38 = vsub.f32 %v7201_v25, %v2685_v62  ;;  %2736 = vadd.xlane.f32.xlu1 %v2716_v2  ;;  %2734 = vadd.xlane.f32.xlu0 %v2715_v7  ;;  %v2893_v25 = vld [vmem:[#allocation20 + $0xc8] sm:$0xff] }
 0x8c2   : > { %v2664_v23 = vpop.xlane.xlu1 %2663  ;;  %v2662_v42 = vpop.xlane.xlu0 %2661  ;;  %v5122_v8 = vpack.c.bf16 %v2897_v59, %v2893_v25  ;;  %v2909_v2 = vld [vmem:[#allocation20 + $0x148] sm:$0xff]  ;;  %3018 = vmatprep.mubr.f32.mxu1 %v6069_v63  ;;  %3179 = vmatprep.mubr.f32.mxu0 %v6069_v63 }
 0x8c3   : > { %v2688_v27 = vmul.f32 0.0078125, %v2664_v23  ;;  %v2687_v26 = vmul.f32 0.0078125, %v2662_v42  ;;  %v2718_v14 = vmul.f32 %v7277_v40, %v7277_v40  ;;  %v2717_v15 = vmul.f32 %v7280_v38, %v7280_v38  ;;  %v2913_v7 = vld [vmem:[#allocation20 + $0x168] sm:$0xff]  ;;  %v2911_v23 = vld [vmem:[#allocation20 + $0x158] sm:$0xff] }
 0x8c4   : > { %5123 = vmatprep.subr.bf16.mxu1 %v5122_v8  ;;  %v5130_v25 = vpack.c.bf16 %v2913_v7, %v2909_v2  ;;  %v3388_v7 = vld [vmem:[#allocation22 + $0x180] sm:$0xff] }
 0x8c5   : > { %v7287_v22 = vsub.f32 %v7213_v30, %v2688_v27  ;;  %v7290_v61 = vsub.f32 %v7211_v55, %v2687_v26  ;;  %2740 = vadd.xlane.f32.xlu1 %v2718_v14  ;;  %2738 = vadd.xlane.f32.xlu0 %v2717_v15  ;;  %v2908_v14 = vld [vmem:[#allocation20 + $0x140] sm:$0xff] }
 0x8c6   : > { %v2668_v19 = vpop.xlane.xlu1 %2667  ;;  %v2666_v41 = vpop.xlane.xlu0 %2665  ;;  %5125 = vmatpush1.bf16.msra.mxu1 %v5124_v31  ;;  %v2912_v15 = vld [vmem:[#allocation20 + $0x160] sm:$0xff] }
 0x8c7   : > { %v2690_v21 = vmul.f32 0.0078125, %v2668_v19  ;;  %v2689_v28 = vmul.f32 0.0078125, %v2666_v41  ;;  %v2720_v30 = vmul.f32 %v7287_v22, %v7287_v22  ;;  %v2719_v55 = vmul.f32 %v7290_v61, %v7290_v61  ;;  %5127 = vmatprep.subr.bf16.mxu1 %v5126_v49  ;;  %v2910_v19 = vld [vmem:[#allocation20 + $0x150] sm:$0xff]  ;;  %v2920_v31 = vld [vmem:[#allocation20 + $0x1a0] sm:$0xff]  ;;  %v2925_v49 = vld [vmem:[#allocation20 + $0x1c8] sm:$0xff] }
 0x8c8   : > { %v5132_v4 = vpack.c.bf16 %v2912_v15, %v2908_v14  ;;  %v2914_v41 = vld [vmem:[#allocation20 + $0x170] sm:$0xff]  ;;  %v5136_v53 = vpack.c.bf16 %v2920_v31, %v2916_v0  ;;  %v7339_v31 = vld [vmem:[%s8086_s28] ss:$0 sm:$0xff] }
 0x8c9   : > { %v7297_v47 = vsub.f32 %v7223_v44, %v2690_v21  ;;  %v7300_v32 = vsub.f32 %v7221_v37, %v2689_v28  ;;  %2744 = vadd.xlane.f32.xlu1 %v2720_v30  ;;  %2742 = vadd.xlane.f32.xlu0 %v2719_v55  ;;  %v5164_v29 = vpack.c.bf16 %v2914_v41, %v2910_v19  ;;  %v2917_v21 = vld [vmem:[#allocation20 + $0x188] sm:$0xff]  ;;  %v2919_v30 = vld [vmem:[#allocation20 + $0x198] sm:$0xff] }
 0x8ca   : > { %v2672_v1 = vpop.xlane.xlu1 %2671  ;;  %v2670_v35 = vpop.xlane.xlu0 %2669  ;;  %5129 = vmatpush1.bf16.msra.mxu1 %v5128_v39  ;;  %v2921_v28 = vld [vmem:[#allocation20 + $0x1a8] sm:$0xff]  ;;  %v5166_v57 = vpack.c.bf16 %v2923_v13, %v2919_v30  ;;  %v5172_v39 = vpack.c.bf16 %v2930_v20, %v2926_v56 }
 0x8cb   : > { %v2692_v9 = vmul.f32 0.0078125, %v2672_v1  ;;  %v2691_v11 = vmul.f32 0.0078125, %v2670_v35  ;;  %v2722_v44 = vmul.f32 %v7297_v47, %v7297_v47  ;;  %v2721_v37 = vmul.f32 %v7300_v32, %v7300_v32  ;;  %5131 = vmatprep.subr.bf16.mxu1 %v5130_v25 }
 0x8cc   : > { %v5168_v35 = vpack.c.bf16 %v2922_v33, %v2918_v3 }
 0x8cd   : > { %v7307_v17 = vsub.f32 %v7233_v34, %v2692_v9  ;;  %v7310_v6 = vsub.f32 %v7231_v58, %v2691_v11  ;;  %2748 = vadd.xlane.f32.xlu1 %v2722_v44  ;;  %2746 = vadd.xlane.f32.xlu0 %v2721_v37  ;;  %v2915_v58 = vld [vmem:[#allocation20 + $0x178] sm:$0xff]  ;;  %v5138_v9 = vpack.c.bf16 %v2929_v51, %v2925_v49  ;;  %v2924_v44 = vld [vmem:[#allocation20 + $0x1c0] sm:$0xff]  ;;  %v3341_v49 = vld [vmem:[#allocation22 + $0x8] sm:$0xff] }
 0x8ce   : > { %v2676_v60 = vpop.xlane.xlu1 %2675  ;;  %v2674_v62 = vpop.xlane.xlu0 %2673  ;;  %v5162_v59 = vpack.c.bf16 %v2915_v58, %v2911_v23  ;;  %5133 = vmatpush1.bf16.msra.mxu1 %v5132_v4  ;;  %v2931_v11 = vld [vmem:[#allocation20 + $0x1f8] sm:$0xff]  ;;  %v2928_v37 = vld [vmem:[#allocation20 + $0x1e0] sm:$0xff]  ;;  %v3389_v23 = vld [vmem:[#allocation22 + $0x188] sm:$0xff] }
 0x8cf   : > { %v2694_v42 = vmul.f32 0.0078125, %v2676_v60  ;;  %v2693_v27 = vmul.f32 0.0078125, %v2674_v62  ;;  %v2724_v26 = vmul.f32 %v7307_v17, %v7307_v17  ;;  %v2723_v34 = vmul.f32 %v7310_v6, %v7310_v6  ;;  %v3356_v60 = vld [vmem:[#allocation22 + $0x80] sm:$0xff]  ;;  %v3357_v62 = vld [vmem:[#allocation22 + $0x88] sm:$0xff]  ;;  %v3358_v51 = vld [vmem:[#allocation22 + $0x90] sm:$0xff] }
 0x8d0   : > { %5163 = vmatprep.subr.bf16.mxu0 %v5162_v59  ;;  %v5170_v52 = vpack.c.bf16 %v2931_v11, %v2927_v48  ;;  %v5174_v2 = vpack.c.bf16 %v3357_v62, %v3356_v60  ;;  %v3372_v48 = vld [vmem:[#allocation22 + $0x100] sm:$0xff]  ;;  %v3359_v11 = vld [vmem:[#allocation22 + $0x98] sm:$0xff]  ;;  %v3342_v62 = vld [vmem:[#allocation22 + $0x10] sm:$0xff] }
 0x8d1   : > { %v7317_v8 = vsub.f32 %v7243_v50, %v2694_v42  ;;  %v7320_v45 = vsub.f32 %v7241_v36, %v2693_v27  ;;  %2752 = vadd.xlane.f32.xlu1 %v2724_v26  ;;  %2750 = vadd.xlane.f32.xlu0 %v2723_v34  ;;  %v5134_v36 = vpack.c.bf16 %v2921_v28, %v2917_v21 }
 0x8d2   : > { %v2678_v10 = vpop.xlane.xlu0 %2677  ;;  %5165 = vmatpush1.bf16.msra.mxu0 %v5164_v29  ;;  %v7333_v42 = vpack.c.bf16 %v3389_v23, %v3388_v7  ;;  %v5178_v23 = vpack.c.bf16 %v3359_v11, %v3358_v51 }
 0x8d3   : > { %v2695_v55 = vmul.f32 0.0078125, %v2678_v10  ;;  %v2726_v43 = vmul.f32 %v7317_v8, %v7317_v8  ;;  %v2725_v50 = vmul.f32 %v7320_v45, %v7320_v45  ;;  %5135 = vmatprep.subr.bf16.mxu1 %v5134_v36  ;;  %5167 = vmatprep.subr.bf16.mxu0 %v5166_v57 }
 0x8d4   : > { %5137 = vmatpush1.bf16.msra.mxu1 %v5136_v53  ;;  %v7344_v53 = vld [vmem:[%s8087_s14] ss:$0 sm:$0xff] }
 0x8d5   : > { %v7327_v1 = vsub.f32 %v7248_v16, %v2695_v55  ;;  %2756 = vadd.xlane.f32.xlu1 %v2726_v43  ;;  %2754 = vadd.xlane.f32.xlu0 %v2725_v50  ;;  %v5140_v16 = vpack.c.bf16 %v2928_v37, %v2924_v44  ;;  %v3390_v44 = vld [vmem:[#allocation22 + $0x190] sm:$0xff]  ;;  %v3391_v37 = vld [vmem:[#allocation22 + $0x198] sm:$0xff] }
 0x8d6   : > { %5169 = vmatpush1.bf16.msra.mxu0 %v5168_v35  ;;  %5139 = vmatprep.subr.bf16.mxu1 %v5138_v9  ;;  %v3340_v35 = vld [vmem:[#allocation22] sm:$0xff] }
 0x8d7   : > { %v2727_v5 = vmul.f32 %v7327_v1, %v7327_v1  ;;  %5171 = vmatprep.subr.bf16.mxu0 %v5170_v52  ;;  %v5176_v20 = vpack.c.bf16 %v3341_v49, %v3340_v35  ;;  %v3394_v35 = vld [vmem:[#allocation22 + $0x1b0] sm:$0xff]  ;;  %v3395_v49 = vld [vmem:[#allocation22 + $0x1b8] sm:$0xff] }
 0x8d8   : > { %5141 = vmatpush1.bf16.msra.mxu1 %v5140_v16 }
 0x8d9   : > { %2758 = vadd.xlane.f32.xlu0 %v2727_v5  ;;  %5175 = vmatprep.subr.bf16.mxu1 %v5174_v2  ;;  %v3373_v5 = vld [vmem:[#allocation22 + $0x108] sm:$0xff]  ;;  %v3343_v2 = vld [vmem:[#allocation22 + $0x18] sm:$0xff] }
 0x8da   : > { %5173 = vmatpush1.bf16.msra.mxu0 %v5172_v39  ;;  %v7354_v7 = vpack.c.bf16 %v3373_v5, %v3372_v48  ;;  %v7383_v48 = vld [vmem:[#allocation22 + $0x30] sm:$0xff]  ;;  %v3347_v5 = vld [vmem:[#allocation22 + $0x38] sm:$0xff] }
 0x8db   : > { %5207 = vmatprep.subr.bf16.mxu0 %v7333_v42 }
 0x945   : > { %v2731_v27 = vpop.xlane.xlu0 %2730 }
 0x946   : > { %v2761_v26 = vmul.f32 0.0078125, %v2731_v27  ;;  %v2729_v34 = vpop.xlane.xlu1 %2728  ;;  %v3360_v27 = vld [vmem:[#allocation22 + $0xa0] sm:$0xff] }
 0x947   : > { %v2760_v58 = vmul.f32 0.0078125, %v2729_v34  ;;  %v3374_v34 = vld [vmem:[#allocation22 + $0x110] sm:$0xff] }
 0x948   : > { %v2777_v14 = vadd.f32 1e-05, %v2761_v26  ;;  %v7356_v26 = vpack.c.bf16 %v3391_v37, %v3390_v44 }
 0x949   : > { %v2776_v15 = vadd.f32 1e-05, %v2760_v58  ;;  %v3375_v58 = vld [vmem:[#allocation22 + $0x118] sm:$0xff] }
 0x94a   : > { %5570 = vrsqrt.f32 %v2777_v14  ;;  %v2733_v25 = vpop.xlane.xlu1 %2732  ;;  %v3361_v14 = vld [vmem:[#allocation22 + $0xa8] sm:$0xff] }
 0x94b   : > { %5572 = vrsqrt.f32 %v2776_v15  ;;  %v2762_v59 = vmul.f32 0.0078125, %v2733_v25  ;;  %v3392_v15 = vld [vmem:[#allocation22 + $0x1a0] sm:$0xff]  ;;  %v3393_v25 = vld [vmem:[#allocation22 + $0x1a8] sm:$0xff] }
 0x94d   : > { %v2778_v4 = vadd.f32 1e-05, %v2762_v59 }
 0x94e   : > { %v2737_v19 = vpop.xlane.xlu1 %2736  ;;  %v2735_v41 = vpop.xlane.xlu0 %2734 }
 0x94f   : > { %5574 = vrsqrt.f32 %v2778_v4  ;;  %v2764_v29 = vmul.f32 0.0078125, %v2737_v19  ;;  %v2763_v10 = vmul.f32 0.0078125, %v2735_v41  ;;  %v5180_v4 = vpack.c.bf16 %v3343_v2, %v3342_v62  ;;  %v7362_v19 = vld [vmem:[#allocation22 + $0x20] sm:$0xff]  ;;  %v7364_v41 = vld [vmem:[#allocation22 + $0x28] sm:$0xff] }
 0x950   : > { %v5188_v62 = vpack.c.bf16 %v3347_v5, %v7383_v48  ;;  %v3396_v2 = vld [vmem:[#allocation22 + $0x1c0] sm:$0xff]  ;;  %v3382_v5 = vld [vmem:[#allocation22 + $0x150] sm:$0xff] }
 0x951   : > { %v2780_v21 = vadd.f32 1e-05, %v2764_v29  ;;  %v2779_v28 = vadd.f32 1e-05, %v2763_v10 }
 0x952   : > { %v2741_v30 = vpop.xlane.xlu1 %2740  ;;  %v2739_v55 = vpop.xlane.xlu0 %2738 }
 0x953   : > { %v2765_v43 = vmul.f32 0.0078125, %v2739_v55  ;;  %5576 = vrsqrt.f32 %v2779_v28  ;;  %v2766_v13 = vmul.f32 0.0078125, %v2741_v30  ;;  %v7371_v30 = vpack.c.bf16 %v3375_v58, %v3374_v34  ;;  %v3376_v55 = vld [vmem:[#allocation22 + $0x120] sm:$0xff] }
 0x954   : > { %v5571_v50 = vpop.eup %5570  ;;  %5578 = vrsqrt.f32 %v2780_v21  ;;  %v3348_v58 = vld [vmem:[#allocation22 + $0x40] sm:$0xff] }
 0x955   : > { %v5573_v36 = vpop.eup %5572  ;;  %v2781_v0 = vadd.f32 1e-05, %v2765_v43  ;;  %v2809_v33 = vmul.f32 %v5571_v50, %v7252_v46  ;;  %v2782_v16 = vadd.f32 1e-05, %v2766_v13  ;;  %v3377_v43 = vld [vmem:[#allocation22 + $0x128] sm:$0xff]  ;;  %v5182_v13 = vpack.c.bf16 %v3361_v14, %v3360_v27 }
 0x956   : > { %v2743_v57 = vpop.xlane.xlu0 %2742  ;;  %v2808_v3 = vmul.f32 %v5573_v36, %v7255_v12  ;;  %v2745_v39 = vpop.xlane.xlu1 %2744  ;;  %v3349_v14 = vld [vmem:[#allocation22 + $0x48] sm:$0xff] }
 0x957   : > { %5580 = vrsqrt.f32 %v2781_v0  ;;  %v2767_v56 = vmul.f32 0.0078125, %v2743_v57  ;;  %v2831_v46 = vmul.f32 %v7339_v31, %v2809_v33  ;;  %v2768_v59 = vmul.f32 0.0078125, %v2745_v39  ;;  %v3362_v0 = vld [vmem:[#allocation22 + $0xb0] sm:$0xff]  ;;  %v3363_v33 = vld [vmem:[#allocation22 + $0xb8] sm:$0xff] }
 0x958   : > { %v2830_v9 = vmul.f32 %v7339_v31, %v2808_v3  ;;  %5582 = vrsqrt.f32 %v2782_v16  ;;  %v7375_v57 = vpack.c.bf16 %v3393_v25, %v3392_v15  ;;  %v5184_v3 = vpack.c.bf16 %v7364_v41, %v7362_v19  ;;  %v3378_v16 = vld [vmem:[#allocation22 + $0x130] sm:$0xff]  ;;  %v3380_v19 = vld [vmem:[#allocation22 + $0x140] sm:$0xff]  ;;  %v3381_v41 = vld [vmem:[#allocation22 + $0x148] sm:$0xff] }
 0x959   : > { %v5575_v52 = vpop.eup %5574  ;;  %v7367_v21 = vadd.f32 %v7344_v53, %v2831_v46  ;;  %v2784_v51 = vadd.f32 1e-05, %v2768_v59  ;;  %v5186_v39 = vpack.c.bf16 %v3363_v33, %v3362_v0  ;;  %v3364_v46 = vld [vmem:[#allocation22 + $0xc0] sm:$0xff]  ;;  %v3351_v33 = vld [vmem:[#allocation22 + $0x58] sm:$0xff] }
 0x95a   : > { %v7350_v12 = vadd.f32 %v7344_v53, %v2830_v9  ;;  %v2810_v60 = vmul.f32 %v5575_v52, %v7262_v18  ;;  %v2783_v18 = vadd.f32 1e-05, %v2767_v56  ;;  %v2747_v10 = vpop.xlane.xlu0 %2746  ;;  %v7385_v9 = vpack.c.bf16 %v3377_v43, %v3376_v55  ;;  %v2749_v11 = vpop.xlane.xlu1 %2748  ;;  %v3379_v56 = vld [vmem:[#allocation22 + $0x138] sm:$0xff] }
 0x95b   : > { %v2770_v27 = vmul.f32 0.0078125, %v2749_v11  ;;  %v7401_v15 = vpack.c.bf16 %v3379_v56, %v3378_v16  ;;  %v5192_v43 = vpack.c.bf16 %v3349_v14, %v3348_v58  ;;  %v3383_v11 = vld [vmem:[#allocation22 + $0x158] sm:$0xff]  ;;  %v3368_v16 = vld [vmem:[#allocation22 + $0xe0] sm:$0xff] }
 0x95c   : > { %3019 = vmatmul.mubr.f32.vlgmr.msra.gmra.mrb[0].mxu1 %v7350_v12  ;;  %3180 = vmatmul.mubr.f32.vlgmr.msra.gmra.mrb[16].mxu0 %v7350_v12  ;;  %v2832_v28 = vmul.f32 %v7339_v31, %v2810_v60  ;;  %5584 = vrsqrt.f32 %v2783_v18  ;;  %v7394_v60 = vpack.c.bf16 %v3395_v49, %v3394_v35  ;;  %v7416_v35 = vpack.c.bf16 %v3381_v41, %v3380_v19  ;;  %v3352_v14 = vld [vmem:[#allocation22 + $0x60] sm:$0xff]  ;;  %v3370_v41 = vld [vmem:[#allocation22 + $0xf0] sm:$0xff] }
 0x95d   : > { %3024 = vmatprep.mubr.f32.mxu1 %v6069_v63  ;;  %3185 = vmatprep.mubr.f32.mxu0 %v6069_v63  ;;  %v5577_v29 = vpop.eup %5576  ;;  %5586 = vrsqrt.f32 %v2784_v51 }
 0x95e   : > { %5177 = vmatpush3.bf16.msra.mxu1 %v5176_v20  ;;  %5209 = vmatpush3.bf16.msra.mxu0 %v7354_v7  ;;  %v5579_v50 = vpop.eup %5578  ;;  %v2811_v36 = vmul.f32 %v5577_v29, %v7270_v54  ;;  %v2769_v54 = vmul.f32 0.0078125, %v2747_v10  ;;  %v7388_v44 = vadd.f32 %v7344_v53, %v2832_v28  ;;  %v2751_v25 = vpop.xlane.xlu0 %2750  ;;  %v3366_v28 = vld [vmem:[#allocation22 + $0xd0] sm:$0xff] }
 0x95f   : > { %5179 = vmatprep.subr.bf16.mxu1 %v5178_v23  ;;  %5211 = vmatprep.subr.bf16.mxu0 %v7356_v26  ;;  %v2812_v52 = vmul.f32 %v5579_v50, %v7267_v24  ;;  %v3365_v24 = vld [vmem:[#allocation22 + $0xc8] sm:$0xff]  ;;  %v3367_v50 = vld [vmem:[#allocation22 + $0xd8] sm:$0xff]  ;;  %v2771_v0 = vmul.f32 0.0078125, %v2751_v25  ;;  %v2753_v49 = vpop.xlane.xlu1 %2752 }
 0x960   : > { %3025 = vmatmul.mubr.f32.gmra.mrb[2].mxu1 %v7367_v21  ;;  %3186 = vmatmul.mubr.f32.gmra.mrb[18].mxu0 %v7367_v21  ;;  %v2833_v37 = vmul.f32 %v7339_v31, %v2811_v36  ;;  %v3397_v23 = vld [vmem:[#allocation22 + $0x1c8] sm:$0xff]  ;;  %v2785_v34 = vadd.f32 1e-05, %v2769_v54  ;;  %v5190_v10 = vpack.c.bf16 %v3365_v24, %v3364_v46  ;;  %v3399_v36 = vld [vmem:[#allocation22 + $0x1d8] sm:$0xff] }
 0x961   : > { %3030 = vmatprep.mubr.f32.mxu1 %v6069_v63  ;;  %3191 = vmatprep.mubr.f32.mxu0 %v6069_v63  ;;  %v5581_v20 = vpop.eup %5580  ;;  %v2834_v18 = vmul.f32 %v7339_v31, %v2812_v52  ;;  %v7410_v55 = vpack.c.bf16 %v3397_v23, %v3396_v2  ;;  %v5194_v52 = vpack.c.bf16 %v3367_v50, %v3366_v28  ;;  %v3401_v46 = vld [vmem:[#allocation22 + $0x1e8] sm:$0xff]  ;;  %v2787_v24 = vadd.f32 1e-05, %v2771_v0 }
 0x962   : > { %5181 = vmatpush3.bf16.msra.mxu1 %v5180_v4  ;;  %5213 = vmatpush3.bf16.msra.mxu0 %v7371_v30  ;;  %v7404_v59 = vadd.f32 %v7344_v53, %v2833_v37  ;;  %v2813_v4 = vmul.f32 %v5581_v20, %v7280_v38  ;;  %v5583_v29 = vpop.eup %5582  ;;  %v3398_v38 = vld [vmem:[#allocation22 + $0x1d0] sm:$0xff]  ;;  %5588 = vrsqrt.f32 %v2785_v34  ;;  %v7431_v2 = vpack.c.bf16 %v3383_v11, %v3382_v5  ;;  %v2755_v23 = vpop.xlane.xlu0 %2754  ;;  %v3353_v25 = vld [vmem:[#allocation22 + $0x68] sm:$0xff] }
 0x963   : > { %5183 = vmatprep.subr.bf16.mxu1 %v5182_v13  ;;  %5215 = vmatprep.subr.bf16.mxu0 %v7375_v57  ;;  %v2786_v13 = vadd.f32 1e-05, %v2770_v27  ;;  %v7419_v51 = vadd.f32 %v7344_v53, %v2834_v18  ;;  %v2814_v48 = vmul.f32 %v5583_v29, %v7277_v40  ;;  %v7425_v56 = vpack.c.bf16 %v3399_v36, %v3398_v38  ;;  %v3400_v40 = vld [vmem:[#allocation22 + $0x1e0] sm:$0xff]  ;;  %v3371_v29 = vld [vmem:[#allocation22 + $0xf8] sm:$0xff] }
 0x964   : > { %3031 = vmatmul.mubr.f32.gmra.mrb[4].mxu1 %v7388_v44  ;;  %3192 = vmatmul.mubr.f32.gmra.mrb[20].mxu0 %v7388_v44  ;;  %v2835_v54 = vmul.f32 %v7339_v31, %v2813_v4  ;;  %v7440_v19 = vpack.c.bf16 %v3401_v46, %v3400_v40  ;;  %v5200_v28 = vpack.c.bf16 %v3353_v25, %v3352_v14 }
 0x965   : > { %3036 = vmatprep.mubr.f32.mxu1 %v6069_v63  ;;  %3197 = vmatprep.mubr.f32.mxu0 %v6069_v63  ;;  %5590 = vrsqrt.f32 %v2786_v13  ;;  %v2836_v34 = vmul.f32 %v7339_v31, %v2814_v48  ;;  %v5202_v0 = vpack.c.bf16 %v3371_v29, %v3370_v41 }
 0x966   : > { %5185 = vmatpush3.bf16.msra.mxu1 %v5184_v3  ;;  %5217 = vmatpush3.bf16.msra.mxu0 %v7385_v9  ;;  %v3350_v3 = vld [vmem:[#allocation22 + $0x50] sm:$0xff]  ;;  %v5585_v37 = vpop.eup %5584  ;;  %v7434_v27 = vadd.f32 %v7344_v53, %v2835_v54  ;;  %5592 = vrsqrt.f32 %v2787_v24 }
 0x967   : > { %5187 = vmatprep.subr.bf16.mxu1 %v5186_v39  ;;  %5219 = vmatprep.subr.bf16.mxu0 %v7394_v60  ;;  %v5196_v20 = vpack.c.bf16 %v3351_v33, %v3350_v3  ;;  %v3369_v39 = vld [vmem:[#allocation22 + $0xe8] sm:$0xff]  ;;  %v2815_v58 = vmul.f32 %v5585_v37, %v7290_v61  ;;  %v5587_v18 = vpop.eup %5586  ;;  %v2773_v61 = vmul.f32 0.0078125, %v2755_v23  ;;  %v7447_v50 = vadd.f32 %v7344_v53, %v2836_v34  ;;  %v3354_v3 = vld [vmem:[#allocation22 + $0x70] sm:$0xff]  ;;  %v3355_v33 = vld [vmem:[#allocation22 + $0x78] sm:$0xff] }
 0x968   : > { %3037 = vmatmul.mubr.f32.gmra.mrb[6].mxu1 %v7404_v59  ;;  %3198 = vmatmul.mubr.f32.gmra.mrb[22].mxu0 %v7404_v59  ;;  %v5198_v4 = vpack.c.bf16 %v3369_v39, %v3368_v16  ;;  %v2816_v36 = vmul.f32 %v5587_v18, %v7287_v22  ;;  %v2759_v22 = vpop.xlane.xlu0 %2758  ;;  %v5204_v37 = vpack.c.bf16 %v3355_v33, %v3354_v3  ;;  %v3403_v3 = vld [vmem:[#allocation22 + $0x1f8] sm:$0xff] }
 0x969   : > { %3042 = vmatprep.mubr.f32.mxu1 %v6069_v63  ;;  %3203 = vmatprep.mubr.f32.mxu0 %v6069_v63  ;;  %v2837_v38 = vmul.f32 %v7339_v31, %v2815_v58  ;;  %v2789_v54 = vadd.f32 1e-05, %v2773_v61 }
 0x96a   : > { %5189 = vmatpush3.bf16.msra.mxu1 %v5188_v62  ;;  %5221 = vmatpush3.bf16.msra.mxu0 %v7401_v15  ;;  %v2772_v62 = vmul.f32 0.0078125, %v2753_v49  ;;  %v2838_v5 = vmul.f32 %v7339_v31, %v2816_v36  ;;  %v3384_v36 = vld [vmem:[#allocation22 + $0x160] sm:$0xff] }
 0x96b   : > { %5191 = vmatprep.subr.bf16.mxu1 %v5190_v10  ;;  %5223 = vmatprep.subr.bf16.mxu0 %v7410_v55  ;;  %v7458_v48 = vadd.f32 %v7344_v53, %v2837_v38 }
 0x96c   : > { %3043 = vmatmul.mubr.f32.gmra.mrb[8].mxu1 %v7419_v51  ;;  %3204 = vmatmul.mubr.f32.gmra.mrb[24].mxu0 %v7419_v51  ;;  %v2788_v10 = vadd.f32 1e-05, %v2772_v62  ;;  %v5589_v13 = vpop.eup %5588  ;;  %v7467_v39 = vadd.f32 %v7344_v53, %v2838_v5 }
 0x96d   : > { %3048 = vmatprep.mubr.f32.mxu1 %v6069_v63  ;;  %3209 = vmatprep.mubr.f32.mxu0 %v6069_v63  ;;  %v2817_v11 = vmul.f32 %v5589_v13, %v7300_v32  ;;  %v3385_v13 = vld [vmem:[#allocation22 + $0x168] sm:$0xff] }
 0x96e   : > { %5193 = vmatpush3.bf16.msra.mxu1 %v5192_v43  ;;  %5225 = vmatpush3.bf16.msra.mxu0 %v7416_v35  ;;  %v2757_v43 = vpop.xlane.xlu1 %2756  ;;  %5594 = vrsqrt.f32 %v2788_v10 }
 0x96f   : > { %5195 = vmatprep.subr.bf16.mxu1 %v5194_v52  ;;  %5227 = vmatprep.subr.bf16.mxu0 %v7425_v56  ;;  %v2774_v49 = vmul.f32 0.0078125, %v2757_v43  ;;  %v5591_v52 = vpop.eup %5590  ;;  %5596 = vrsqrt.f32 %v2789_v54  ;;  %v2839_v32 = vmul.f32 %v7339_v31, %v2817_v11  ;;  %v3387_v54 = vld [vmem:[#allocation22 + $0x178] sm:$0xff] }
 0x970   : > { %3049 = vmatmul.mubr.f32.gmra.mrb[10].mxu1 %v7434_v27  ;;  %3210 = vmatmul.mubr.f32.gmra.mrb[26].mxu0 %v7434_v27  ;;  %v2818_v40 = vmul.f32 %v5591_v52, %v7297_v47  ;;  %v5593_v46 = vpop.eup %5592 }
 0x971   : > { %3054 = vmatprep.mubr.f32.mxu1 %v6069_v63  ;;  %3215 = vmatprep.mubr.f32.mxu0 %v6069_v63  ;;  %v2790_v16 = vadd.f32 1e-05, %v2774_v49  ;;  %v7477_v24 = vadd.f32 %v7344_v53, %v2839_v32  ;;  %v2819_v47 = vmul.f32 %v5593_v46, %v7310_v6  ;;  %v3386_v49 = vld [vmem:[#allocation22 + $0x170] sm:$0xff] }
 0x972   : > { %5197 = vmatpush3.bf16.msra.mxu1 %v5196_v20  ;;  %5229 = vmatpush3.bf16.msra.mxu0 %v7431_v2  ;;  %v2775_v20 = vmul.f32 0.0078125, %v2759_v22  ;;  %v2840_v23 = vmul.f32 %v7339_v31, %v2818_v40 }
 0x973   : > { %5199 = vmatprep.subr.bf16.mxu1 %v5198_v4  ;;  %5231 = vmatprep.subr.bf16.mxu0 %v7440_v19  ;;  %5598 = vrsqrt.f32 %v2790_v16  ;;  %v2841_v58 = vmul.f32 %v7339_v31, %v2819_v47 }
 0x974   : > { %3055 = vmatmul.mubr.f32.gmra.mrb[12].mxu1 %v7447_v50  ;;  %3216 = vmatmul.mubr.f32.gmra.mrb[28].mxu0 %v7447_v50  ;;  %v2791_v62 = vadd.f32 1e-05, %v2775_v20 }
 0x975   : > { %3060 = vmatprep.mubr.f32.mxu1 %v6069_v63  ;;  %3221 = vmatprep.mubr.f32.mxu0 %v6069_v63  ;;  %v7495_v6 = vadd.f32 %v7344_v53, %v2841_v58 }
 0x976   : > { %5201 = vmatpush3.bf16.msra.mxu1 %v5200_v28  ;;  %5600 = vrsqrt.f32 %v2791_v62 }
 0x977   : > { %5203 = vmatprep.subr.bf16.mxu1 %v5202_v0  ;;  %v7534_v0 = vpack.c.bf16 %v3385_v13, %v3384_v36 }
 0x978   : > { %3061 = vmatmul.mubr.f32.gmra.mrb[14].mxu1 %v7458_v48  ;;  %3222 = vmatmul.mubr.f32.gmra.mrb[30].mxu0 %v7458_v48  ;;  %v5595_v34 = vpop.eup %5594 }
 0x979   : > { %3066 = vmatprep.mubr.f32.mxu1 %v6069_v63  ;;  %3227 = vmatprep.mubr.f32.mxu0 %v6069_v63  ;;  %v2820_v14 = vmul.f32 %v5595_v34, %v7307_v17  ;;  %v5597_v25 = vpop.eup %5596 }
 0x97a   : > { %5205 = vmatpush3.bf16.msra.mxu1 %v5204_v37  ;;  %v2821_v4 = vmul.f32 %v5597_v25, %v7320_v45  ;;  %5233 = vmatpush3.bf16.msra.mxu0 %v7534_v0  ;;  %v2932_v37 = vld [vmem:[%s8088_s7] sm:$0xf] }
 0x97b   : > { %5254 = vmatprep.subr.bf16.mxu1 %v7333_v42  ;;  %v7486_v42 = vadd.f32 %v7344_v53, %v2840_v23  ;;  %v2842_v18 = vmul.f32 %v7339_v31, %v2820_v14 }
 0x97c   : > { %3067 = vmatmul.mubr.f32.gmra.mrb[16].mxu1 %v7467_v39  ;;  %3228 = vmatmul.mubr.f32.gmra.mrb[32].mxu0 %v7467_v39  ;;  %v2843_v29 = vmul.f32 %v7339_v31, %v2821_v4 }
 0x97d   : > { %3072 = vmatprep.mubr.f32.mxu1 %v6069_v63  ;;  %3233 = vmatprep.mubr.f32.mxu0 %v6069_v63  ;;  %v5599_v41 = vpop.eup %5598  ;;  %v7504_v17 = vadd.f32 %v7344_v53, %v2842_v18 }
 0x97e   : > { %v2822_v10 = vmul.f32 %v5599_v41, %v7317_v8  ;;  %v7513_v45 = vadd.f32 %v7344_v53, %v2843_v29 }
 0x980   : > { %3073 = vmatmul.mubr.f32.gmra.mrb[18].mxu1 %v7477_v24  ;;  %3234 = vmatmul.mubr.f32.gmra.mrb[34].mxu0 %v7477_v24  ;;  %v5601_v61 = vpop.eup %5600  ;;  %v2844_v28 = vmul.f32 %v7339_v31, %v2822_v10 }
 0x981   : > { %3078 = vmatprep.mubr.f32.mxu1 %v6069_v63  ;;  %3239 = vmatprep.mubr.f32.mxu0 %v6069_v63  ;;  %v2823_v43 = vmul.f32 %v5601_v61, %v7327_v1 }
 0x982   : > { %v7522_v8 = vadd.f32 %v7344_v53, %v2844_v28 }
 0x983   : > { %v2845_v38 = vmul.f32 %v7339_v31, %v2823_v43  ;;  %v3402_v31 = vld [vmem:[#allocation22 + $0x1f0] sm:$0xff] }
 0x984   : > { %3079 = vmatmul.mubr.f32.gmra.mrb[20].mxu1 %v7486_v42  ;;  %3240 = vmatmul.mubr.f32.gmra.mrb[36].mxu0 %v7486_v42  ;;  %v7537_v33 = vpack.c.bf16 %v3403_v3, %v3402_v31 }
 0x985   : > { %3084 = vmatprep.mubr.f32.mxu1 %v6069_v63  ;;  %3245 = vmatprep.mubr.f32.mxu0 %v6069_v63  ;;  %v7530_v1 = vadd.f32 %v7344_v53, %v2845_v38  ;;  %v2934_v53 = vlaneseq }
 0x986   : > { %5235 = vmatprep.subr.bf16.mxu0 %v7537_v33 }
 0x987   : > { %v2935_v22 = vshrl.u32 %v2934_v53, 7 }
 0x988   : > { %3085 = vmatmul.mubr.f32.gmra.mrb[22].mxu1 %v7495_v6  ;;  %3246 = vmatmul.mubr.f32.gmra.mrb[38].mxu0 %v7495_v6 }
 0x989   : > { %3090 = vmatprep.mubr.f32.mxu1 %v6069_v63  ;;  %3251 = vmatprep.mubr.f32.mxu0 %v6069_v63  ;;  %v2936_v5 = vsub.s32 0, %v2935_v22  ;;  %v2944_v11 = vsub.s32 2, %v2935_v22  ;;  %v2940_v52 = vsub.s32 1, %v2935_v22  ;;  %v2948_v16 = vsub.s32 3, %v2935_v22 }
 0x98b   : > { %v7546_v20 = vrot.slane %v2932_v37, %v2936_v5  ;;  %v7548_v32 = vrot.slane %v2932_v37, %v2944_v11  ;;  %v7550_v40 = vrot.slane %v2932_v37, %v2940_v52  ;;  %v7552_v46 = vrot.slane %v2932_v37, %v2948_v16 }
 0x98c   : > { %3091 = vmatmul.mubr.f32.gmra.mrb[24].mxu1 %v7504_v17  ;;  %3252 = vmatmul.mubr.f32.gmra.mrb[40].mxu0 %v7504_v17 }
 0x98d   : > { %3096 = vmatprep.mubr.f32.mxu1 %v6069_v63  ;;  %3257 = vmatprep.mubr.f32.mxu0 %v6069_v63 }
 0x990   : > { %3097 = vmatmul.mubr.f32.gmra.mrb[26].mxu1 %v7513_v45  ;;  %3258 = vmatmul.mubr.f32.gmra.mrb[42].mxu0 %v7513_v45 }
 0x991   : > { %3102 = vmatprep.mubr.f32.mxu1 %v6069_v63  ;;  %3263 = vmatprep.mubr.f32.mxu0 %v6069_v63 }
 0x994   : > { %3103 = vmatmul.mubr.f32.gmra.mrb[28].mxu1 %v7522_v8  ;;  %3264 = vmatmul.mubr.f32.gmra.mrb[44].mxu0 %v7522_v8 }
 0x995   : > { %3108 = vmatprep.mubr.f32.mxu1 %v6069_v63  ;;  %3269 = vmatprep.mubr.f32.mxu0 %v6069_v63  ;;  %v7539_v63 = vpack.c.bf16 %v3387_v54, %v3386_v49 }
 0x997   : > { %5237 = vmatpush3.bf16.msra.mxu0 %v7539_v63 }
 0x998   : > { %3109 = vmatmul.mubr.f32.gmra.mrb[30].mxu1 %v7530_v1  ;;  %3270 = vmatmul.mubr.f32.gmra.mrb[46].mxu0 %v7530_v1 }
 0xa2f   : > { %v3020_v62 = vpop.f32.mrb[0].mxu1  ;;  %v3181_v23 = vpop.f32.mrb[16].mxu0 }
 0xa30   : > { %v3021_v47 = vadd.f32 %v3020_v62, %v7546_v20  ;;  %v3182_v34 = vadd.f32 %v3181_v23, %v7548_v32  ;;  %v3022_v58 = vpop.f32.mrb[1].mxu1  ;;  %v3183_v14 = vpop.f32.mrb[17].mxu0 }
 0xa31   : > { %v3023_v25 = vadd.f32 %v3022_v58, %v7550_v40  ;;  %v3184_v18 = vadd.f32 %v3183_v14, %v7552_v46 }
 0xa32   : > { %v3276_v61 = vmax.f32 %v3021_v47, 0.0  ;;  %v3278_v28 = vmax.f32 %v3182_v34, 0.0 }
 0xa33   : > { %v3277_v4 = vmax.f32 %v3023_v25, 0.0  ;;  %v3279_v41 = vmax.f32 %v3184_v18, 0.0  ;;  %v3026_v29 = vpop.f32.mrb[2].mxu1  ;;  %v3187_v10 = vpop.f32.mrb[18].mxu0 }
 0xa34   : > { %v3027_v43 = vadd.f32 %v3026_v29, %v7546_v20  ;;  %v3188_v38 = vadd.f32 %v3187_v10, %v7548_v32  ;;  %v3028_v36 = vpop.f32.mrb[3].mxu1  ;;  %v3189_v13 = vpop.f32.mrb[19].mxu0 }
 0xa35   : > { %v3029_v31 = vadd.f32 %v3028_v36, %v7550_v40  ;;  %v3190_v3 = vadd.f32 %v3189_v13, %v7552_v46  ;;  %3475 = vmatprep.mubr.f32.mxu1 %v3277_v4  ;;  %3620 = vmatprep.mubr.f32.mxu0 %v3279_v41 }
 0xa36   : > { %3476 = vmatmul.mubr.f32.vlgmr.msra.gmra.mrb[32].mxu1 %v3276_v61  ;;  %3621 = vmatmul.mubr.f32.vlgmr.msra.gmra.mrb[48].mxu0 %v3278_v28  ;;  %v3280_v5 = vmax.f32 %v3027_v43, 0.0  ;;  %v3282_v11 = vmax.f32 %v3188_v38, 0.0 }
 0xa37   : > { %v3281_v49 = vmax.f32 %v3029_v31, 0.0  ;;  %v3283_v54 = vmax.f32 %v3190_v3, 0.0  ;;  %5262 = vmatpush3.bf16.msra.mxu1 %v7354_v7  ;;  %v3032_v53 = vpop.f32.mrb[4].mxu1  ;;  %v3193_v22 = vpop.f32.mrb[20].mxu0 }
 0xa38   : > { %v3033_v37 = vadd.f32 %v3032_v53, %v7546_v20  ;;  %v3194_v52 = vadd.f32 %v3193_v22, %v7548_v32  ;;  %v3034_v16 = vpop.f32.mrb[5].mxu1  ;;  %v3195_v62 = vpop.f32.mrb[21].mxu0  ;;  %5255 = vmatprep.subr.bf16.mxu1 %v7356_v26 }
 0xa39   : > { %v3035_v23 = vadd.f32 %v3034_v16, %v7550_v40  ;;  %v3196_v47 = vadd.f32 %v3195_v62, %v7552_v46  ;;  %3480 = vmatprep.mubr.f32.mxu1 %v3281_v49  ;;  %3625 = vmatprep.mubr.f32.mxu0 %v3283_v54 }
 0xa3a   : > { %3481 = vmatmul.mubr.f32.gmra.mrb[34].mxu1 %v3280_v5  ;;  %3626 = vmatmul.mubr.f32.gmra.mrb[50].mxu0 %v3282_v11  ;;  %v3284_v25 = vmax.f32 %v3033_v37, 0.0  ;;  %v3286_v18 = vmax.f32 %v3194_v52, 0.0 }
 0xa3b   : > { %v3285_v7 = vmax.f32 %v3035_v23, 0.0  ;;  %v3287_v34 = vmax.f32 %v3196_v47, 0.0  ;;  %v3038_v58 = vpop.f32.mrb[6].mxu1  ;;  %v3199_v14 = vpop.f32.mrb[22].mxu0  ;;  %5263 = vmatpush3.bf16.msra.mxu1 %v7371_v30 }
 0xa3c   : > { %v3039_v4 = vadd.f32 %v3038_v58, %v7546_v20  ;;  %v3200_v26 = vadd.f32 %v3199_v14, %v7548_v32  ;;  %v3040_v41 = vpop.f32.mrb[7].mxu1  ;;  %v3201_v29 = vpop.f32.mrb[23].mxu0  ;;  %5256 = vmatprep.subr.bf16.mxu1 %v7375_v57 }
 0xa3d   : > { %v3041_v10 = vadd.f32 %v3040_v41, %v7550_v40  ;;  %v3202_v61 = vadd.f32 %v3201_v29, %v7552_v46  ;;  %3485 = vmatprep.mubr.f32.mxu1 %v3285_v7  ;;  %3630 = vmatprep.mubr.f32.mxu0 %v3287_v34 }
 0xa3e   : > { %3486 = vmatmul.mubr.f32.gmra.mrb[36].mxu1 %v3284_v25  ;;  %3631 = vmatmul.mubr.f32.gmra.mrb[52].mxu0 %v3286_v18  ;;  %v3288_v36 = vmax.f32 %v3039_v4, 0.0  ;;  %v3290_v13 = vmax.f32 %v3200_v26, 0.0 }
 0xa3f   : > { %v3289_v28 = vmax.f32 %v3041_v10, 0.0  ;;  %v3291_v30 = vmax.f32 %v3202_v61, 0.0  ;;  %v3044_v43 = vpop.f32.mrb[8].mxu1  ;;  %v3205_v38 = vpop.f32.mrb[24].mxu0  ;;  %5264 = vmatpush3.bf16.msra.mxu1 %v7385_v9 }
 0xa40   : > { %v3045_v31 = vadd.f32 %v3044_v43, %v7546_v20  ;;  %v3206_v57 = vadd.f32 %v3205_v38, %v7548_v32  ;;  %v3046_v3 = vpop.f32.mrb[9].mxu1  ;;  %v3207_v49 = vpop.f32.mrb[25].mxu0  ;;  %5257 = vmatprep.subr.bf16.mxu1 %v7394_v60 }
 0xa41   : > { %v3047_v54 = vadd.f32 %v3046_v3, %v7550_v40  ;;  %v3208_v53 = vadd.f32 %v3207_v49, %v7552_v46  ;;  %3490 = vmatprep.mubr.f32.mxu1 %v3289_v28  ;;  %3635 = vmatprep.mubr.f32.mxu0 %v3291_v30 }
 0xa42   : > { %3491 = vmatmul.mubr.f32.gmra.mrb[38].mxu1 %v3288_v36  ;;  %3636 = vmatmul.mubr.f32.gmra.mrb[54].mxu0 %v3290_v13  ;;  %v3292_v37 = vmax.f32 %v3045_v31, 0.0  ;;  %v3294_v52 = vmax.f32 %v3206_v57, 0.0 }
 0xa43   : > { %v3293_v22 = vmax.f32 %v3047_v54, 0.0  ;;  %v3295_v9 = vmax.f32 %v3208_v53, 0.0  ;;  %v3050_v5 = vpop.f32.mrb[10].mxu1  ;;  %v3211_v11 = vpop.f32.mrb[26].mxu0  ;;  %5265 = vmatpush3.bf16.msra.mxu1 %v7401_v15 }
 0xa44   : > { %v3051_v16 = vadd.f32 %v3050_v5, %v7546_v20  ;;  %v3212_v60 = vadd.f32 %v3211_v11, %v7548_v32  ;;  %v3052_v62 = vpop.f32.mrb[11].mxu1  ;;  %v3213_v23 = vpop.f32.mrb[27].mxu0  ;;  %5258 = vmatprep.subr.bf16.mxu1 %v7410_v55 }
 0xa45   : > { %v3053_v47 = vadd.f32 %v3052_v62, %v7550_v40  ;;  %v3214_v7 = vadd.f32 %v3213_v23, %v7552_v46  ;;  %3495 = vmatprep.mubr.f32.mxu1 %v3293_v22  ;;  %3640 = vmatprep.mubr.f32.mxu0 %v3295_v9 }
 0xa46   : > { %3496 = vmatmul.mubr.f32.gmra.mrb[40].mxu1 %v3292_v37  ;;  %3641 = vmatmul.mubr.f32.gmra.mrb[56].mxu0 %v3294_v52  ;;  %v3296_v25 = vmax.f32 %v3051_v16, 0.0  ;;  %v3298_v18 = vmax.f32 %v3212_v60, 0.0 }
 0xa47   : > { %v3297_v34 = vmax.f32 %v3053_v47, 0.0  ;;  %v3299_v15 = vmax.f32 %v3214_v7, 0.0  ;;  %v3056_v58 = vpop.f32.mrb[12].mxu1  ;;  %v3217_v14 = vpop.f32.mrb[28].mxu0  ;;  %5266 = vmatpush3.bf16.msra.mxu1 %v7416_v35 }
 0xa48   : > { %v3057_v4 = vadd.f32 %v3056_v58, %v7546_v20  ;;  %v3218_v55 = vadd.f32 %v3217_v14, %v7548_v32  ;;  %v3058_v26 = vpop.f32.mrb[13].mxu1  ;;  %v3219_v41 = vpop.f32.mrb[29].mxu0  ;;  %5259 = vmatprep.subr.bf16.mxu1 %v7425_v56 }
 0xa49   : > { %v3059_v29 = vadd.f32 %v3058_v26, %v7550_v40  ;;  %v3220_v10 = vadd.f32 %v3219_v41, %v7552_v46  ;;  %3500 = vmatprep.mubr.f32.mxu1 %v3297_v34  ;;  %3645 = vmatprep.mubr.f32.mxu0 %v3299_v15 }
 0xa4a   : > { %3501 = vmatmul.mubr.f32.gmra.mrb[42].mxu1 %v3296_v25  ;;  %3646 = vmatmul.mubr.f32.gmra.mrb[58].mxu0 %v3298_v18  ;;  %v3300_v43 = vmax.f32 %v3057_v4, 0.0  ;;  %v3302_v38 = vmax.f32 %v3218_v55, 0.0 }
 0xa4b   : > { %v3301_v61 = vmax.f32 %v3059_v29, 0.0  ;;  %v3303_v35 = vmax.f32 %v3220_v10, 0.0  ;;  %v3062_v28 = vpop.f32.mrb[14].mxu1  ;;  %v3223_v30 = vpop.f32.mrb[30].mxu0  ;;  %5267 = vmatpush3.bf16.msra.mxu1 %v7431_v2 }
 0xa4c   : > { %v3063_v36 = vadd.f32 %v3062_v28, %v7546_v20  ;;  %v3224_v56 = vadd.f32 %v3223_v30, %v7548_v32  ;;  %v3064_v13 = vpop.f32.mrb[15].mxu1  ;;  %v3225_v31 = vpop.f32.mrb[31].mxu0  ;;  %5260 = vmatprep.subr.bf16.mxu1 %v7440_v19 }
 0xa4d   : > { %v3065_v57 = vadd.f32 %v3064_v13, %v7550_v40  ;;  %v3226_v3 = vadd.f32 %v3225_v31, %v7552_v46  ;;  %3505 = vmatprep.mubr.f32.mxu1 %v3301_v61  ;;  %3650 = vmatprep.mubr.f32.mxu0 %v3303_v35 }
 0xa4e   : > { %3506 = vmatmul.mubr.f32.gmra.mrb[44].mxu1 %v3300_v43  ;;  %3651 = vmatmul.mubr.f32.gmra.mrb[60].mxu0 %v3302_v38  ;;  %v3304_v22 = vmax.f32 %v3063_v36, 0.0  ;;  %v3306_v9 = vmax.f32 %v3224_v56, 0.0 }
 0xa4f   : > { %v3305_v49 = vmax.f32 %v3065_v57, 0.0  ;;  %v3307_v2 = vmax.f32 %v3226_v3, 0.0  ;;  %v3068_v54 = vpop.f32.mrb[16].mxu1  ;;  %v3229_v53 = vpop.f32.mrb[32].mxu0  ;;  %5268 = vmatpush3.bf16.msra.mxu1 %v7534_v0 }
 0xa50   : > { %v3069_v5 = vadd.f32 %v3068_v54, %v7546_v20  ;;  %v3230_v19 = vadd.f32 %v3229_v53, %v7548_v32  ;;  %v3070_v11 = vpop.f32.mrb[17].mxu1  ;;  %v3231_v37 = vpop.f32.mrb[33].mxu0  ;;  %5261 = vmatprep.subr.bf16.mxu1 %v7537_v33 }
 0xa51   : > { %v3071_v52 = vadd.f32 %v3070_v11, %v7550_v40  ;;  %v3232_v16 = vadd.f32 %v3231_v37, %v7552_v46  ;;  %3510 = vmatprep.mubr.f32.mxu1 %v3305_v49  ;;  %3655 = vmatprep.mubr.f32.mxu0 %v3307_v2 }
 0xa52   : > { %3511 = vmatmul.mubr.f32.gmra.mrb[46].mxu1 %v3304_v22  ;;  %3656 = vmatmul.mubr.f32.gmra.mrb[62].mxu0 %v3306_v9  ;;  %v3308_v47 = vmax.f32 %v3069_v5, 0.0  ;;  %v3310_v7 = vmax.f32 %v3230_v19, 0.0 }
 0xa53   : > { %v3309_v60 = vmax.f32 %v3071_v52, 0.0  ;;  %v3311_v0 = vmax.f32 %v3232_v16, 0.0  ;;  %v3074_v62 = vpop.f32.mrb[18].mxu1  ;;  %v3235_v23 = vpop.f32.mrb[34].mxu0  ;;  %5269 = vmatpush3.bf16.msra.mxu1 %v7539_v63 }
 0xa54   : > { %v3075_v34 = vadd.f32 %v3074_v62, %v7546_v20  ;;  %v3236_v33 = vadd.f32 %v3235_v23, %v7548_v32  ;;  %v3076_v15 = vpop.f32.mrb[19].mxu1  ;;  %v3237_v58 = vpop.f32.mrb[35].mxu0 }
 0xa55   : > { %v3077_v14 = vadd.f32 %v3076_v15, %v7550_v40  ;;  %v3238_v25 = vadd.f32 %v3237_v58, %v7552_v46  ;;  %3515 = vmatprep.mubr.f32.mxu1 %v3309_v60  ;;  %3660 = vmatprep.mubr.f32.mxu0 %v3311_v0 }
 0xa56   : > { %3516 = vmatmul.mubr.f32.gmra.mrb[48].mxu1 %v3308_v47  ;;  %3661 = vmatmul.mubr.f32.gmra.mrb[64].mxu0 %v3310_v7  ;;  %v3312_v26 = vmax.f32 %v3075_v34, 0.0  ;;  %v3314_v41 = vmax.f32 %v3236_v33, 0.0 }
 0xa57   : > { %v3313_v18 = vmax.f32 %v3077_v14, 0.0  ;;  %v3315_v4 = vmax.f32 %v3238_v25, 0.0  ;;  %v3080_v55 = vpop.f32.mrb[20].mxu1  ;;  %v3241_v63 = vpop.f32.mrb[36].mxu0 }
 0xa58   : > { %v3081_v29 = vadd.f32 %v3080_v55, %v7546_v20  ;;  %v3242_v10 = vadd.f32 %v3241_v63, %v7548_v32  ;;  %v3082_v61 = vpop.f32.mrb[21].mxu1  ;;  %v3243_v35 = vpop.f32.mrb[37].mxu0 }
 0xa59   : > { %v3083_v28 = vadd.f32 %v3082_v61, %v7550_v40  ;;  %v3244_v30 = vadd.f32 %v3243_v35, %v7552_v46  ;;  %3520 = vmatprep.mubr.f32.mxu1 %v3313_v18  ;;  %3665 = vmatprep.mubr.f32.mxu0 %v3315_v4 }
 0xa5a   : > { %3521 = vmatmul.mubr.f32.gmra.mrb[50].mxu1 %v3312_v26  ;;  %3666 = vmatmul.mubr.f32.gmra.mrb[66].mxu0 %v3314_v41  ;;  %v3316_v13 = vmax.f32 %v3081_v29, 0.0  ;;  %v3318_v31 = vmax.f32 %v3242_v10, 0.0 }
 0xa5b   : > { %v3317_v43 = vmax.f32 %v3083_v28, 0.0  ;;  %v3319_v38 = vmax.f32 %v3244_v30, 0.0  ;;  %v3086_v36 = vpop.f32.mrb[22].mxu1  ;;  %v3247_v56 = vpop.f32.mrb[38].mxu0 }
 0xa5c   : > { %v3087_v57 = vadd.f32 %v3086_v36, %v7546_v20  ;;  %v3248_v3 = vadd.f32 %v3247_v56, %v7548_v32  ;;  %v3088_v49 = vpop.f32.mrb[23].mxu1  ;;  %v3249_v2 = vpop.f32.mrb[39].mxu0 }
 0xa5d   : > { %v3089_v54 = vadd.f32 %v3088_v49, %v7550_v40  ;;  %v3250_v53 = vadd.f32 %v3249_v2, %v7552_v46  ;;  %3525 = vmatprep.mubr.f32.mxu1 %v3317_v43  ;;  %3670 = vmatprep.mubr.f32.mxu0 %v3319_v38 }
 0xa5e   : > { %3526 = vmatmul.mubr.f32.gmra.mrb[52].mxu1 %v3316_v13  ;;  %3671 = vmatmul.mubr.f32.gmra.mrb[68].mxu0 %v3318_v31  ;;  %v3320_v11 = vmax.f32 %v3087_v57, 0.0  ;;  %v3322_v37 = vmax.f32 %v3248_v3, 0.0 }
 0xa5f   : > { %v3321_v22 = vmax.f32 %v3089_v54, 0.0  ;;  %v3323_v9 = vmax.f32 %v3250_v53, 0.0  ;;  %v3092_v5 = vpop.f32.mrb[24].mxu1  ;;  %v3253_v19 = vpop.f32.mrb[40].mxu0 }
 0xa60   : > { %v3093_v52 = vadd.f32 %v3092_v5, %v7546_v20  ;;  %v3254_v16 = vadd.f32 %v3253_v19, %v7548_v32  ;;  %v3094_v60 = vpop.f32.mrb[25].mxu1  ;;  %v3255_v0 = vpop.f32.mrb[41].mxu0 }
 0xa61   : > { %v3095_v62 = vadd.f32 %v3094_v60, %v7550_v40  ;;  %3530 = vmatprep.mubr.f32.mxu1 %v3321_v22  ;;  %3675 = vmatprep.mubr.f32.mxu0 %v3323_v9  ;;  %v3256_v3 = vadd.f32 %v3255_v0, %v7552_v46 }
 0xa62   : > { %3531 = vmatmul.mubr.f32.gmra.mrb[54].mxu1 %v3320_v11  ;;  %3676 = vmatmul.mubr.f32.gmra.mrb[70].mxu0 %v3322_v37  ;;  %v3324_v34 = vmax.f32 %v3093_v52, 0.0  ;;  %v3326_v9 = vmax.f32 %v3254_v16, 0.0  ;;  %v7636_v52 = vld [vmem:[%s8089_s9] ss:$0 sm:$0xff] }
 0xa63   : > { %v3325_v23 = vmax.f32 %v3095_v62, 0.0  ;;  %v3098_v47 = vpop.f32.mrb[26].mxu1  ;;  %v3259_v7 = vpop.f32.mrb[42].mxu0  ;;  %v3327_v22 = vmax.f32 %v3256_v3, 0.0 }
 0xa64   : > { %v3099_v33 = vadd.f32 %v3098_v47, %v7546_v20  ;;  %v3260_v15 = vadd.f32 %v3259_v7, %v7548_v32  ;;  %v3100_v58 = vpop.f32.mrb[27].mxu1  ;;  %v3261_v14 = vpop.f32.mrb[43].mxu0 }
 0xa65   : > { %v3101_v25 = vadd.f32 %v3100_v58, %v7550_v40  ;;  %v3262_v18 = vadd.f32 %v3261_v14, %v7552_v46  ;;  %3535 = vmatprep.mubr.f32.mxu1 %v3325_v23 }
 0xa66   : > { %3536 = vmatmul.mubr.f32.gmra.mrb[56].mxu1 %v3324_v34  ;;  %v3328_v26 = vmax.f32 %v3099_v33, 0.0 }
 0xa67   : > { %v3329_v4 = vmax.f32 %v3101_v25, 0.0  ;;  %v3104_v55 = vpop.f32.mrb[28].mxu1  ;;  %v3265_v63 = vpop.f32.mrb[44].mxu0 }
 0xa68   : > { %v3105_v41 = vadd.f32 %v3104_v55, %v7546_v20  ;;  %v3266_v29 = vadd.f32 %v3265_v63, %v7548_v32  ;;  %v3106_v10 = vpop.f32.mrb[29].mxu1  ;;  %v3267_v61 = vpop.f32.mrb[45].mxu0 }
 0xa69   : > { %v3107_v35 = vadd.f32 %v3106_v10, %v7550_v40  ;;  %v3268_v28 = vadd.f32 %v3267_v61, %v7552_v46  ;;  %3540 = vmatprep.mubr.f32.mxu1 %v3329_v4 }
 0xa6a   : > { %3541 = vmatmul.mubr.f32.gmra.mrb[58].mxu1 %v3328_v26  ;;  %v3332_v36 = vmax.f32 %v3105_v41, 0.0  ;;  %v3334_v19 = vmax.f32 %v3266_v29, 0.0 }
 0xa6b   : > { %v3333_v30 = vmax.f32 %v3107_v35, 0.0  ;;  %v3110_v43 = vpop.f32.mrb[30].mxu1  ;;  %v3271_v38 = vpop.f32.mrb[46].mxu0  ;;  %v3335_v5 = vmax.f32 %v3268_v28, 0.0 }
 0xa6c   : > { %v3111_v56 = vadd.f32 %v3110_v43, %v7546_v20  ;;  %v3272_v13 = vadd.f32 %v3271_v38, %v7548_v32  ;;  %v3112_v31 = vpop.f32.mrb[31].mxu1  ;;  %v3273_v57 = vpop.f32.mrb[47].mxu0  ;;  %v3331_v20 = vmax.f32 %v3262_v18, 0.0  ;;  %v3330_v32 = vmax.f32 %v3260_v15, 0.0 }
 0xa6d   : > { %v3113_v49 = vadd.f32 %v3112_v31, %v7550_v40  ;;  %v3274_v2 = vadd.f32 %v3273_v57, %v7552_v46  ;;  %3545 = vmatprep.mubr.f32.mxu1 %v3333_v30 }
 0xa6e   : > { %3546 = vmatmul.mubr.f32.gmra.mrb[60].mxu1 %v3332_v36  ;;  %v3336_v53 = vmax.f32 %v3111_v56, 0.0  ;;  %v3338_v46 = vmax.f32 %v3272_v13, 0.0 }
 0xa6f   : > { %v3337_v54 = vmax.f32 %v3113_v49, 0.0  ;;  %v3339_v40 = vmax.f32 %v3274_v2, 0.0 }
 0xa71   : > { %3550 = vmatprep.mubr.f32.mxu1 %v3337_v54 }
 0xa72   : > { %3551 = vmatmul.mubr.f32.gmra.mrb[62].mxu1 %v3336_v53 }
 0xa73   : > { %3680 = vmatprep.mubr.f32.mxu1 %v3327_v22 }
 0xa76   : > { %3681 = vmatmul.mubr.f32.vlgmr.msra.gmra.mrb[64].mxu1 %v3326_v9 }
 0xa77   : > { %3685 = vmatprep.mubr.f32.mxu1 %v3331_v20 }
 0xa7a   : > { %3686 = vmatmul.mubr.f32.gmra.mrb[66].mxu1 %v3330_v32 }
 0xa7b   : > { %3690 = vmatprep.mubr.f32.mxu1 %v3335_v5 }
 0xa7e   : > { %3691 = vmatmul.mubr.f32.gmra.mrb[68].mxu1 %v3334_v19 }
 0xa7f   : > { %3695 = vmatprep.mubr.f32.mxu1 %v3339_v40 }
 0xa82   : > { %3696 = vmatmul.mubr.f32.gmra.mrb[70].mxu1 %v3338_v46 }
 0xb09   : > { %v4454_v11 = vpop.f32.mrb[32].mxu1  ;;  %v4534_v37 = vpop.f32.mrb[48].mxu0 }
 0xb0a   : > { %v4455_v16 = vpop.f32.mrb[33].mxu1  ;;  %v4535_v60 = vpop.f32.mrb[49].mxu0 }
 0xb0b   : > { %v4456_v0 = vadd.f32 %v4455_v16, %v4454_v11  ;;  %v4536_v62 = vadd.f32 %v4535_v60, %v4534_v37 }
 0xb0d   : > { %v3478_v23 = vadd.f32 %v4456_v0, %v7636_v52  ;;  %v4457_v47 = vpop.f32.mrb[34].mxu1  ;;  %v4537_v7 = vpop.f32.mrb[50].mxu0 }
 0xb0e   : > { %v4458_v34 = vpop.f32.mrb[35].mxu1  ;;  %v4538_v33 = vpop.f32.mrb[51].mxu0 }
 0xb0f   : > { %v3623_v15 = vadd.f32 %v4536_v62, %v3478_v23  ;;  %v4459_v58 = vadd.f32 %v4458_v34, %v4457_v47  ;;  %v4539_v14 = vadd.f32 %v4538_v33, %v4537_v7 }
 0xb11   : > { %v3483_v25 = vadd.f32 %v4459_v58, %v7636_v52  ;;  %v4460_v18 = vpop.f32.mrb[36].mxu1  ;;  %v4540_v4 = vpop.f32.mrb[52].mxu0  ;;  %v7641_v55 = vadd.f32 %v3623_v15, %v7350_v12 }
 0xb12   : > { %v4461_v63 = vpop.f32.mrb[37].mxu1  ;;  %v4541_v26 = vpop.f32.mrb[53].mxu0 }
 0xb13   : > { %v3628_v41 = vadd.f32 %v4539_v14, %v3483_v25  ;;  %v4462_v29 = vadd.f32 %v4461_v63, %v4460_v18  ;;  %v4542_v10 = vadd.f32 %v4541_v26, %v4540_v4  ;;  %3719 = vadd.xlane.f32.xlu1 %v7641_v55 }
 0xb15   : > { %v3488_v61 = vadd.f32 %v4462_v29, %v7636_v52  ;;  %v4463_v35 = vpop.f32.mrb[38].mxu1  ;;  %v4543_v28 = vpop.f32.mrb[54].mxu0  ;;  %v7646_v30 = vadd.f32 %v3628_v41, %v7367_v21 }
 0xb16   : > { %v4464_v43 = vpop.f32.mrb[39].mxu1  ;;  %v4544_v38 = vpop.f32.mrb[55].mxu0 }
 0xb17   : > { %v3633_v36 = vadd.f32 %v4542_v10, %v3488_v61  ;;  %v4465_v56 = vadd.f32 %v4464_v43, %v4463_v35  ;;  %v4545_v12 = vadd.f32 %v4544_v38, %v4543_v28  ;;  %3721 = vadd.xlane.f32.xlu0 %v7646_v30 }
 0xb19   : > { %v3493_v13 = vadd.f32 %v4465_v56, %v7636_v52  ;;  %v4466_v31 = vpop.f32.mrb[40].mxu1  ;;  %v4546_v57 = vpop.f32.mrb[56].mxu0  ;;  %v7651_v3 = vadd.f32 %v3633_v36, %v7388_v44 }
 0xb1a   : > { %v4467_v49 = vpop.f32.mrb[41].mxu1  ;;  %v4547_v2 = vpop.f32.mrb[57].mxu0 }
 0xb1b   : > { %v3638_v54 = vadd.f32 %v4545_v12, %v3493_v13  ;;  %v4468_v53 = vadd.f32 %v4467_v49, %v4466_v31  ;;  %v4548_v21 = vadd.f32 %v4547_v2, %v4546_v57  ;;  %3723 = vadd.xlane.f32.xlu1 %v7651_v3 }
 0xb1d   : > { %v3498_v22 = vadd.f32 %v4468_v53, %v7636_v52  ;;  %v4469_v9 = vpop.f32.mrb[42].mxu1  ;;  %v4549_v20 = vpop.f32.mrb[58].mxu0  ;;  %v7656_v32 = vadd.f32 %v3638_v54, %v7404_v59 }
 0xb1e   : > { %v4470_v5 = vpop.f32.mrb[43].mxu1  ;;  %v4550_v19 = vpop.f32.mrb[59].mxu0 }
 0xb1f   : > { %v3643_v40 = vadd.f32 %v4548_v21, %v3498_v22  ;;  %v4471_v46 = vadd.f32 %v4470_v5, %v4469_v9  ;;  %v4551_v44 = vadd.f32 %v4550_v19, %v4549_v20  ;;  %3725 = vadd.xlane.f32.xlu0 %v7656_v32 }
 0xb21   : > { %v3503_v11 = vadd.f32 %v4471_v46, %v7636_v52  ;;  %v4472_v37 = vpop.f32.mrb[44].mxu1  ;;  %v4552_v16 = vpop.f32.mrb[60].mxu0  ;;  %v7661_v60 = vadd.f32 %v3643_v40, %v7419_v51 }
 0xb22   : > { %v4473_v0 = vpop.f32.mrb[45].mxu1  ;;  %v4553_v62 = vpop.f32.mrb[61].mxu0 }
 0xb23   : > { %v3648_v23 = vadd.f32 %v4551_v44, %v3503_v11  ;;  %v4474_v47 = vadd.f32 %v4473_v0, %v4472_v37  ;;  %v4554_v59 = vadd.f32 %v4553_v62, %v4552_v16  ;;  %3727 = vadd.xlane.f32.xlu1 %v7661_v60 }
 0xb25   : > { %v3508_v7 = vadd.f32 %v4474_v47, %v7636_v52  ;;  %v4475_v34 = vpop.f32.mrb[46].mxu1  ;;  %v4555_v33 = vpop.f32.mrb[62].mxu0  ;;  %v7666_v15 = vadd.f32 %v3648_v23, %v7434_v27 }
 0xb26   : > { %v4476_v58 = vpop.f32.mrb[47].mxu1  ;;  %v4556_v14 = vpop.f32.mrb[63].mxu0 }
 0xb27   : > { %v3653_v25 = vadd.f32 %v4554_v59, %v3508_v7  ;;  %v4477_v18 = vadd.f32 %v4476_v58, %v4475_v34  ;;  %v4557_v51 = vadd.f32 %v4556_v14, %v4555_v33  ;;  %3729 = vadd.xlane.f32.xlu0 %v7666_v15 }
 0xb29   : > { %v3513_v4 = vadd.f32 %v4477_v18, %v7636_v52  ;;  %v4478_v63 = vpop.f32.mrb[48].mxu1  ;;  %v4558_v26 = vpop.f32.mrb[64].mxu0  ;;  %v7671_v41 = vadd.f32 %v3653_v25, %v7447_v50 }
 0xb2a   : > { %v4479_v29 = vpop.f32.mrb[49].mxu1  ;;  %v4559_v10 = vpop.f32.mrb[65].mxu0 }
 0xb2b   : > { %v3658_v61 = vadd.f32 %v4557_v51, %v3513_v4  ;;  %v4480_v35 = vadd.f32 %v4479_v29, %v4478_v63  ;;  %v4560_v27 = vadd.f32 %v4559_v10, %v4558_v26  ;;  %3731 = vadd.xlane.f32.xlu1 %v7671_v41 }
 0xb2d   : > { %v3518_v28 = vadd.f32 %v4480_v35, %v7636_v52  ;;  %v4481_v43 = vpop.f32.mrb[50].mxu1  ;;  %v4561_v38 = vpop.f32.mrb[66].mxu0  ;;  %v7676_v36 = vadd.f32 %v3658_v61, %v7458_v48 }
 0xb2e   : > { %v4482_v56 = vpop.f32.mrb[51].mxu1  ;;  %v4562_v12 = vpop.f32.mrb[67].mxu0 }
 0xb2f   : > { %v3663_v13 = vadd.f32 %v4560_v27, %v3518_v28  ;;  %v4483_v31 = vadd.f32 %v4482_v56, %v4481_v43  ;;  %v4563_v50 = vadd.f32 %v4562_v12, %v4561_v38  ;;  %3733 = vadd.xlane.f32.xlu0 %v7676_v36 }
 0xb31   : > { %v3523_v57 = vadd.f32 %v4483_v31, %v7636_v52  ;;  %v4484_v49 = vpop.f32.mrb[52].mxu1  ;;  %v4564_v2 = vpop.f32.mrb[68].mxu0  ;;  %v7681_v54 = vadd.f32 %v3663_v13, %v7467_v39 }
 0xb32   : > { %v4485_v53 = vpop.f32.mrb[53].mxu1  ;;  %v4565_v21 = vpop.f32.mrb[69].mxu0 }
 0xb33   : > { %v3668_v22 = vadd.f32 %v4563_v50, %v3523_v57  ;;  %v4486_v9 = vadd.f32 %v4485_v53, %v4484_v49  ;;  %v4566_v48 = vadd.f32 %v4565_v21, %v4564_v2  ;;  %3735 = vadd.xlane.f32.xlu1 %v7681_v54 }
 0xb35   : > { %v3528_v20 = vadd.f32 %v4486_v9, %v7636_v52  ;;  %v4487_v5 = vpop.f32.mrb[54].mxu1  ;;  %v4567_v19 = vpop.f32.mrb[70].mxu0  ;;  %v7686_v40 = vadd.f32 %v3668_v22, %v7477_v24 }
 0xb36   : > { %v4488_v46 = vpop.f32.mrb[55].mxu1  ;;  %v4568_v44 = vpop.f32.mrb[71].mxu0 }
 0xb37   : > { %v3673_v11 = vadd.f32 %v4566_v48, %v3528_v20  ;;  %v4489_v37 = vadd.f32 %v4488_v46, %v4487_v5  ;;  %v4569_v39 = vadd.f32 %v4568_v44, %v4567_v19  ;;  %3737 = vadd.xlane.f32.xlu0 %v7686_v40 }
 0xb39   : > { %v3533_v16 = vadd.f32 %v4489_v37, %v7636_v52  ;;  %v4490_v0 = vpop.f32.mrb[56].mxu1  ;;  %v7691_v62 = vadd.f32 %v3673_v11, %v7486_v42 }
 0xb3a   : > { %v4491_v23 = vpop.f32.mrb[57].mxu1 }
 0xb3b   : > { %v3678_v47 = vadd.f32 %v4569_v39, %v3533_v16  ;;  %v4492_v59 = vadd.f32 %v4491_v23, %v4490_v0  ;;  %3739 = vadd.xlane.f32.xlu1 %v7691_v62 }
 0xb3d   : > { %v4493_v24 = vpop.f32.mrb[58].mxu1  ;;  %v7695_v7 = vadd.f32 %v3678_v47, %v7495_v6  ;;  %v3538_v6 = vadd.f32 %v4492_v59, %v7636_v52 }
 0xb3e   : > { %v4494_v34 = vpop.f32.mrb[59].mxu1 }
 0xb3f   : > { %v4495_v33 = vadd.f32 %v4494_v34, %v4493_v24  ;;  %3741 = vadd.xlane.f32.xlu0 %v7695_v7 }
 0xb41   : > { %v3543_v58 = vadd.f32 %v4495_v33, %v7636_v52  ;;  %v4496_v14 = vpop.f32.mrb[60].mxu1 }
 0xb42   : > { %v4497_v25 = vpop.f32.mrb[61].mxu1 }
 0xb43   : > { %v4498_v18 = vadd.f32 %v4497_v25, %v4496_v14 }
 0xb45   : > { %v3548_v42 = vadd.f32 %v4498_v18, %v7636_v52  ;;  %v4499_v51 = vpop.f32.mrb[62].mxu1 }
 0xb46   : > { %v4500_v4 = vpop.f32.mrb[63].mxu1 }
 0xb47   : > { %v4501_v63 = vadd.f32 %v4500_v4, %v4499_v51 }
 0xb49   : > { %v3553_v26 = vadd.f32 %v4501_v63, %v7636_v52  ;;  %v4570_v29 = vpop.f32.mrb[64].mxu1 }
 0xb4a   : > { %v4571_v10 = vpop.f32.mrb[65].mxu1 }
 0xb4b   : > { %v4572_v61 = vadd.f32 %v4571_v10, %v4570_v29 }
 0xb4d   : > { %v3683_v35 = vadd.f32 %v4572_v61, %v3538_v6  ;;  %v4573_v27 = vpop.f32.mrb[66].mxu1 }
 0xb4e   : > { %v4574_v28 = vpop.f32.mrb[67].mxu1 }
 0xb4f   : > { %v4575_v43 = vadd.f32 %v4574_v28, %v4573_v27  ;;  %v7703_v38 = vadd.f32 %v3683_v35, %v7504_v17 }
 0xb51   : > { %v3688_v56 = vadd.f32 %v4575_v43, %v3543_v58  ;;  %v4576_v12 = vpop.f32.mrb[68].mxu1  ;;  %3743 = vadd.xlane.f32.xlu1 %v7703_v38 }
 0xb52   : > { %v4577_v13 = vpop.f32.mrb[69].mxu1 }
 0xb53   : > { %v4578_v31 = vadd.f32 %v4577_v13, %v4576_v12  ;;  %v7707_v50 = vadd.f32 %v3688_v56, %v7513_v45 }
 0xb55   : > { %v3693_v57 = vadd.f32 %v4578_v31, %v3548_v42  ;;  %v4579_v49 = vpop.f32.mrb[70].mxu1  ;;  %3745 = vadd.xlane.f32.xlu0 %v7707_v50 }
 0xb56   : > { %v4580_v52 = vpop.f32.mrb[71].mxu1 }
 0xb57   : > { %v4581_v2 = vadd.f32 %v4580_v52, %v4579_v49  ;;  %v7711_v53 = vadd.f32 %v3693_v57, %v7522_v8 }
 0xb59   : > { %v3698_v17 = vadd.f32 %v4581_v2, %v3553_v26  ;;  %3747 = vadd.xlane.f32.xlu1 %v7711_v53 }
 0xb5b   : > { %v7715_v21 = vadd.f32 %v3698_v17, %v7530_v1 }
 0xb5d   : > { %3749 = vadd.xlane.f32.xlu0 %v7715_v21 }
 0xba0   : > { %v3720_v22 = vpop.xlane.xlu1 %3719 }
 0xba1   : > { %v3751_v45 = vmul.f32 0.0078125, %v3720_v22 }
 0xba3   : > { %v7719_v9 = vsub.f32 %v7641_v55, %v3751_v45 }
 0xba4   : > { %v3722_v48 = vpop.xlane.xlu0 %3721 }
 0xba5   : > { %v3752_v20 = vmul.f32 0.0078125, %v3722_v48  ;;  %v3783_v5 = vmul.f32 %v7719_v9, %v7719_v9 }
 0xba7   : > { %v7724_v8 = vsub.f32 %v7646_v30, %v3752_v20  ;;  %3799 = vadd.xlane.f32.xlu1 %v3783_v5 }
 0xba8   : > { %v3724_v19 = vpop.xlane.xlu1 %3723 }
 0xba9   : > { %v3753_v46 = vmul.f32 0.0078125, %v3724_v19  ;;  %v3784_v1 = vmul.f32 %v7724_v8, %v7724_v8 }
 0xbab   : > { %v7729_v44 = vsub.f32 %v7651_v3, %v3753_v46  ;;  %3801 = vadd.xlane.f32.xlu0 %v3784_v1 }
 0xbac   : > { %v3726_v55 = vpop.xlane.xlu0 %3725 }
 0xbad   : > { %v3754_v11 = vmul.f32 0.0078125, %v3726_v55  ;;  %v3785_v37 = vmul.f32 %v7729_v44, %v7729_v44 }
 0xbaf   : > { %v7734_v39 = vsub.f32 %v7656_v32, %v3754_v11  ;;  %3803 = vadd.xlane.f32.xlu1 %v3785_v37 }
 0xbb0   : > { %v3728_v30 = vpop.xlane.xlu1 %3727 }
 0xbb1   : > { %v3755_v16 = vmul.f32 0.0078125, %v3728_v30  ;;  %v3786_v0 = vmul.f32 %v7734_v39, %v7734_v39 }
 0xbb3   : > { %v7739_v23 = vsub.f32 %v7661_v60, %v3755_v16  ;;  %3805 = vadd.xlane.f32.xlu0 %v3786_v0  ;;  %v7801_v16 = vld [vmem:[%s8090_s25] ss:$0 sm:$0xff] }
 0xbb4   : > { %v3730_v3 = vpop.xlane.xlu0 %3729 }
 0xbb5   : > { %v3756_v47 = vmul.f32 0.0078125, %v3730_v3  ;;  %v3787_v59 = vmul.f32 %v7739_v23, %v7739_v23 }
 0xbb7   : > { %v7744_v24 = vsub.f32 %v7666_v15, %v3756_v47  ;;  %3807 = vadd.xlane.f32.xlu1 %v3787_v59  ;;  %v7807_v59 = vld [vmem:[%s8091_s24] ss:$0 sm:$0xff] }
 0xbb8   : > { %v3732_v32 = vpop.xlane.xlu1 %3731 }
 0xbb9   : > { %v3757_v34 = vmul.f32 0.0078125, %v3732_v32  ;;  %v3788_v33 = vmul.f32 %v7744_v24, %v7744_v24 }
 0xbbb   : > { %v7749_v58 = vsub.f32 %v7671_v41, %v3757_v34  ;;  %3809 = vadd.xlane.f32.xlu0 %v3788_v33 }
 0xbbc   : > { %v3734_v60 = vpop.xlane.xlu0 %3733 }
 0xbbd   : > { %v3758_v14 = vmul.f32 0.0078125, %v3734_v60  ;;  %v3789_v25 = vmul.f32 %v7749_v58, %v7749_v58 }
 0xbbf   : > { %v7754_v18 = vsub.f32 %v7676_v36, %v3758_v14  ;;  %3811 = vadd.xlane.f32.xlu1 %v3789_v25 }
 0xbc0   : > { %v3736_v15 = vpop.xlane.xlu1 %3735 }
 0xbc1   : > { %v3759_v42 = vmul.f32 0.0078125, %v3736_v15  ;;  %v3790_v51 = vmul.f32 %v7754_v18, %v7754_v18 }
 0xbc3   : > { %v7759_v4 = vsub.f32 %v7681_v54, %v3759_v42  ;;  %3813 = vadd.xlane.f32.xlu0 %v3790_v51 }
 0xbc4   : > { %v3738_v41 = vpop.xlane.xlu0 %3737 }
 0xbc5   : > { %v3760_v63 = vmul.f32 0.0078125, %v3738_v41  ;;  %v3791_v26 = vmul.f32 %v7759_v4, %v7759_v4 }
 0xbc7   : > { %v7764_v29 = vsub.f32 %v7686_v40, %v3760_v63  ;;  %3815 = vadd.xlane.f32.xlu1 %v3791_v26 }
 0xbc8   : > { %v3740_v36 = vpop.xlane.xlu1 %3739 }
 0xbc9   : > { %v3761_v10 = vmul.f32 0.0078125, %v3740_v36  ;;  %v3792_v6 = vmul.f32 %v7764_v29, %v7764_v29 }
 0xbcb   : > { %v7769_v61 = vsub.f32 %v7691_v62, %v3761_v10  ;;  %3817 = vadd.xlane.f32.xlu0 %v3792_v6 }
 0xbcc   : > { %v3742_v54 = vpop.xlane.xlu0 %3741 }
 0xbcd   : > { %v3762_v35 = vmul.f32 0.0078125, %v3742_v54  ;;  %v3793_v27 = vmul.f32 %v7769_v61, %v7769_v61 }
 0xbcf   : > { %v7774_v28 = vsub.f32 %v7695_v7, %v3762_v35  ;;  %3819 = vadd.xlane.f32.xlu1 %v3793_v27 }
 0xbd1   : > { %v3794_v40 = vmul.f32 %v7774_v28, %v7774_v28 }
 0xbd3   : > { %3821 = vadd.xlane.f32.xlu0 %v3794_v40 }
 0xbde   : > { %v3744_v43 = vpop.xlane.xlu1 %3743 }
 0xbdf   : > { %v3763_v56 = vmul.f32 0.0078125, %v3744_v43 }
 0xbe1   : > { %v7779_v12 = vsub.f32 %v7703_v38, %v3763_v56 }
 0xbe2   : > { %v3746_v62 = vpop.xlane.xlu0 %3745 }
 0xbe3   : > { %v3764_v13 = vmul.f32 0.0078125, %v3746_v62  ;;  %v3795_v31 = vmul.f32 %v7779_v12, %v7779_v12 }
 0xbe5   : > { %v7784_v57 = vsub.f32 %v7707_v50, %v3764_v13  ;;  %3823 = vadd.xlane.f32.xlu1 %v3795_v31 }
 0xbe6   : > { %v3748_v7 = vpop.xlane.xlu1 %3747 }
 0xbe7   : > { %v3765_v49 = vmul.f32 0.0078125, %v3748_v7  ;;  %v3796_v52 = vmul.f32 %v7784_v57, %v7784_v57 }
 0xbe9   : > { %v7789_v2 = vsub.f32 %v7711_v53, %v3765_v49  ;;  %3825 = vadd.xlane.f32.xlu0 %v3796_v52 }
 0xbea   : > { %v3750_v38 = vpop.xlane.xlu0 %3749 }
 0xbeb   : > { %v3766_v17 = vmul.f32 0.0078125, %v3750_v38  ;;  %v3797_v22 = vmul.f32 %v7789_v2, %v7789_v2 }
 0xbed   : > { %v7794_v45 = vsub.f32 %v7715_v21, %v3766_v17  ;;  %3827 = vadd.xlane.f32.xlu1 %v3797_v22 }
 0xbef   : > { %v3798_v50 = vmul.f32 %v7794_v45, %v7794_v45 }
 0xbf1   : > { %3829 = vadd.xlane.f32.xlu0 %v3798_v50 }
 0xc34   : > { %v3800_v48 = vpop.xlane.xlu1 %3799 }
 0xc35   : > { %v3831_v20 = vmul.f32 0.0078125, %v3800_v48 }
 0xc37   : > { %v3847_v5 = vadd.f32 1e-05, %v3831_v20 }
 0xc38   : > { %v3802_v19 = vpop.xlane.xlu0 %3801 }
 0xc39   : > { %5602 = vrsqrt.f32 %v3847_v5  ;;  %v3832_v53 = vmul.f32 0.0078125, %v3802_v19 }
 0xc3b   : > { %v3848_v46 = vadd.f32 1e-05, %v3832_v53 }
 0xc3c   : > { %v3804_v1 = vpop.xlane.xlu1 %3803 }
 0xc3d   : > { %5604 = vrsqrt.f32 %v3848_v46  ;;  %v3833_v55 = vmul.f32 0.0078125, %v3804_v1 }
 0xc3f   : > { %v3849_v11 = vadd.f32 1e-05, %v3833_v55 }
 0xc40   : > { %v3806_v37 = vpop.xlane.xlu0 %3805 }
 0xc41   : > { %5606 = vrsqrt.f32 %v3849_v11  ;;  %v3834_v21 = vmul.f32 0.0078125, %v3806_v37 }
 0xc43   : > { %v5603_v30 = vpop.eup %5602  ;;  %v3850_v0 = vadd.f32 1e-05, %v3834_v21 }
 0xc44   : > { %v3879_v3 = vmul.f32 %v5603_v30, %v7719_v9  ;;  %v3808_v47 = vpop.xlane.xlu1 %3807 }
 0xc45   : > { %5608 = vrsqrt.f32 %v3850_v0  ;;  %v3835_v32 = vmul.f32 0.0078125, %v3808_v47 }
 0xc46   : > { %v3901_v34 = vmul.f32 %v7801_v16, %v3879_v3 }
 0xc47   : > { %v5605_v33 = vpop.eup %5604  ;;  %v3851_v60 = vadd.f32 1e-05, %v3835_v32 }
 0xc48   : > { %v3923_v14 = vadd.f32 %v7807_v59, %v3901_v34  ;;  %v3880_v25 = vmul.f32 %v5605_v33, %v7724_v8  ;;  %v3810_v15 = vpop.xlane.xlu0 %3809 }
 0xc49   : > { %5610 = vrsqrt.f32 %v3851_v60  ;;  %v3836_v9 = vmul.f32 0.0078125, %v3810_v15 }
 0xc4a   : > { %3939 = vst [vmem:[%s6659_s23] sm:$0xff] %v3923_v14  ;;  %v3902_v42 = vmul.f32 %v7801_v16, %v3880_v25 }
 0xc4b   : > { %v5607_v51 = vpop.eup %5606  ;;  %v3852_v41 = vadd.f32 1e-05, %v3836_v9 }
 0xc4c   : > { %v3924_v63 = vadd.f32 %v7807_v59, %v3902_v42  ;;  %v3881_v26 = vmul.f32 %v5607_v51, %v7729_v44  ;;  %v3812_v36 = vpop.xlane.xlu1 %3811 }
 0xc4d   : > { %5612 = vrsqrt.f32 %v3852_v41  ;;  %v3837_v10 = vmul.f32 0.0078125, %v3812_v36 }
 0xc4e   : > { %3940 = vst [vmem:[%s6659_s23 + $0x8] sm:$0xff] %v3924_v63  ;;  %v3903_v6 = vmul.f32 %v7801_v16, %v3881_v26 }
 0xc4f   : > { %v5609_v8 = vpop.eup %5608  ;;  %v3853_v54 = vadd.f32 1e-05, %v3837_v10 }
 0xc50   : > { %v3925_v35 = vadd.f32 %v7807_v59, %v3903_v6  ;;  %v3882_v27 = vmul.f32 %v5609_v8, %v7734_v39  ;;  %v3814_v40 = vpop.xlane.xlu0 %3813 }
 0xc51   : > { %5614 = vrsqrt.f32 %v3853_v54  ;;  %v3838_v43 = vmul.f32 0.0078125, %v3814_v40 }
 0xc52   : > { %3941 = vst [vmem:[%s6659_s23 + $0x10] sm:$0xff] %v3925_v35  ;;  %v3904_v56 = vmul.f32 %v7801_v16, %v3882_v27 }
 0xc53   : > { %v5611_v44 = vpop.eup %5610  ;;  %v3854_v62 = vadd.f32 1e-05, %v3838_v43 }
 0xc54   : > { %v3926_v13 = vadd.f32 %v7807_v59, %v3904_v56  ;;  %v3883_v31 = vmul.f32 %v5611_v44, %v7739_v23  ;;  %v3816_v7 = vpop.xlane.xlu1 %3815 }
 0xc55   : > { %5616 = vrsqrt.f32 %v3854_v62  ;;  %v3839_v49 = vmul.f32 0.0078125, %v3816_v7 }
 0xc56   : > { %3942 = vst [vmem:[%s6659_s23 + $0x18] sm:$0xff] %v3926_v13  ;;  %v3905_v52 = vmul.f32 %v7801_v16, %v3883_v31 }
 0xc57   : > { %v5613_v39 = vpop.eup %5612  ;;  %v3855_v38 = vadd.f32 1e-05, %v3839_v49 }
 0xc58   : > { %v3927_v17 = vadd.f32 %v7807_v59, %v3905_v52  ;;  %v3884_v22 = vmul.f32 %v5613_v39, %v7744_v24  ;;  %v3818_v50 = vpop.xlane.xlu0 %3817 }
 0xc59   : > { %5618 = vrsqrt.f32 %v3855_v38  ;;  %v3840_v48 = vmul.f32 0.0078125, %v3818_v50 }
 0xc5a   : > { %3943 = vst [vmem:[%s6659_s23 + $0x20] sm:$0xff] %v3927_v17  ;;  %v3906_v20 = vmul.f32 %v7801_v16, %v3884_v22 }
 0xc5b   : > { %v5615_v23 = vpop.eup %5614  ;;  %v3856_v5 = vadd.f32 1e-05, %v3840_v48 }
 0xc5c   : > { %v3928_v19 = vadd.f32 %v7807_v59, %v3906_v20  ;;  %v3885_v53 = vmul.f32 %v5615_v23, %v7749_v58  ;;  %v3820_v46 = vpop.xlane.xlu1 %3819 }
 0xc5d   : > { %5620 = vrsqrt.f32 %v3856_v5  ;;  %v3841_v1 = vmul.f32 0.0078125, %v3820_v46 }
 0xc5e   : > { %3944 = vst [vmem:[%s6659_s23 + $0x28] sm:$0xff] %v3928_v19  ;;  %v3907_v24 = vmul.f32 %v7801_v16, %v3885_v53 }
 0xc5f   : > { %v5617_v55 = vpop.eup %5616  ;;  %v3857_v11 = vadd.f32 1e-05, %v3841_v1 }
 0xc60   : > { %v3929_v37 = vadd.f32 %v7807_v59, %v3907_v24  ;;  %v3886_v21 = vmul.f32 %v5617_v55, %v7754_v18  ;;  %v3822_v30 = vpop.xlane.xlu0 %3821 }
 0xc61   : > { %5622 = vrsqrt.f32 %v3857_v11  ;;  %v3842_v0 = vmul.f32 0.0078125, %v3822_v30 }
 0xc62   : > { %3945 = vst [vmem:[%s6659_s23 + $0x30] sm:$0xff] %v3929_v37  ;;  %v3908_v58 = vmul.f32 %v7801_v16, %v3886_v21 }
 0xc63   : > { %v5619_v3 = vpop.eup %5618  ;;  %v3858_v47 = vadd.f32 1e-05, %v3842_v0 }
 0xc64   : > { %v3930_v32 = vadd.f32 %v7807_v59, %v3908_v58  ;;  %v3887_v34 = vmul.f32 %v5619_v3, %v7759_v4 }
 0xc65   : > { %5624 = vrsqrt.f32 %v3858_v47 }
 0xc66   : > { %3946 = vst [vmem:[%s6659_s23 + $0x38] sm:$0xff] %v3930_v32  ;;  %v3909_v33 = vmul.f32 %v7801_v16, %v3887_v34 }
 0xc67   : > { %v5621_v18 = vpop.eup %5620 }
 0xc68   : > { %v3931_v60 = vadd.f32 %v7807_v59, %v3909_v33  ;;  %v3888_v14 = vmul.f32 %v5621_v18, %v7764_v29 }
 0xc6a   : > { %3947 = vst [vmem:[%s6659_s23 + $0x40] sm:$0xff] %v3931_v60  ;;  %v3910_v25 = vmul.f32 %v7801_v16, %v3888_v14 }
 0xc6b   : > { %v5623_v15 = vpop.eup %5622 }
 0xc6c   : > { %v3932_v9 = vadd.f32 %v7807_v59, %v3910_v25  ;;  %v3889_v42 = vmul.f32 %v5623_v15, %v7769_v61 }
 0xc6e   : > { %3948 = vst [vmem:[%s6659_s23 + $0x48] sm:$0xff] %v3932_v9  ;;  %v3911_v4 = vmul.f32 %v7801_v16, %v3889_v42 }
 0xc6f   : > { %v5625_v51 = vpop.eup %5624 }
 0xc70   : > { %v3933_v41 = vadd.f32 %v7807_v59, %v3911_v4  ;;  %v3890_v63 = vmul.f32 %v5625_v51, %v7774_v28 }
 0xc72   : > { %3949 = vst [vmem:[%s6659_s23 + $0x50] sm:$0xff] %v3933_v41  ;;  %v3912_v29 = vmul.f32 %v7801_v16, %v3890_v63  ;;  %v3824_v26 = vpop.xlane.xlu1 %3823 }
 0xc73   : > { %v3843_v36 = vmul.f32 0.0078125, %v3824_v26 }
 0xc74   : > { %v3934_v10 = vadd.f32 %v7807_v59, %v3912_v29 }
 0xc75   : > { %v3859_v6 = vadd.f32 1e-05, %v3843_v36 }
 0xc76   : > { %3950 = vst [vmem:[%s6659_s23 + $0x58] sm:$0xff] %v3934_v10  ;;  %v3826_v8 = vpop.xlane.xlu0 %3825 }
 0xc77   : > { %5626 = vrsqrt.f32 %v3859_v6  ;;  %v3844_v61 = vmul.f32 0.0078125, %v3826_v8 }
 0xc79   : > { %v3860_v54 = vadd.f32 1e-05, %v3844_v61 }
 0xc7a   : > { %v3828_v35 = vpop.xlane.xlu1 %3827 }
 0xc7b   : > { %5628 = vrsqrt.f32 %v3860_v54  ;;  %v3845_v27 = vmul.f32 0.0078125, %v3828_v35 }
 0xc7d   : > { %v3861_v40 = vadd.f32 1e-05, %v3845_v27 }
 0xc7e   : > { %v3830_v43 = vpop.xlane.xlu0 %3829 }
 0xc7f   : > { %5630 = vrsqrt.f32 %v3861_v40  ;;  %v3846_v28 = vmul.f32 0.0078125, %v3830_v43 }
 0xc81   : > { %v5627_v56 = vpop.eup %5626  ;;  %v3862_v44 = vadd.f32 1e-05, %v3846_v28 }
 0xc82   : > { %v3891_v62 = vmul.f32 %v5627_v56, %v7779_v12 }
 0xc83   : > { %5632 = vrsqrt.f32 %v3862_v44 }
 0xc84   : > { %v3913_v13 = vmul.f32 %v7801_v16, %v3891_v62 }
 0xc85   : > { %v5629_v31 = vpop.eup %5628 }
 0xc86   : > { %v3935_v7 = vadd.f32 %v7807_v59, %v3913_v13  ;;  %v3892_v49 = vmul.f32 %v5629_v31, %v7784_v57 }
 0xc88   : > { %3951 = vst [vmem:[%s6659_s23 + $0x60] sm:$0xff] %v3935_v7  ;;  %v3914_v52 = vmul.f32 %v7801_v16, %v3892_v49 }
 0xc89   : > { %v5631_v39 = vpop.eup %5630 }
 0xc8a   : > { %v3936_v38 = vadd.f32 %v7807_v59, %v3914_v52  ;;  %v3893_v17 = vmul.f32 %v5631_v39, %v7789_v2 }
 0xc8c   : > { %3952 = vst [vmem:[%s6659_s23 + $0x68] sm:$0xff] %v3936_v38  ;;  %v3915_v12 = vmul.f32 %v7801_v16, %v3893_v17 }
 0xc8d   : > { %v5633_v22 = vpop.eup %5632 }
 0xc8e   : > { %v3937_v50 = vadd.f32 %v7807_v59, %v3915_v12  ;;  %v3894_v48 = vmul.f32 %v5633_v22, %v7794_v45 }
 0xc90   : > { %3953 = vst [vmem:[%s6659_s23 + $0x70] sm:$0xff] %v3937_v50  ;;  %v3916_v20 = vmul.f32 %v7801_v16, %v3894_v48 }
 0xc92   : > { %v3938_v57 = vadd.f32 %v7807_v59, %v3916_v20 }
 0xc94   : > { %3954 = vst [vmem:[%s6659_s23 + $0x78] sm:$0xff] %v3938_v57 }
 0xc95 PF: > { %s8092_s5 = sld [smem:[#allocation36_spill]]  ;;  %s8093_s28 = sld [smem:[#allocation37_spill]] }
 0xc96   : > { %s3971_s19 = sshll.u32 %s6659_s23, 4  ;;  %s8095_s9 = sld [smem:[#allocation58_spill]]  ;;  %s7875_s19 = int_to_ptr.vmem [resolvable:$true] %s3971_s19 }
 0xc97   : > { %s7884_s10 = scalar_lea.sflag [#allocation10], %s664_s16  ;;  %s5892_s25 = scalar_lea.vmem %s7875_s19, 2048 }
 0xc98   : > { %p5893_p12 = scmp.ne.s32.totalorder %s7875_s19, %s5892_s25  ;;  %p8096_p2 = scmp.ne.s32.totalorder %s8064_s21, 0 }
 0xc99   : > { %s6070_s23 = smov [#allocation23]  }
 0xc9a   : > { %p5894_p6 = pnand %p5893_p12, %p8096_p2  ;;  %s5896_s27 = sshll.u32 %s6070_s23, 4  ;;  %s5897_s27 = int_to_ptr.vmem [resolvable:$false] %s5896_s27 }
 0xc9b   : > { %s4225_s30 = sshll.u32 %s8092_s5, 4  ;;  %s4226_s14 = sshll.u32 %s8093_s28, 5 }
 0xc9c   : > { %s3968_s11 = sadd.s32 %s4226_s14, %s4225_s30  ;;  %p5895_p0 = pneg %p5894_p6 }
 0xc9d   : > { %s4227_s7 = sshll.u32 %s3968_s11, 7  ;;  %s5898_s15 = scalar_lea.vmem %s5897_s27, 4096 }
 0xc9e   : > { %s7880_s29 = scalar_lea.hbm %s8095_s9, %s4227_s7  ;;  %p5899_p5 = scmp.lt.s32.totalorder %s7875_s19, %s5897_s27 }
 0xc9f   : > { %p5900_p11 = scmp.lt.s32.totalorder %s5898_s15, %s5892_s25 }
 0xca1   : > { %p5901_p9 = por %p5900_p11, %p5899_p5 }
 0xca3   : > { %p5902_p10 = pnand %p5901_p9, %p5895_p0 }
 0xca5   : > { %5905 = shalt.err (!%p5902_p10)
}
 0xca6   : > { %s5906_s16 = scalar_lea.hbm %s7880_s29, 2048  ;;  %s5910_s28 = scalar_lea.hbm %s8095_s9, 8192 }
 0xca7   : > { %p5907_p8 = scmp.ne.s32.totalorder %s7880_s29, %s5906_s16  ;;  %p5911_p7 = scmp.lt.u32.totalorder %s7880_s29, %s8095_s9 }
 0xca8   : > { %p5912_p1 = scmp.lt.u32.totalorder %s5910_s28, %s5906_s16  ;;  %p5914_p12 = scmp.lt.u32.totalorder %s5906_s16, %s7880_s29 }
 0xca9   : > { %p5908_p3 = pnand %p5907_p8, %p8096_p2 }
 0xcaa   : > { %p5913_p4 = por %p5912_p1, %p5911_p7 }
 0xcab   : > { %p5909_p13 = pneg %p5908_p3 }
 0xcac   : > { %p5915_p6 = por %p5914_p12, %p5913_p4 }
 0xcae   : > { %p5916_p0 = pnand %p5915_p6, %p5909_p13 }
 0xcb0   : > { %5919 = shalt.err (!%p5916_p0)
}
 0xcb1   : > { %s6071_s14 = smov 128   ;;  %s6072_s11 = smov 8  }
 0xcb2   : > { %5300 = dma.vmem_to_hbm [thread:$0]  (%p8096_p2), %s7875_s19, 2048, %s7880_s29, %s7884_s10, %s6071_s14, %s6071_s14, %s6072_s11  }
 0xcb3 PF: > { %s8097_s7 = sld [smem:[#allocation31_spill]]  ;;  %p5348_p5 = scmp.ge.s32.totalorder %s6050_s18, 2 }
 0xcb4   : > { %p8098_p11 = scmp.ne.s32.totalorder %s8065_s8, 0 }
 0xcb6   : > { %p5332_p9 = pnand %p5348_p5, %p8098_p11 }
 0xcb9   : > { %s3986_s1 = sand.u32 1, %s8097_s7  }
 0xcba   : > { %s3987_s22 = scalar_lea.sflag [#allocation10], %s3986_s1 }
 0xcbb   : > { %5997 = dma.done.wait (!%p5332_p9), %s3987_s22, 2048  }
 0xcbc   : > { %5999 = vsyncadd (!%p5332_p9), %s3987_s22, 4294965248  ;;  %s38_s18 = sadd.s32 1, %s6050_s18   ;;  %s8100_s21 = sld [smem:[#allocation32_spill]] }
 0xcbd   : > { %p7913_p10 = scmp.ge.s32.totalorder %s38_s18, 10   ;;  %s8101_s22 = sld [smem:[#allocation33_spill]] }
 0xcbe   : > { %s8102_s24 = sld [smem:[#allocation34_spill]]  ;;  %s8103_s19 = sld [smem:[#allocation44_spill]] }
 0xcbf   : > { %s8104_s27 = sld [smem:[#allocation38_spill]]  ;;  %s8105_s30 = sld [smem:[#allocation40_spill]] }
 0xcc0   : > { %s8106_s8 = sld [smem:[#allocation41_spill]]  ;;  %s8107_s10 = sld [smem:[#allocation42_spill]] }
 0xcc1   : > { %s8109_s23 = smov %s6551_s2  ;;  %s8110_s25 = smov %s6022_s26 }
 0xcc2   : > { %s8112_s28 = smov %s6042_s0  ;;  %s8113_s29 = smov %s6046_s17 }
 0xcc3   :  { %37 = sbr.rel (!%p7913_p10) target bundleno = 30 (0x1e), region = 193 }
 0xcc4   : > { %s8111_s26 = smov %s8103_s19 }
 0xcc6   : > { %s8114_s0 = smov %s8106_s8  ;;  %s8115_s17 = smov %s8107_s10 }
 0xcca   :  { %3992 = vsyncpa [#allocation9], 1 }
 0xccb   :  { %3994 = vsyncpa [#allocation9 + $0x1], 1 }
 0xccc   :  { %3995 = vsyncpa [#allocation12], 1 }
 0xccd   :  { %3997 = vsyncpa [#allocation12 + $0x1], 1 }
 0xcce   :  { %3998 = vsyncpa [#allocation15], 1 }
 0xccf   :  { %3999 = vsyncpa [#allocation18], 1 }
 0xcd0   :  { %4000 = vsyncpa [#allocation21], 1 }
 0xcd1   :  { %4001 = vsyncpa [#allocation10], 1 }
 0xcd2   :  { %4003 = vsyncpa [#allocation10 + $0x1], 1 }

</bundles_post_ra>
